<compile_context>
chip_gen: v7x
topology: tpu7x:2x2x1
jax: 0.10.0
libtpu: 0.0.40
codegen_flags: <defaults>
</compile_context>

<pallas_src>
import numpy as np
import jax
import jax.numpy as jnp
from jax.experimental import pallas as pl
from jax.experimental.pallas import tpu as pltpu

# ----------------------------- hyper-params (small, TPU-friendly) -----------------------------
VOCAB = 32          # RES_VOCAB_SIZE
LATENT = 128        # LATENT_DIM
EMB = 64            # RES_EMBEDDING_DIM
EMB_PAD = 128       # embedding padded to a full lane tile (zero columns)
HEAD_W = 128        # fused head width: [0:VOCAB]=label logits, [VOCAB]=depth, [VOCAB+1]=width


def _ceil_to(x, m):
    return ((int(x) + m - 1) // m) * m


# ----------------------------------------- Pallas kernel --------------------------------------
def make_decoder_kernel(MAXN, ROOT_BASE, B_pad):
    L = LATENT
    EP = EMB_PAD

    def kernel(pidx_ref, sidx_ref, nidx_ref,                 # scalar prefetch (SMEM, int32)
               z_ref, emb_ref, off_ref,                      # per-step / constant activations
               Wpred_ref, Whead_ref, bhead_ref,              # fused prediction weights
               Wlp_ref, blp_ref, Wls_ref, bls_ref,           # fused LSTM weights
               out_ref,                                      # (S_pad, 128) resident result slab
               hp, cp, hs, cs,                               # recurrent state (VMEM scratch)
               g_hcat, g_xp, g_xs, g_c):                     # gather staging buffers
        f32 = jnp.float32
        s = pl.program_id(0)

        # ---- one-time init of resident state / output slab ----
        @pl.when(s == 0)
        def _init():
            hp[...] = jnp.zeros_like(hp)
            cp[...] = jnp.zeros_like(cp)
            hs[...] = jnp.zeros_like(hs)
            cs[...] = jnp.zeros_like(cs)
            out_ref[...] = jnp.zeros_like(out_ref)
            # roots: h_parent = z, c_parent = 0 (rows [ROOT_BASE, ROOT_BASE+B_pad))
            hp[ROOT_BASE:ROOT_BASE + B_pad, :] = z_ref[...]

        emb = emb_ref[0]          # (MAXN, EP)   teacher-forced label embeddings (padded lanes)
        off = off_ref[0]          # (MAXN, 1)    offset_parent(is_parent)+offset_sibling(has_sib)
        g_xp[:, 0:EP] = emb
        g_xs[:, 0:EP] = emb

        # ---- gather parent / previous-sibling state rows (data-dependent, in-kernel) ----
        base = s * MAXN
        for r in range(MAXN):
            p = pidx_ref[base + r]
            q = sidx_ref[base + r]
            hp_row = hp[pl.ds(p, 1), :]
            hs_row = hs[pl.ds(q, 1), :]
            g_hcat[r:r + 1, 0:L] = hp_row
            g_hcat[r:r + 1, L:2 * L] = hs_row
            g_xp[r:r + 1, EP:EP + L] = hp_row
            g_xs[r:r + 1, EP:EP + L] = hs_row
            g_c[r:r + 1, 0:L] = cp[pl.ds(p, 1), :]
            g_c[r:r + 1, L:2 * L] = cs[pl.ds(q, 1), :]

        # ---- h_pred = tanh(U_parent h_par + U_sibling h_sib)  (single fused K=2L matmul) ----
        h_pred = jnp.tanh(jnp.dot(g_hcat[...], Wpred_ref[...], preferred_element_type=f32))

        # ---- fused heads: label logits | depth | width packed into one lane-dense matmul ----
        head = jnp.dot(h_pred, Whead_ref[...], preferred_element_type=f32) + bhead_ref[...]
        lane = jax.lax.broadcasted_iota(jnp.int32, (MAXN, HEAD_W), 1)
        logits = head + off                                   # offset add (broadcast over lanes)
        masked = jnp.where(lane < VOCAB, logits, jnp.full_like(logits, -1e30))
        m = jnp.max(masked, axis=-1, keepdims=True)
        lse = jnp.log(jnp.sum(jnp.exp(masked - m), axis=-1, keepdims=True)) + m
        logsm = logits - lse                                  # log-softmax over the VOCAB lanes
        sig = jax.nn.sigmoid(head)                            # cols VOCAB / VOCAB+1 = p_par/p_sib
        out_tile = jnp.where(lane < VOCAB, logsm, sig)        # lane-dense (MAXN, 128) result

        # ---- the two LSTM cells, each as ONE fused K=EP+L matmul (PyTorch i,f,g,o order) ----
        c_par = g_c[:, 0:L]
        c_sib = g_c[:, L:2 * L]

        def lstm_cell(xh_ref, c_prev, W_ref, b_ref):
            gates = jnp.dot(xh_ref[...], W_ref[...], preferred_element_type=f32) + b_ref[...]
            i = jax.nn.sigmoid(gates[:, 0 * L:1 * L])
            f = jax.nn.sigmoid(gates[:, 1 * L:2 * L])
            g = jnp.tanh(gates[:, 2 * L:3 * L])
            o = jax.nn.sigmoid(gates[:, 3 * L:4 * L])
            c_new = f * c_prev + i * g
            return o * jnp.tanh(c_new), c_new

        hp_new, cp_new = lstm_cell(g_xp, c_par, Wlp_ref, blp_ref)
        hs_new, cs_new = lstm_cell(g_xs, c_sib, Wls_ref, bls_ref)

        # ---- scatter results back to node rows (padded rows go to the dump row) ----
        for r in range(MAXN):
            nd = pl.ds(nidx_ref[base + r], 1)
            out_ref[nd, :] = out_tile[r:r + 1, :]
            hp[nd, :] = hp_new[r:r + 1, :]
            cp[nd, :] = cp_new[r:r + 1, :]
            hs[nd, :] = hs_new[r:r + 1, :]
            cs[nd, :] = cs_new[r:r + 1, :]

    return kernel


def run_decoder(sched, z_pad, emb_steps, off_steps, packed):
    num_steps = sched['num_steps']
    MAXN = sched['MAXN']
    S_pad = sched['S_pad']
    L = LATENT
    EP = EMB_PAD
    kernel = make_decoder_kernel(MAXN, sched['ROOT_BASE'], sched['B_pad'])

    grid_spec = pltpu.PrefetchScalarGridSpec(
        num_scalar_prefetch=3,
        grid=(num_steps,),
        in_specs=[
            pl.BlockSpec((sched['B_pad'], L), lambda s, *_: (0, 0)),   # z (roots), resident
            pl.BlockSpec((1, MAXN, EP), lambda s, *_: (s, 0, 0)),      # per-step embeddings
            pl.BlockSpec((1, MAXN, 1), lambda s, *_: (s, 0, 0)),       # per-step logit offsets
            pl.BlockSpec((2 * L, L), lambda s, *_: (0, 0)),            # [Up^T ; Us^T]
            pl.BlockSpec((L, HEAD_W), lambda s, *_: (0, 0)),           # fused head W
            pl.BlockSpec((1, HEAD_W), lambda s, *_: (0, 0)),           # fused head b
            pl.BlockSpec((EP + L, 4 * L), lambda s, *_: (0, 0)),       # parent LSTM W (stacked)
            pl.BlockSpec((1, 4 * L), lambda s, *_: (0, 0)),            # parent LSTM b (summed)
            pl.BlockSpec((EP + L, 4 * L), lambda s, *_: (0, 0)),       # sibling LSTM W
            pl.BlockSpec((1, 4 * L), lambda s, *_: (0, 0)),            # sibling LSTM b
        ],
        out_specs=pl.BlockSpec((S_pad, HEAD_W), lambda s, *_: (0, 0)),  # resident accumulator
        scratch_shapes=[
            pltpu.VMEM((S_pad, L), jnp.float32),        # h_p
            pltpu.VMEM((S_pad, L), jnp.float32),        # c_p
            pltpu.VMEM((S_pad, L), jnp.float32),        # h_s
            pltpu.VMEM((S_pad, L), jnp.float32),        # c_s
            pltpu.VMEM((MAXN, 2 * L), jnp.float32),     # [h_par | h_sib]
            pltpu.VMEM((MAXN, EP + L), jnp.float32),    # [emb | h_par]
            pltpu.VMEM((MAXN, EP + L), jnp.float32),    # [emb | h_sib]
            pltpu.VMEM((MAXN, 2 * L), jnp.float32),     # [c_par | c_sib]
        ],
    )
    return pl.pallas_call(
        kernel,
        grid_spec=grid_spec,
        out_shape=jax.ShapeDtypeStruct((S_pad, HEAD_W), jnp.float32),
        compiler_params=pltpu.CompilerParams(dimension_semantics=("arbitrary",)),
    )(sched['pidx'], sched['sidx'], sched['nidx'],
      z_pad, emb_steps, off_steps,
      packed['Wpred'], packed['Whead'], packed['bhead'],
      packed['Wlstm_p'], packed['blstm_p'], packed['Wlstm_s'], packed['blstm_s'])


# ----------------------------------- host-side tree bookkeeping -------------------------------
def build_schedule(batch_size, target):
    """Replays the exact PyTorch (iteration, sibling_index) control flow into a flat schedule."""
    node_order = np.asarray(target['node_order_topdown'])
    edge_order = np.asarray(target['edge_order_topdown'])
    adj_list = np.asarray(target['adjacency_list'])
    features = np.asarray(target['features'], dtype=np.float32)
    total_nodes = int(node_order.shape[0])

    steps = []
    for iteration in range(int(node_order.max()) + 1):
        if iteration == 0:
            parent_indices = np.arange(batch_size)
            current_indices = np.array([], dtype=np.int64)
        else:
            adj_prev = adj_list[edge_order == iteration - 1, :]
            parent_indices = adj_prev[:, 0]
            current_indices = adj_prev[:, 1]
        _, first_sib, counts = np.unique(parent_indices, return_index=True, return_counts=True)
        largest = int(counts.max())
        adj_curr = adj_list[edge_order == iteration, :]
        parent_set = set(adj_curr[:, 0].tolist())
        bounds = list(first_sib) + [len(parent_indices)]

        for sibling_index in range(largest):
            if sibling_index == 0:
                prevsib = None                     # zero previous-sibling state
                if iteration == 0:
                    cur = np.where(node_order == iteration)[0]
                    parent = None                  # parent state is z / zeros
                else:
                    cur = current_indices[first_sib]
                    parent = parent_indices[first_sib]
            else:
                indices = []
                nfs = len(first_sib)
                for i, fsi in enumerate(first_sib):
                    if (i + 1 < nfs and sibling_index + fsi < first_sib[i + 1]) or \
                       (i + 1 == nfs and sibling_index + fsi < len(current_indices)):
                        indices.append(int(fsi) + sibling_index - 1)
                prevsib = current_indices[indices]
                parent = parent_indices[indices]
                cur = current_indices[[ind + 1 for ind in indices]]

            cur = np.asarray(cur, dtype=np.int64)
            is_par = np.array([1.0 if int(idx) in parent_set else 0.0 for idx in cur], np.float32)
            has_sib = np.array([1.0 if j - i - 1 > sibling_index else 0.0
                                for i, j in zip(bounds[:-1], bounds[1:]) if j - i > sibling_index],
                               np.float32)
            assert len(has_sib) == len(cur) == len(is_par)
            labels = features[cur].astype(np.int64).reshape(-1)
            steps.append(dict(cur=cur,
                              parent=None if parent is None else np.asarray(parent, np.int64),
                              prevsib=None if prevsib is None else np.asarray(prevsib, np.int64),
                              labels=labels, is_parent=is_par, has_sibling=has_sib))
    return steps, total_nodes, features


def pack_schedule(steps, total_nodes, batch_size):
    num_steps = len(steps)
    MAXN = _ceil_to(max(len(st['cur']) for st in steps), 8)       # padded group bucket (sublane)
    ROOT_BASE = _ceil_to(total_nodes, 8)                          # z rows live here in h_p
    B_pad = _ceil_to(batch_size, 8)
    ZERO_ROW = ROOT_BASE + B_pad                                  # always-zero row (gathers)
    DUMP_ROW = ZERO_ROW + 1                                       # write target for padded rows
    S_pad = ROOT_BASE + B_pad + 8

    pidx = np.full((num_steps, MAXN), ZERO_ROW, np.int32)
    sidx = np.full((num_steps, MAXN), ZERO_ROW, np.int32)
    nidx = np.full((num_steps, MAXN), DUMP_ROW, np.int32)
    lab = np.zeros((num_steps, MAXN), np.int32)
    ispar = np.zeros((num_steps, MAXN), np.float32)
    hassib = np.zeros((num_steps, MAXN), np.float32)

    for s, st in enumerate(steps):
        n = len(st['cur'])
        nidx[s, :n] = st['cur']
        pidx[s, :n] = (ROOT_BASE + np.arange(n)) if st['parent'] is None else st['parent']
        if st['prevsib'] is not None:
            sidx[s, :n] = st['prevsib']
        lab[s, :n] = st['labels']
        ispar[s, :n] = st['is_parent']
        hassib[s, :n] = st['has_sibling']

    return dict(num_steps=num_steps, MAXN=MAXN, ROOT_BASE=ROOT_BASE, B_pad=B_pad, S_pad=S_pad,
                pidx=jnp.asarray(pidx.reshape(-1)),
                sidx=jnp.asarray(sidx.reshape(-1)),
                nidx=jnp.asarray(nidx.reshape(-1)),
                lab=lab, ispar=ispar, hassib=hassib)


# --------------------------------------- parameters -------------------------------------------
def make_params():
    keys = jax.random.split(jax.random.PRNGKey(0), 19)

    def init(k, shape, scale=0.1):
        return (scale * jax.random.normal(k, shape)).astype(jnp.float32)

    return dict(
        embedding=init(keys[0], (VOCAB, EMB)),
        U_parent_W=init(keys[1], (LATENT, LATENT)),
        U_sibling_W=init(keys[2], (LATENT, LATENT)),
        label_W=init(keys[3], (VOCAB, LATENT)), label_b=init(keys[4], (VOCAB,)),
        depth_W=init(keys[5], (1, LATENT)), depth_b=init(keys[6], (1,)),
        width_W=init(keys[7], (1, LATENT)), width_b=init(keys[8], (1,)),
        offset_parent_W=init(keys[9], (1, 1)), offset_sibling_W=init(keys[10], (1, 1)),
        Wih_p=init(keys[11], (4 * LATENT, EMB)), Whh_p=init(keys[12], (4 * LATENT, LATENT)),
        bih_p=init(keys[13], (4 * LATENT,)), bhh_p=init(keys[14], (4 * LATENT,)),
        Wih_s=init(keys[15], (4 * LATENT, EMB)), Whh_s=init(keys[16], (4 * LATENT, LATENT)),
        bih_s=init(keys[17], (4 * LATENT,)), bhh_s=init(keys[18], (4 * LATENT,)),
    )


def pack_params(pp):
    L = LATENT
    EP = EMB_PAD
    f32 = jnp.float32

    # fused h_pred weight: [h_par | h_sib] @ [Up^T ; Us^T]
    Wpred = jnp.concatenate([pp['U_parent_W'].T, pp['U_sibling_W'].T], axis=0)       # (2L, L)

    # fused heads: label (32 lanes) | depth (1) | width (1) | zero pad → lane-dense 128 output
    Whead = jnp.zeros((L, HEAD_W), f32)
    Whead = Whead.at[:, :VOCAB].set(pp['label_W'].T)
    Whead = Whead.at[:, VOCAB].set(pp['depth_W'][0, :])
    Whead = Whead.at[:, VOCAB + 1].set(pp['width_W'][0, :])
    bhead = jnp.zeros((1, HEAD_W), f32)
    bhead = bhead.at[0, :VOCAB].set(pp['label_b'])
    bhead = bhead.at[0, VOCAB].set(pp['depth_b'][0])
    bhead = bhead.at[0, VOCAB + 1].set(pp['width_b'][0])

    # fused LSTMCell weights: [emb_pad | h] @ [Wih_pad^T ; Whh^T] + (bih + bhh)
    def lstm_pack(Wih, Whh, bih, bhh):
        Wih_pad = jnp.concatenate([Wih, jnp.zeros((4 * L, EP - EMB), f32)], axis=1)  # (4L, EP)
        W = jnp.concatenate([Wih_pad.T, Whh.T], axis=0)                              # (EP+L, 4L)
        b = (bih + bhh).reshape(1, 4 * L)
        return W, b

    Wlstm_p, blstm_p = lstm_pack(pp['Wih_p'], pp['Whh_p'], pp['bih_p'], pp['bhh_p'])
    Wlstm_s, blstm_s = lstm_pack(pp['Wih_s'], pp['Whh_s'], pp['bih_s'], pp['bhh_s'])

    emb_pad = jnp.concatenate([pp['embedding'], jnp.zeros((VOCAB, EP - EMB), f32)], axis=1)

    return dict(Wpred=Wpred, Whead=Whead, bhead=bhead,
                Wlstm_p=Wlstm_p, blstm_p=blstm_p, Wlstm_s=Wlstm_s, blstm_s=blstm_s,
                emb_pad=emb_pad,
                w_offp=pp['offset_parent_W'][0, 0], w_offs=pp['offset_sibling_W'][0, 0])


# ------------------------------------------ forward -------------------------------------------
def forward_train(z, target, pp):
    batch_size = int(z.shape[0])
    steps, total_nodes, features = build_schedule(batch_size, target)
    sched = pack_schedule(steps, total_nodes, batch_size)
    packed = pack_params(pp)

    # teacher-forced per-step inputs, known ahead of time → prepared once, pipelined per step:
    emb_steps = jnp.take(packed['emb_pad'], jnp.asarray(sched['lab']), axis=0)       # (T,MAXN,EP)
    # offset_parent / offset_sibling are bias-free 1x1 linears → scalar multiplies of the flags
    off_steps = (jnp.asarray(sched['ispar']) * packed['w_offp']
                 + jnp.asarray(sched['hassib']) * packed['w_offs'])[..., None]       # (T,MAXN,1)
    z_pad = jnp.zeros((sched['B_pad'], LATENT), jnp.float32).at[:batch_size].set(z)

    slab = run_decoder(sched, z_pad, emb_steps, off_steps, packed)                   # (S_pad,128)

    # teacher-forced targets (pure bookkeeping, mirrors the torch scatters)
    labels_t = np.zeros(total_nodes, np.float32)
    is_parent_t = np.zeros(total_nodes, np.float32)
    has_sib_t = np.zeros(total_nodes, np.float32)
    for st in steps:
        for k, node in enumerate(st['cur']):
            labels_t[node] = features[node, 0]
            is_parent_t[node] = st['is_parent'][k]
            has_sib_t[node] = st['has_sibling'][k]

    return {
        'predicted_labels': slab[:total_nodes, :VOCAB],
        'labels': jnp.asarray(labels_t),
        'predicted_has_siblings': slab[:total_nodes, VOCAB + 1],
        'has_siblings': jnp.asarray(has_sib_t),
        'predicted_is_parent': slab[:total_nodes, VOCAB],
        'is_parent': jnp.asarray(is_parent_t),
    }
    # TODO(synk): decode_eval (free-running recursive sampling with Bernoulli draws and Python
    # `Node` objects) is inherently sequential, data-dependent host logic and is not expressed
    # as a Pallas kernel here.


# ----------------------------------------------- main -----------------------------------------
if __name__ == "__main__":
    pp = make_params()

    # Deterministic small batch of 2 trees (global node ids 0..7):
    #   tree 0: 0 -> {1, 2}, 1 -> {3, 4}     (5 nodes)
    #   tree 1: 5 -> {6, 7}                  (3 nodes)
    target = {
        'tree_sizes': [5, 3],
        'node_order_topdown': np.array([0, 1, 1, 2, 2, 0, 1, 1], dtype=np.int64),
        'adjacency_list': np.array([[0, 1], [0, 2], [1, 3], [1, 4], [5, 6], [5, 7]],
                                   dtype=np.int64),
        'edge_order_topdown': np.array([0, 0, 1, 1, 0, 0], dtype=np.int64),
        'features': np.array([[3.], [7.], [2.], [9.], [1.], [4.], [8.], [6.]],
                             dtype=np.float32),
    }

    z = 0.1 * jax.random.normal(jax.random.fold_in(jax.random.PRNGKey(0), 1),
                                (2, LATENT), dtype=jnp.float32)

    out = forward_train(z, target, pp)
    out = jax.block_until_ready(out)

    # light sanity checks
    assert out['predicted_labels'].shape == (8, VOCAB)
    assert bool(jnp.all(jnp.isfinite(out['predicted_labels'])))
    probs = jnp.exp(out['predicted_labels']).sum(axis=-1)
    assert bool(jnp.all(jnp.abs(probs - 1.0) < 1e-3))          # log-softmax rows normalize
    assert out['predicted_is_parent'].shape == (8,)
    assert bool(jnp.all((out['predicted_is_parent'] > 0.0) & (out['predicted_is_parent'] < 1.0)))
    assert bool(jnp.all((out['predicted_has_siblings'] > 0.0) & (out['predicted_has_siblings'] < 1.0)))

    print("KERNEL_OK")
</pallas_src>

<mosaic_0001>
module attributes {stable_mosaic.version = 11 : i64} {
  func.func @kernel(%arg0: i32, %arg1: memref<40xi32, #tpu.memory_space<smem>>, %arg2: memref<40xi32, #tpu.memory_space<smem>>, %arg3: memref<40xi32, #tpu.memory_space<smem>>, %arg4: memref<8x128xf32, #tpu.memory_space<vmem>>, %arg5: memref<1x8x128xf32, #tpu.memory_space<vmem>>, %arg6: memref<1x8x1xf32, #tpu.memory_space<vmem>>, %arg7: memref<256x128xf32, #tpu.memory_space<vmem>>, %arg8: memref<128x128xf32, #tpu.memory_space<vmem>>, %arg9: memref<1x128xf32, #tpu.memory_space<vmem>>, %arg10: memref<256x512xf32, #tpu.memory_space<vmem>>, %arg11: memref<1x512xf32, #tpu.memory_space<vmem>>, %arg12: memref<256x512xf32, #tpu.memory_space<vmem>>, %arg13: memref<1x512xf32, #tpu.memory_space<vmem>>, %arg14: memref<24x128xf32, #tpu.memory_space<vmem>>, %arg15: memref<24x128xf32, #tpu.memory_space<vmem>>, %arg16: memref<24x128xf32, #tpu.memory_space<vmem>>, %arg17: memref<24x128xf32, #tpu.memory_space<vmem>>, %arg18: memref<24x128xf32, #tpu.memory_space<vmem>>, %arg19: memref<8x256xf32, #tpu.memory_space<vmem>>, %arg20: memref<8x256xf32, #tpu.memory_space<vmem>>, %arg21: memref<8x256xf32, #tpu.memory_space<vmem>>, %arg22: memref<8x256xf32, #tpu.memory_space<vmem>>) attributes {dimension_semantics = [#tpu.dimension_semantics<arbitrary>], iteration_bounds = array<i64: 5>, scalar_prefetch = 3 : i64, scratch_operands = 8 : i64, tpu.core_type = #tpu.core_type<tc>, window_params = [{pipeline_mode = #tpu.pipeline_mode<synchronous>, transform_indices = @transform_0, window_bounds = array<i64: 8, 128>}, {transform_indices = @transform_1, window_bounds = array<i64: 1, 8, 128>}, {transform_indices = @transform_2, window_bounds = array<i64: 1, 8, 1>}, {pipeline_mode = #tpu.pipeline_mode<synchronous>, transform_indices = @transform_3, window_bounds = array<i64: 256, 128>}, {pipeline_mode = #tpu.pipeline_mode<synchronous>, transform_indices = @transform_4, window_bounds = array<i64: 128, 128>}, {pipeline_mode = #tpu.pipeline_mode<synchronous>, transform_indices = @transform_5, window_bounds = array<i64: 1, 128>}, {pipeline_mode = #tpu.pipeline_mode<synchronous>, transform_indices = @transform_6, window_bounds = array<i64: 256, 512>}, {pipeline_mode = #tpu.pipeline_mode<synchronous>, transform_indices = @transform_7, window_bounds = array<i64: 1, 512>}, {pipeline_mode = #tpu.pipeline_mode<synchronous>, transform_indices = @transform_8, window_bounds = array<i64: 256, 512>}, {pipeline_mode = #tpu.pipeline_mode<synchronous>, transform_indices = @transform_9, window_bounds = array<i64: 1, 512>}, {pipeline_mode = #tpu.pipeline_mode<synchronous>, transform_indices = @transform_10, window_bounds = array<i64: 24, 128>}]} {
    %c0_i32 = arith.constant 0 : i32
    %0 = arith.cmpi eq, %arg0, %c0_i32 : i32
    %1 = arith.extui %0 : i1 to i32
    %c0_i32_0 = arith.constant 0 : i32
    %2 = arith.cmpi ne, %1, %c0_i32_0 : i32
    scf.if %2 {
      %cst_225 = arith.constant 0.000000e+00 : f32
      %413 = vector.broadcast %cst_225 : f32 to vector<24x128xf32>
      %c0_226 = arith.constant 0 : index
      %c0_227 = arith.constant 0 : index
      %414 = vector.load %arg15[%c0_226, %c0_227] : memref<24x128xf32, #tpu.memory_space<vmem>>, vector<24x128xf32>
      tpu.vector_store %arg15[%c0_226, %c0_227], %413 {strides = array<i32>} : memref<24x128xf32, #tpu.memory_space<vmem>>, vector<24x128xf32>,
      %cst_228 = arith.constant 0.000000e+00 : f32
      %415 = vector.broadcast %cst_228 : f32 to vector<24x128xf32>
      %c0_229 = arith.constant 0 : index
      %c0_230 = arith.constant 0 : index
      %416 = vector.load %arg16[%c0_229, %c0_230] : memref<24x128xf32, #tpu.memory_space<vmem>>, vector<24x128xf32>
      tpu.vector_store %arg16[%c0_229, %c0_230], %415 {strides = array<i32>} : memref<24x128xf32, #tpu.memory_space<vmem>>, vector<24x128xf32>,
      %cst_231 = arith.constant 0.000000e+00 : f32
      %417 = vector.broadcast %cst_231 : f32 to vector<24x128xf32>
      %c0_232 = arith.constant 0 : index
      %c0_233 = arith.constant 0 : index
      %418 = vector.load %arg17[%c0_232, %c0_233] : memref<24x128xf32, #tpu.memory_space<vmem>>, vector<24x128xf32>
      tpu.vector_store %arg17[%c0_232, %c0_233], %417 {strides = array<i32>} : memref<24x128xf32, #tpu.memory_space<vmem>>, vector<24x128xf32>,
      %cst_234 = arith.constant 0.000000e+00 : f32
      %419 = vector.broadcast %cst_234 : f32 to vector<24x128xf32>
      %c0_235 = arith.constant 0 : index
      %c0_236 = arith.constant 0 : index
      %420 = vector.load %arg18[%c0_235, %c0_236] : memref<24x128xf32, #tpu.memory_space<vmem>>, vector<24x128xf32>
      tpu.vector_store %arg18[%c0_235, %c0_236], %419 {strides = array<i32>} : memref<24x128xf32, #tpu.memory_space<vmem>>, vector<24x128xf32>,
      %cst_237 = arith.constant 0.000000e+00 : f32
      %421 = vector.broadcast %cst_237 : f32 to vector<24x128xf32>
      %c0_238 = arith.constant 0 : index
      %c0_239 = arith.constant 0 : index
      %422 = vector.load %arg14[%c0_238, %c0_239] : memref<24x128xf32, #tpu.memory_space<vmem>>, vector<24x128xf32>
      tpu.vector_store %arg14[%c0_238, %c0_239], %421 {strides = array<i32>} : memref<24x128xf32, #tpu.memory_space<vmem>>, vector<24x128xf32>,
      %c0_240 = arith.constant 0 : index
      %c0_241 = arith.constant 0 : index
      %423 = vector.load %arg4[%c0_240, %c0_241] : memref<8x128xf32, #tpu.memory_space<vmem>>, vector<8x128xf32>
      %c8 = arith.constant 8 : index
      %c0_242 = arith.constant 0 : index
      %424 = vector.load %arg15[%c8, %c0_242] : memref<24x128xf32, #tpu.memory_space<vmem>>, vector<8x128xf32>
      tpu.vector_store %arg15[%c8, %c0_242], %423 {strides = array<i32>} : memref<24x128xf32, #tpu.memory_space<vmem>>, vector<8x128xf32>,
    } else {
    }
    %c0 = arith.constant 0 : index
    %c0_1 = arith.constant 0 : index
    %c0_2 = arith.constant 0 : index
    %3 = vector.load %arg5[%c0, %c0_1, %c0_2] : memref<1x8x128xf32, #tpu.memory_space<vmem>>, vector<1x8x128xf32>
    %4 = vector.shape_cast %3 : vector<1x8x128xf32> to vector<8x128xf32>
    %c0_3 = arith.constant 0 : index
    %c0_4 = arith.constant 0 : index
    %c0_5 = arith.constant 0 : index
    %5 = vector.load %arg6[%c0_3, %c0_4, %c0_5] : memref<1x8x1xf32, #tpu.memory_space<vmem>>, vector<1x8x1xf32>
    %6 = vector.shape_cast %5 : vector<1x8x1xf32> to vector<8x1xf32>
    %c0_6 = arith.constant 0 : index
    %c0_7 = arith.constant 0 : index
    %7 = vector.load %arg20[%c0_6, %c0_7] : memref<8x256xf32, #tpu.memory_space<vmem>>, vector<8x128xf32>
    tpu.vector_store %arg20[%c0_6, %c0_7], %4 {strides = array<i32>} : memref<8x256xf32, #tpu.memory_space<vmem>>, vector<8x128xf32>,
    %c0_8 = arith.constant 0 : index
    %c0_9 = arith.constant 0 : index
    %8 = vector.load %arg21[%c0_8, %c0_9] : memref<8x256xf32, #tpu.memory_space<vmem>>, vector<8x128xf32>
    tpu.vector_store %arg21[%c0_8, %c0_9], %4 {strides = array<i32>} : memref<8x256xf32, #tpu.memory_space<vmem>>, vector<8x128xf32>,
    %c8_i32 = arith.constant 8 : i32
    %9 = arith.muli %arg0, %c8_i32 : i32
    %c0_i32_10 = arith.constant 0 : i32
    %10 = arith.addi %9, %c0_i32_10 : i32
    %11 = arith.index_cast %10 : i32 to index
    %12 = memref.load %arg1[%11] : memref<40xi32, #tpu.memory_space<smem>>
    %c0_i32_11 = arith.constant 0 : i32
    %13 = arith.addi %9, %c0_i32_11 : i32
    %14 = arith.index_cast %13 : i32 to index
    %15 = memref.load %arg2[%14] : memref<40xi32, #tpu.memory_space<smem>>
    %16 = arith.index_cast %12 : i32 to index
    %c0_12 = arith.constant 0 : index
    %17 = vector.load %arg15[%16, %c0_12] : memref<24x128xf32, #tpu.memory_space<vmem>>, vector<1x128xf32>
    %18 = arith.index_cast %15 : i32 to index
    %c0_13 = arith.constant 0 : index
    %19 = vector.load %arg17[%18, %c0_13] : memref<24x128xf32, #tpu.memory_space<vmem>>, vector<1x128xf32>
    %c0_14 = arith.constant 0 : index
    %c0_15 = arith.constant 0 : index
    %20 = vector.load %arg19[%c0_14, %c0_15] : memref<8x256xf32, #tpu.memory_space<vmem>>, vector<1x128xf32>
    tpu.vector_store %arg19[%c0_14, %c0_15], %17 {strides = array<i32>} : memref<8x256xf32, #tpu.memory_space<vmem>>, vector<1x128xf32>,
    %c0_16 = arith.constant 0 : index
    %c128 = arith.constant 128 : index
    %21 = vector.load %arg19[%c0_16, %c128] : memref<8x256xf32, #tpu.memory_space<vmem>>, vector<1x128xf32>
    tpu.vector_store %arg19[%c0_16, %c128], %19 {strides = array<i32>} : memref<8x256xf32, #tpu.memory_space<vmem>>, vector<1x128xf32>,
    %c0_17 = arith.constant 0 : index
    %c128_18 = arith.constant 128 : index
    %22 = vector.load %arg20[%c0_17, %c128_18] : memref<8x256xf32, #tpu.memory_space<vmem>>, vector<1x128xf32>
    tpu.vector_store %arg20[%c0_17, %c128_18], %17 {strides = array<i32>} : memref<8x256xf32, #tpu.memory_space<vmem>>, vector<1x128xf32>,
    %c0_19 = arith.constant 0 : index
    %c128_20 = arith.constant 128 : index
    %23 = vector.load %arg21[%c0_19, %c128_20] : memref<8x256xf32, #tpu.memory_space<vmem>>, vector<1x128xf32>
    tpu.vector_store %arg21[%c0_19, %c128_20], %19 {strides = array<i32>} : memref<8x256xf32, #tpu.memory_space<vmem>>, vector<1x128xf32>,
    %24 = arith.index_cast %12 : i32 to index
    %c0_21 = arith.constant 0 : index
    %25 = vector.load %arg16[%24, %c0_21] : memref<24x128xf32, #tpu.memory_space<vmem>>, vector<1x128xf32>
    %c0_22 = arith.constant 0 : index
    %c0_23 = arith.constant 0 : index
    %26 = vector.load %arg22[%c0_22, %c0_23] : memref<8x256xf32, #tpu.memory_space<vmem>>, vector<1x128xf32>
    tpu.vector_store %arg22[%c0_22, %c0_23], %25 {strides = array<i32>} : memref<8x256xf32, #tpu.memory_space<vmem>>, vector<1x128xf32>,
    %27 = arith.index_cast %15 : i32 to index
    %c0_24 = arith.constant 0 : index
    %28 = vector.load %arg18[%27, %c0_24] : memref<24x128xf32, #tpu.memory_space<vmem>>, vector<1x128xf32>
    %c0_25 = arith.constant 0 : index
    %c128_26 = arith.constant 128 : index
    %29 = vector.load %arg22[%c0_25, %c128_26] : memref<8x256xf32, #tpu.memory_space<vmem>>, vector<1x128xf32>
    tpu.vector_store %arg22[%c0_25, %c128_26], %28 {strides = array<i32>} : memref<8x256xf32, #tpu.memory_space<vmem>>, vector<1x128xf32>,
    %c1_i32 = arith.constant 1 : i32
    %30 = arith.addi %9, %c1_i32 : i32
    %31 = arith.index_cast %30 : i32 to index
    %32 = memref.load %arg1[%31] : memref<40xi32, #tpu.memory_space<smem>>
    %c1_i32_27 = arith.constant 1 : i32
    %33 = arith.addi %9, %c1_i32_27 : i32
    %34 = arith.index_cast %33 : i32 to index
    %35 = memref.load %arg2[%34] : memref<40xi32, #tpu.memory_space<smem>>
    %36 = arith.index_cast %32 : i32 to index
    %c0_28 = arith.constant 0 : index
    %37 = vector.load %arg15[%36, %c0_28] : memref<24x128xf32, #tpu.memory_space<vmem>>, vector<1x128xf32>
    %38 = arith.index_cast %35 : i32 to index
    %c0_29 = arith.constant 0 : index
    %39 = vector.load %arg17[%38, %c0_29] : memref<24x128xf32, #tpu.memory_space<vmem>>, vector<1x128xf32>
    %c1 = arith.constant 1 : index
    %c0_30 = arith.constant 0 : index
    %40 = vector.load %arg19[%c1, %c0_30] : memref<8x256xf32, #tpu.memory_space<vmem>>, vector<1x128xf32>
    tpu.vector_store %arg19[%c1, %c0_30], %37 {strides = array<i32>} : memref<8x256xf32, #tpu.memory_space<vmem>>, vector<1x128xf32>,
    %c1_31 = arith.constant 1 : index
    %c128_32 = arith.constant 128 : index
    %41 = vector.load %arg19[%c1_31, %c128_32] : memref<8x256xf32, #tpu.memory_space<vmem>>, vector<1x128xf32>
    tpu.vector_store %arg19[%c1_31, %c128_32], %39 {strides = array<i32>} : memref<8x256xf32, #tpu.memory_space<vmem>>, vector<1x128xf32>,
    %c1_33 = arith.constant 1 : index
    %c128_34 = arith.constant 128 : index
    %42 = vector.load %arg20[%c1_33, %c128_34] : memref<8x256xf32, #tpu.memory_space<vmem>>, vector<1x128xf32>
    tpu.vector_store %arg20[%c1_33, %c128_34], %37 {strides = array<i32>} : memref<8x256xf32, #tpu.memory_space<vmem>>, vector<1x128xf32>,
    %c1_35 = arith.constant 1 : index
    %c128_36 = arith.constant 128 : index
    %43 = vector.load %arg21[%c1_35, %c128_36] : memref<8x256xf32, #tpu.memory_space<vmem>>, vector<1x128xf32>
    tpu.vector_store %arg21[%c1_35, %c128_36], %39 {strides = array<i32>} : memref<8x256xf32, #tpu.memory_space<vmem>>, vector<1x128xf32>,
    %44 = arith.index_cast %32 : i32 to index
    %c0_37 = arith.constant 0 : index
    %45 = vector.load %arg16[%44, %c0_37] : memref<24x128xf32, #tpu.memory_space<vmem>>, vector<1x128xf32>
    %c1_38 = arith.constant 1 : index
    %c0_39 = arith.constant 0 : index
    %46 = vector.load %arg22[%c1_38, %c0_39] : memref<8x256xf32, #tpu.memory_space<vmem>>, vector<1x128xf32>
    tpu.vector_store %arg22[%c1_38, %c0_39], %45 {strides = array<i32>} : memref<8x256xf32, #tpu.memory_space<vmem>>, vector<1x128xf32>,
    %47 = arith.index_cast %35 : i32 to index
    %c0_40 = arith.constant 0 : index
    %48 = vector.load %arg18[%47, %c0_40] : memref<24x128xf32, #tpu.memory_space<vmem>>, vector<1x128xf32>
    %c1_41 = arith.constant 1 : index
    %c128_42 = arith.constant 128 : index
    %49 = vector.load %arg22[%c1_41, %c128_42] : memref<8x256xf32, #tpu.memory_space<vmem>>, vector<1x128xf32>
    tpu.vector_store %arg22[%c1_41, %c128_42], %48 {strides = array<i32>} : memref<8x256xf32, #tpu.memory_space<vmem>>, vector<1x128xf32>,
    %c2_i32 = arith.constant 2 : i32
    %50 = arith.addi %9, %c2_i32 : i32
    %51 = arith.index_cast %50 : i32 to index
    %52 = memref.load %arg1[%51] : memref<40xi32, #tpu.memory_space<smem>>
    %c2_i32_43 = arith.constant 2 : i32
    %53 = arith.addi %9, %c2_i32_43 : i32
    %54 = arith.index_cast %53 : i32 to index
    %55 = memref.load %arg2[%54] : memref<40xi32, #tpu.memory_space<smem>>
    %56 = arith.index_cast %52 : i32 to index
    %c0_44 = arith.constant 0 : index
    %57 = vector.load %arg15[%56, %c0_44] : memref<24x128xf32, #tpu.memory_space<vmem>>, vector<1x128xf32>
    %58 = arith.index_cast %55 : i32 to index
    %c0_45 = arith.constant 0 : index
    %59 = vector.load %arg17[%58, %c0_45] : memref<24x128xf32, #tpu.memory_space<vmem>>, vector<1x128xf32>
    %c2 = arith.constant 2 : index
    %c0_46 = arith.constant 0 : index
    %60 = vector.load %arg19[%c2, %c0_46] : memref<8x256xf32, #tpu.memory_space<vmem>>, vector<1x128xf32>
    tpu.vector_store %arg19[%c2, %c0_46], %57 {strides = array<i32>} : memref<8x256xf32, #tpu.memory_space<vmem>>, vector<1x128xf32>,
    %c2_47 = arith.constant 2 : index
    %c128_48 = arith.constant 128 : index
    %61 = vector.load %arg19[%c2_47, %c128_48] : memref<8x256xf32, #tpu.memory_space<vmem>>, vector<1x128xf32>
    tpu.vector_store %arg19[%c2_47, %c128_48], %59 {strides = array<i32>} : memref<8x256xf32, #tpu.memory_space<vmem>>, vector<1x128xf32>,
    %c2_49 = arith.constant 2 : index
    %c128_50 = arith.constant 128 : index
    %62 = vector.load %arg20[%c2_49, %c128_50] : memref<8x256xf32, #tpu.memory_space<vmem>>, vector<1x128xf32>
    tpu.vector_store %arg20[%c2_49, %c128_50], %57 {strides = array<i32>} : memref<8x256xf32, #tpu.memory_space<vmem>>, vector<1x128xf32>,
    %c2_51 = arith.constant 2 : index
    %c128_52 = arith.constant 128 : index
    %63 = vector.load %arg21[%c2_51, %c128_52] : memref<8x256xf32, #tpu.memory_space<vmem>>, vector<1x128xf32>
    tpu.vector_store %arg21[%c2_51, %c128_52], %59 {strides = array<i32>} : memref<8x256xf32, #tpu.memory_space<vmem>>, vector<1x128xf32>,
    %64 = arith.index_cast %52 : i32 to index
    %c0_53 = arith.constant 0 : index
    %65 = vector.load %arg16[%64, %c0_53] : memref<24x128xf32, #tpu.memory_space<vmem>>, vector<1x128xf32>
    %c2_54 = arith.constant 2 : index
    %c0_55 = arith.constant 0 : index
    %66 = vector.load %arg22[%c2_54, %c0_55] : memref<8x256xf32, #tpu.memory_space<vmem>>, vector<1x128xf32>
    tpu.vector_store %arg22[%c2_54, %c0_55], %65 {strides = array<i32>} : memref<8x256xf32, #tpu.memory_space<vmem>>, vector<1x128xf32>,
    %67 = arith.index_cast %55 : i32 to index
    %c0_56 = arith.constant 0 : index
    %68 = vector.load %arg18[%67, %c0_56] : memref<24x128xf32, #tpu.memory_space<vmem>>, vector<1x128xf32>
    %c2_57 = arith.constant 2 : index
    %c128_58 = arith.constant 128 : index
    %69 = vector.load %arg22[%c2_57, %c128_58] : memref<8x256xf32, #tpu.memory_space<vmem>>, vector<1x128xf32>
    tpu.vector_store %arg22[%c2_57, %c128_58], %68 {strides = array<i32>} : memref<8x256xf32, #tpu.memory_space<vmem>>, vector<1x128xf32>,
    %c3_i32 = arith.constant 3 : i32
    %70 = arith.addi %9, %c3_i32 : i32
    %71 = arith.index_cast %70 : i32 to index
    %72 = memref.load %arg1[%71] : memref<40xi32, #tpu.memory_space<smem>>
    %c3_i32_59 = arith.constant 3 : i32
    %73 = arith.addi %9, %c3_i32_59 : i32
    %74 = arith.index_cast %73 : i32 to index
    %75 = memref.load %arg2[%74] : memref<40xi32, #tpu.memory_space<smem>>
    %76 = arith.index_cast %72 : i32 to index
    %c0_60 = arith.constant 0 : index
    %77 = vector.load %arg15[%76, %c0_60] : memref<24x128xf32, #tpu.memory_space<vmem>>, vector<1x128xf32>
    %78 = arith.index_cast %75 : i32 to index
    %c0_61 = arith.constant 0 : index
    %79 = vector.load %arg17[%78, %c0_61] : memref<24x128xf32, #tpu.memory_space<vmem>>, vector<1x128xf32>
    %c3 = arith.constant 3 : index
    %c0_62 = arith.constant 0 : index
    %80 = vector.load %arg19[%c3, %c0_62] : memref<8x256xf32, #tpu.memory_space<vmem>>, vector<1x128xf32>
    tpu.vector_store %arg19[%c3, %c0_62], %77 {strides = array<i32>} : memref<8x256xf32, #tpu.memory_space<vmem>>, vector<1x128xf32>,
    %c3_63 = arith.constant 3 : index
    %c128_64 = arith.constant 128 : index
    %81 = vector.load %arg19[%c3_63, %c128_64] : memref<8x256xf32, #tpu.memory_space<vmem>>, vector<1x128xf32>
    tpu.vector_store %arg19[%c3_63, %c128_64], %79 {strides = array<i32>} : memref<8x256xf32, #tpu.memory_space<vmem>>, vector<1x128xf32>,
    %c3_65 = arith.constant 3 : index
    %c128_66 = arith.constant 128 : index
    %82 = vector.load %arg20[%c3_65, %c128_66] : memref<8x256xf32, #tpu.memory_space<vmem>>, vector<1x128xf32>
    tpu.vector_store %arg20[%c3_65, %c128_66], %77 {strides = array<i32>} : memref<8x256xf32, #tpu.memory_space<vmem>>, vector<1x128xf32>,
    %c3_67 = arith.constant 3 : index
    %c128_68 = arith.constant 128 : index
    %83 = vector.load %arg21[%c3_67, %c128_68] : memref<8x256xf32, #tpu.memory_space<vmem>>, vector<1x128xf32>
    tpu.vector_store %arg21[%c3_67, %c128_68], %79 {strides = array<i32>} : memref<8x256xf32, #tpu.memory_space<vmem>>, vector<1x128xf32>,
    %84 = arith.index_cast %72 : i32 to index
    %c0_69 = arith.constant 0 : index
    %85 = vector.load %arg16[%84, %c0_69] : memref<24x128xf32, #tpu.memory_space<vmem>>, vector<1x128xf32>
    %c3_70 = arith.constant 3 : index
    %c0_71 = arith.constant 0 : index
    %86 = vector.load %arg22[%c3_70, %c0_71] : memref<8x256xf32, #tpu.memory_space<vmem>>, vector<1x128xf32>
    tpu.vector_store %arg22[%c3_70, %c0_71], %85 {strides = array<i32>} : memref<8x256xf32, #tpu.memory_space<vmem>>, vector<1x128xf32>,
    %87 = arith.index_cast %75 : i32 to index
    %c0_72 = arith.constant 0 : index
    %88 = vector.load %arg18[%87, %c0_72] : memref<24x128xf32, #tpu.memory_space<vmem>>, vector<1x128xf32>
    %c3_73 = arith.constant 3 : index
    %c128_74 = arith.constant 128 : index
    %89 = vector.load %arg22[%c3_73, %c128_74] : memref<8x256xf32, #tpu.memory_space<vmem>>, vector<1x128xf32>
    tpu.vector_store %arg22[%c3_73, %c128_74], %88 {strides = array<i32>} : memref<8x256xf32, #tpu.memory_space<vmem>>, vector<1x128xf32>,
    %c4_i32 = arith.constant 4 : i32
    %90 = arith.addi %9, %c4_i32 : i32
    %91 = arith.index_cast %90 : i32 to index
    %92 = memref.load %arg1[%91] : memref<40xi32, #tpu.memory_space<smem>>
    %c4_i32_75 = arith.constant 4 : i32
    %93 = arith.addi %9, %c4_i32_75 : i32
    %94 = arith.index_cast %93 : i32 to index
    %95 = memref.load %arg2[%94] : memref<40xi32, #tpu.memory_space<smem>>
    %96 = arith.index_cast %92 : i32 to index
    %c0_76 = arith.constant 0 : index
    %97 = vector.load %arg15[%96, %c0_76] : memref<24x128xf32, #tpu.memory_space<vmem>>, vector<1x128xf32>
    %98 = arith.index_cast %95 : i32 to index
    %c0_77 = arith.constant 0 : index
    %99 = vector.load %arg17[%98, %c0_77] : memref<24x128xf32, #tpu.memory_space<vmem>>, vector<1x128xf32>
    %c4 = arith.constant 4 : index
    %c0_78 = arith.constant 0 : index
    %100 = vector.load %arg19[%c4, %c0_78] : memref<8x256xf32, #tpu.memory_space<vmem>>, vector<1x128xf32>
    tpu.vector_store %arg19[%c4, %c0_78], %97 {strides = array<i32>} : memref<8x256xf32, #tpu.memory_space<vmem>>, vector<1x128xf32>,
    %c4_79 = arith.constant 4 : index
    %c128_80 = arith.constant 128 : index
    %101 = vector.load %arg19[%c4_79, %c128_80] : memref<8x256xf32, #tpu.memory_space<vmem>>, vector<1x128xf32>
    tpu.vector_store %arg19[%c4_79, %c128_80], %99 {strides = array<i32>} : memref<8x256xf32, #tpu.memory_space<vmem>>, vector<1x128xf32>,
    %c4_81 = arith.constant 4 : index
    %c128_82 = arith.constant 128 : index
    %102 = vector.load %arg20[%c4_81, %c128_82] : memref<8x256xf32, #tpu.memory_space<vmem>>, vector<1x128xf32>
    tpu.vector_store %arg20[%c4_81, %c128_82], %97 {strides = array<i32>} : memref<8x256xf32, #tpu.memory_space<vmem>>, vector<1x128xf32>,
    %c4_83 = arith.constant 4 : index
    %c128_84 = arith.constant 128 : index
    %103 = vector.load %arg21[%c4_83, %c128_84] : memref<8x256xf32, #tpu.memory_space<vmem>>, vector<1x128xf32>
    tpu.vector_store %arg21[%c4_83, %c128_84], %99 {strides = array<i32>} : memref<8x256xf32, #tpu.memory_space<vmem>>, vector<1x128xf32>,
    %104 = arith.index_cast %92 : i32 to index
    %c0_85 = arith.constant 0 : index
    %105 = vector.load %arg16[%104, %c0_85] : memref<24x128xf32, #tpu.memory_space<vmem>>, vector<1x128xf32>
    %c4_86 = arith.constant 4 : index
    %c0_87 = arith.constant 0 : index
    %106 = vector.load %arg22[%c4_86, %c0_87] : memref<8x256xf32, #tpu.memory_space<vmem>>, vector<1x128xf32>
    tpu.vector_store %arg22[%c4_86, %c0_87], %105 {strides = array<i32>} : memref<8x256xf32, #tpu.memory_space<vmem>>, vector<1x128xf32>,
    %107 = arith.index_cast %95 : i32 to index
    %c0_88 = arith.constant 0 : index
    %108 = vector.load %arg18[%107, %c0_88] : memref<24x128xf32, #tpu.memory_space<vmem>>, vector<1x128xf32>
    %c4_89 = arith.constant 4 : index
    %c128_90 = arith.constant 128 : index
    %109 = vector.load %arg22[%c4_89, %c128_90] : memref<8x256xf32, #tpu.memory_space<vmem>>, vector<1x128xf32>
    tpu.vector_store %arg22[%c4_89, %c128_90], %108 {strides = array<i32>} : memref<8x256xf32, #tpu.memory_space<vmem>>, vector<1x128xf32>,
    %c5_i32 = arith.constant 5 : i32
    %110 = arith.addi %9, %c5_i32 : i32
    %111 = arith.index_cast %110 : i32 to index
    %112 = memref.load %arg1[%111] : memref<40xi32, #tpu.memory_space<smem>>
    %c5_i32_91 = arith.constant 5 : i32
    %113 = arith.addi %9, %c5_i32_91 : i32
    %114 = arith.index_cast %113 : i32 to index
    %115 = memref.load %arg2[%114] : memref<40xi32, #tpu.memory_space<smem>>
    %116 = arith.index_cast %112 : i32 to index
    %c0_92 = arith.constant 0 : index
    %117 = vector.load %arg15[%116, %c0_92] : memref<24x128xf32, #tpu.memory_space<vmem>>, vector<1x128xf32>
    %118 = arith.index_cast %115 : i32 to index
    %c0_93 = arith.constant 0 : index
    %119 = vector.load %arg17[%118, %c0_93] : memref<24x128xf32, #tpu.memory_space<vmem>>, vector<1x128xf32>
    %c5 = arith.constant 5 : index
    %c0_94 = arith.constant 0 : index
    %120 = vector.load %arg19[%c5, %c0_94] : memref<8x256xf32, #tpu.memory_space<vmem>>, vector<1x128xf32>
    tpu.vector_store %arg19[%c5, %c0_94], %117 {strides = array<i32>} : memref<8x256xf32, #tpu.memory_space<vmem>>, vector<1x128xf32>,
    %c5_95 = arith.constant 5 : index
    %c128_96 = arith.constant 128 : index
    %121 = vector.load %arg19[%c5_95, %c128_96] : memref<8x256xf32, #tpu.memory_space<vmem>>, vector<1x128xf32>
    tpu.vector_store %arg19[%c5_95, %c128_96], %119 {strides = array<i32>} : memref<8x256xf32, #tpu.memory_space<vmem>>, vector<1x128xf32>,
    %c5_97 = arith.constant 5 : index
    %c128_98 = arith.constant 128 : index
    %122 = vector.load %arg20[%c5_97, %c128_98] : memref<8x256xf32, #tpu.memory_space<vmem>>, vector<1x128xf32>
    tpu.vector_store %arg20[%c5_97, %c128_98], %117 {strides = array<i32>} : memref<8x256xf32, #tpu.memory_space<vmem>>, vector<1x128xf32>,
    %c5_99 = arith.constant 5 : index
    %c128_100 = arith.constant 128 : index
    %123 = vector.load %arg21[%c5_99, %c128_100] : memref<8x256xf32, #tpu.memory_space<vmem>>, vector<1x128xf32>
    tpu.vector_store %arg21[%c5_99, %c128_100], %119 {strides = array<i32>} : memref<8x256xf32, #tpu.memory_space<vmem>>, vector<1x128xf32>,
    %124 = arith.index_cast %112 : i32 to index
    %c0_101 = arith.constant 0 : index
    %125 = vector.load %arg16[%124, %c0_101] : memref<24x128xf32, #tpu.memory_space<vmem>>, vector<1x128xf32>
    %c5_102 = arith.constant 5 : index
    %c0_103 = arith.constant 0 : index
    %126 = vector.load %arg22[%c5_102, %c0_103] : memref<8x256xf32, #tpu.memory_space<vmem>>, vector<1x128xf32>
    tpu.vector_store %arg22[%c5_102, %c0_103], %125 {strides = array<i32>} : memref<8x256xf32, #tpu.memory_space<vmem>>, vector<1x128xf32>,
    %127 = arith.index_cast %115 : i32 to index
    %c0_104 = arith.constant 0 : index
    %128 = vector.load %arg18[%127, %c0_104] : memref<24x128xf32, #tpu.memory_space<vmem>>, vector<1x128xf32>
    %c5_105 = arith.constant 5 : index
    %c128_106 = arith.constant 128 : index
    %129 = vector.load %arg22[%c5_105, %c128_106] : memref<8x256xf32, #tpu.memory_space<vmem>>, vector<1x128xf32>
    tpu.vector_store %arg22[%c5_105, %c128_106], %128 {strides = array<i32>} : memref<8x256xf32, #tpu.memory_space<vmem>>, vector<1x128xf32>,
    %c6_i32 = arith.constant 6 : i32
    %130 = arith.addi %9, %c6_i32 : i32
    %131 = arith.index_cast %130 : i32 to index
    %132 = memref.load %arg1[%131] : memref<40xi32, #tpu.memory_space<smem>>
    %c6_i32_107 = arith.constant 6 : i32
    %133 = arith.addi %9, %c6_i32_107 : i32
    %134 = arith.index_cast %133 : i32 to index
    %135 = memref.load %arg2[%134] : memref<40xi32, #tpu.memory_space<smem>>
    %136 = arith.index_cast %132 : i32 to index
    %c0_108 = arith.constant 0 : index
    %137 = vector.load %arg15[%136, %c0_108] : memref<24x128xf32, #tpu.memory_space<vmem>>, vector<1x128xf32>
    %138 = arith.index_cast %135 : i32 to index
    %c0_109 = arith.constant 0 : index
    %139 = vector.load %arg17[%138, %c0_109] : memref<24x128xf32, #tpu.memory_space<vmem>>, vector<1x128xf32>
    %c6 = arith.constant 6 : index
    %c0_110 = arith.constant 0 : index
    %140 = vector.load %arg19[%c6, %c0_110] : memref<8x256xf32, #tpu.memory_space<vmem>>, vector<1x128xf32>
    tpu.vector_store %arg19[%c6, %c0_110], %137 {strides = array<i32>} : memref<8x256xf32, #tpu.memory_space<vmem>>, vector<1x128xf32>,
    %c6_111 = arith.constant 6 : index
    %c128_112 = arith.constant 128 : index
    %141 = vector.load %arg19[%c6_111, %c128_112] : memref<8x256xf32, #tpu.memory_space<vmem>>, vector<1x128xf32>
    tpu.vector_store %arg19[%c6_111, %c128_112], %139 {strides = array<i32>} : memref<8x256xf32, #tpu.memory_space<vmem>>, vector<1x128xf32>,
    %c6_113 = arith.constant 6 : index
    %c128_114 = arith.constant 128 : index
    %142 = vector.load %arg20[%c6_113, %c128_114] : memref<8x256xf32, #tpu.memory_space<vmem>>, vector<1x128xf32>
    tpu.vector_store %arg20[%c6_113, %c128_114], %137 {strides = array<i32>} : memref<8x256xf32, #tpu.memory_space<vmem>>, vector<1x128xf32>,
    %c6_115 = arith.constant 6 : index
    %c128_116 = arith.constant 128 : index
    %143 = vector.load %arg21[%c6_115, %c128_116] : memref<8x256xf32, #tpu.memory_space<vmem>>, vector<1x128xf32>
    tpu.vector_store %arg21[%c6_115, %c128_116], %139 {strides = array<i32>} : memref<8x256xf32, #tpu.memory_space<vmem>>, vector<1x128xf32>,
    %144 = arith.index_cast %132 : i32 to index
    %c0_117 = arith.constant 0 : index
    %145 = vector.load %arg16[%144, %c0_117] : memref<24x128xf32, #tpu.memory_space<vmem>>, vector<1x128xf32>
    %c6_118 = arith.constant 6 : index
    %c0_119 = arith.constant 0 : index
    %146 = vector.load %arg22[%c6_118, %c0_119] : memref<8x256xf32, #tpu.memory_space<vmem>>, vector<1x128xf32>
    tpu.vector_store %arg22[%c6_118, %c0_119], %145 {strides = array<i32>} : memref<8x256xf32, #tpu.memory_space<vmem>>, vector<1x128xf32>,
    %147 = arith.index_cast %135 : i32 to index
    %c0_120 = arith.constant 0 : index
    %148 = vector.load %arg18[%147, %c0_120] : memref<24x128xf32, #tpu.memory_space<vmem>>, vector<1x128xf32>
    %c6_121 = arith.constant 6 : index
    %c128_122 = arith.constant 128 : index
    %149 = vector.load %arg22[%c6_121, %c128_122] : memref<8x256xf32, #tpu.memory_space<vmem>>, vector<1x128xf32>
    tpu.vector_store %arg22[%c6_121, %c128_122], %148 {strides = array<i32>} : memref<8x256xf32, #tpu.memory_space<vmem>>, vector<1x128xf32>,
    %c7_i32 = arith.constant 7 : i32
    %150 = arith.addi %9, %c7_i32 : i32
    %151 = arith.index_cast %150 : i32 to index
    %152 = memref.load %arg1[%151] : memref<40xi32, #tpu.memory_space<smem>>
    %c7_i32_123 = arith.constant 7 : i32
    %153 = arith.addi %9, %c7_i32_123 : i32
    %154 = arith.index_cast %153 : i32 to index
    %155 = memref.load %arg2[%154] : memref<40xi32, #tpu.memory_space<smem>>
    %156 = arith.index_cast %152 : i32 to index
    %c0_124 = arith.constant 0 : index
    %157 = vector.load %arg15[%156, %c0_124] : memref<24x128xf32, #tpu.memory_space<vmem>>, vector<1x128xf32>
    %158 = arith.index_cast %155 : i32 to index
    %c0_125 = arith.constant 0 : index
    %159 = vector.load %arg17[%158, %c0_125] : memref<24x128xf32, #tpu.memory_space<vmem>>, vector<1x128xf32>
    %c7 = arith.constant 7 : index
    %c0_126 = arith.constant 0 : index
    %160 = vector.load %arg19[%c7, %c0_126] : memref<8x256xf32, #tpu.memory_space<vmem>>, vector<1x128xf32>
    tpu.vector_store %arg19[%c7, %c0_126], %157 {strides = array<i32>} : memref<8x256xf32, #tpu.memory_space<vmem>>, vector<1x128xf32>,
    %c7_127 = arith.constant 7 : index
    %c128_128 = arith.constant 128 : index
    %161 = vector.load %arg19[%c7_127, %c128_128] : memref<8x256xf32, #tpu.memory_space<vmem>>, vector<1x128xf32>
    tpu.vector_store %arg19[%c7_127, %c128_128], %159 {strides = array<i32>} : memref<8x256xf32, #tpu.memory_space<vmem>>, vector<1x128xf32>,
    %c7_129 = arith.constant 7 : index
    %c128_130 = arith.constant 128 : index
    %162 = vector.load %arg20[%c7_129, %c128_130] : memref<8x256xf32, #tpu.memory_space<vmem>>, vector<1x128xf32>
    tpu.vector_store %arg20[%c7_129, %c128_130], %157 {strides = array<i32>} : memref<8x256xf32, #tpu.memory_space<vmem>>, vector<1x128xf32>,
    %c7_131 = arith.constant 7 : index
    %c128_132 = arith.constant 128 : index
    %163 = vector.load %arg21[%c7_131, %c128_132] : memref<8x256xf32, #tpu.memory_space<vmem>>, vector<1x128xf32>
    tpu.vector_store %arg21[%c7_131, %c128_132], %159 {strides = array<i32>} : memref<8x256xf32, #tpu.memory_space<vmem>>, vector<1x128xf32>,
    %164 = arith.index_cast %152 : i32 to index
    %c0_133 = arith.constant 0 : index
    %165 = vector.load %arg16[%164, %c0_133] : memref<24x128xf32, #tpu.memory_space<vmem>>, vector<1x128xf32>
    %c7_134 = arith.constant 7 : index
    %c0_135 = arith.constant 0 : index
    %166 = vector.load %arg22[%c7_134, %c0_135] : memref<8x256xf32, #tpu.memory_space<vmem>>, vector<1x128xf32>
    tpu.vector_store %arg22[%c7_134, %c0_135], %165 {strides = array<i32>} : memref<8x256xf32, #tpu.memory_space<vmem>>, vector<1x128xf32>,
    %167 = arith.index_cast %155 : i32 to index
    %c0_136 = arith.constant 0 : index
    %168 = vector.load %arg18[%167, %c0_136] : memref<24x128xf32, #tpu.memory_space<vmem>>, vector<1x128xf32>
    %c7_137 = arith.constant 7 : index
    %c128_138 = arith.constant 128 : index
    %169 = vector.load %arg22[%c7_137, %c128_138] : memref<8x256xf32, #tpu.memory_space<vmem>>, vector<1x128xf32>
    tpu.vector_store %arg22[%c7_137, %c128_138], %168 {strides = array<i32>} : memref<8x256xf32, #tpu.memory_space<vmem>>, vector<1x128xf32>,
    %c0_139 = arith.constant 0 : index
    %c0_140 = arith.constant 0 : index
    %170 = vector.load %arg19[%c0_139, %c0_140] : memref<8x256xf32, #tpu.memory_space<vmem>>, vector<8x256xf32>
    %c0_141 = arith.constant 0 : index
    %c0_142 = arith.constant 0 : index
    %171 = vector.load %arg7[%c0_141, %c0_142] : memref<256x128xf32, #tpu.memory_space<vmem>>, vector<256x128xf32>
    %cst = arith.constant dense<0.000000e+00> : vector<8x128xf32>
    %172 = tpu.matmul %170, %171, %cst {dimension_numbers = #tpu.dot_dimension_numbers<[1], [0], [0], [1], [0, 0, 1, 1], [], []>} : vector<8x256xf32>, vector<256x128xf32>, vector<8x128xf32> -> vector<8x128xf32>
    %173 = math.tanh %172 : vector<8x128xf32>
    %c0_143 = arith.constant 0 : index
    %c0_144 = arith.constant 0 : index
    %174 = vector.load %arg8[%c0_143, %c0_144] : memref<128x128xf32, #tpu.memory_space<vmem>>, vector<128x128xf32>
    %cst_145 = arith.constant dense<0.000000e+00> : vector<8x128xf32>
    %175 = tpu.matmul %173, %174, %cst_145 {dimension_numbers = #tpu.dot_dimension_numbers<[1], [0], [0], [1], [0, 0, 1, 1], [], []>} : vector<8x128xf32>, vector<128x128xf32>, vector<8x128xf32> -> vector<8x128xf32>
    %c0_146 = arith.constant 0 : index
    %c0_147 = arith.constant 0 : index
    %176 = vector.load %arg9[%c0_146, %c0_147] : memref<1x128xf32, #tpu.memory_space<vmem>>, vector<1x128xf32>
    %177 = vector.broadcast %176 : vector<1x128xf32> to vector<8x128xf32>
    %178 = arith.addf %175, %177 : vector<8x128xf32>
    %179 = tpu.iota {dimensions = array<i32: 1>} : vector<8x128xi32>
    %180 = vector.broadcast %6 : vector<8x1xf32> to vector<8x128xf32>
    %181 = arith.addf %178, %180 : vector<8x128xf32>
    %c32_i32 = arith.constant 32 : i32
    %182 = vector.broadcast %c32_i32 : i32 to vector<8x128xi32>
    %183 = arith.cmpi slt, %179, %182 : vector<8x128xi32>
    %cst_148 = arith.constant -1.000000e+30 : f32
    %184 = vector.broadcast %cst_148 : f32 to vector<8x128xf32>
    %185 = arith.select %183, %181, %184 : vector<8x128xi1>, vector<8x128xf32>
    %cst_149 = arith.constant dense<0xFF800000> : vector<8xf32>
    %186 = vector.multi_reduction <maximumf>, %185, %cst_149 [1] : vector<8x128xf32> to vector<8xf32>
    %187 = vector.shape_cast %186 : vector<8xf32> to vector<8x1xf32>
    %188 = vector.broadcast %187 : vector<8x1xf32> to vector<8x128xf32>
    %189 = arith.subf %185, %188 : vector<8x128xf32>
    %190 = math.exp %189 : vector<8x128xf32>
    %cst_150 = arith.constant dense<0.000000e+00> : vector<8xf32>
    %191 = vector.multi_reduction <add>, %190, %cst_150 [1] : vector<8x128xf32> to vector<8xf32>
    %192 = vector.shape_cast %191 : vector<8xf32> to vector<8x1xf32>
    %193 = math.log %192 : vector<8x1xf32>
    %194 = arith.addf %193, %187 : vector<8x1xf32>
    %195 = vector.broadcast %194 : vector<8x1xf32> to vector<8x128xf32>
    %196 = arith.subf %181, %195 : vector<8x128xf32>
    %197 = arith.negf %178 : vector<8x128xf32>
    %198 = math.exp %197 : vector<8x128xf32>
    %cst_151 = arith.constant 1.000000e+00 : f32
    %199 = vector.broadcast %cst_151 : f32 to vector<8x128xf32>
    %200 = arith.addf %199, %198 : vector<8x128xf32>
    %201 = arith.divf %199, %200 : vector<8x128xf32>
    %c32_i32_152 = arith.constant 32 : i32
    %202 = vector.broadcast %c32_i32_152 : i32 to vector<8x128xi32>
    %203 = arith.cmpi slt, %179, %202 : vector<8x128xi32>
    %204 = arith.select %203, %196, %201 : vector<8x128xi1>, vector<8x128xf32>
    %c0_153 = arith.constant 0 : index
    %c0_154 = arith.constant 0 : index
    %205 = vector.load %arg22[%c0_153, %c0_154] : memref<8x256xf32, #tpu.memory_space<vmem>>, vector<8x128xf32>
    %c0_155 = arith.constant 0 : index
    %c128_156 = arith.constant 128 : index
    %206 = vector.load %arg22[%c0_155, %c128_156] : memref<8x256xf32, #tpu.memory_space<vmem>>, vector<8x128xf32>
    %c0_157 = arith.constant 0 : index
    %c0_158 = arith.constant 0 : index
    %207 = vector.load %arg20[%c0_157, %c0_158] : memref<8x256xf32, #tpu.memory_space<vmem>>, vector<8x256xf32>
    %c0_159 = arith.constant 0 : index
    %c0_160 = arith.constant 0 : index
    %208 = vector.load %arg10[%c0_159, %c0_160] : memref<256x512xf32, #tpu.memory_space<vmem>>, vector<256x512xf32>
    %cst_161 = arith.constant dense<0.000000e+00> : vector<8x512xf32>
    %209 = tpu.matmul %207, %208, %cst_161 {dimension_numbers = #tpu.dot_dimension_numbers<[1], [0], [0], [1], [0, 0, 1, 1], [], []>} : vector<8x256xf32>, vector<256x512xf32>, vector<8x512xf32> -> vector<8x512xf32>
    %c0_162 = arith.constant 0 : index
    %c0_163 = arith.constant 0 : index
    %210 = vector.load %arg11[%c0_162, %c0_163] : memref<1x512xf32, #tpu.memory_space<vmem>>, vector<1x512xf32>
    %211 = vector.broadcast %210 : vector<1x512xf32> to vector<8x512xf32>
    %212 = arith.addf %209, %211 : vector<8x512xf32>
    %213 = vector.extract_strided_slice %212 {offsets = [0, 0], sizes = [8, 128], strides = [1, 1]} : vector<8x512xf32> to vector<8x128xf32>
    %214 = arith.negf %213 : vector<8x128xf32>
    %215 = math.exp %214 : vector<8x128xf32>
    %cst_164 = arith.constant 1.000000e+00 : f32
    %216 = vector.broadcast %cst_164 : f32 to vector<8x128xf32>
    %217 = arith.addf %216, %215 : vector<8x128xf32>
    %218 = arith.divf %216, %217 : vector<8x128xf32>
    %219 = vector.extract_strided_slice %212 {offsets = [0, 128], sizes = [8, 128], strides = [1, 1]} : vector<8x512xf32> to vector<8x128xf32>
    %220 = arith.negf %219 : vector<8x128xf32>
    %221 = math.exp %220 : vector<8x128xf32>
    %cst_165 = arith.constant 1.000000e+00 : f32
    %222 = vector.broadcast %cst_165 : f32 to vector<8x128xf32>
    %223 = arith.addf %222, %221 : vector<8x128xf32>
    %224 = arith.divf %222, %223 : vector<8x128xf32>
    %225 = vector.extract_strided_slice %212 {offsets = [0, 256], sizes = [8, 128], strides = [1, 1]} : vector<8x512xf32> to vector<8x128xf32>
    %226 = math.tanh %225 : vector<8x128xf32>
    %227 = vector.extract_strided_slice %212 {offsets = [0, 384], sizes = [8, 128], strides = [1, 1]} : vector<8x512xf32> to vector<8x128xf32>
    %228 = arith.negf %227 : vector<8x128xf32>
    %229 = math.exp %228 : vector<8x128xf32>
    %cst_166 = arith.constant 1.000000e+00 : f32
    %230 = vector.broadcast %cst_166 : f32 to vector<8x128xf32>
    %231 = arith.addf %230, %229 : vector<8x128xf32>
    %232 = arith.divf %230, %231 : vector<8x128xf32>
    %233 = arith.mulf %224, %205 : vector<8x128xf32>
    %234 = arith.mulf %218, %226 : vector<8x128xf32>
    %235 = arith.addf %233, %234 : vector<8x128xf32>
    %236 = math.tanh %235 : vector<8x128xf32>
    %237 = arith.mulf %232, %236 : vector<8x128xf32>
    %c0_167 = arith.constant 0 : index
    %c0_168 = arith.constant 0 : index
    %238 = vector.load %arg21[%c0_167, %c0_168] : memref<8x256xf32, #tpu.memory_space<vmem>>, vector<8x256xf32>
    %c0_169 = arith.constant 0 : index
    %c0_170 = arith.constant 0 : index
    %239 = vector.load %arg12[%c0_169, %c0_170] : memref<256x512xf32, #tpu.memory_space<vmem>>, vector<256x512xf32>
    %cst_171 = arith.constant dense<0.000000e+00> : vector<8x512xf32>
    %240 = tpu.matmul %238, %239, %cst_171 {dimension_numbers = #tpu.dot_dimension_numbers<[1], [0], [0], [1], [0, 0, 1, 1], [], []>} : vector<8x256xf32>, vector<256x512xf32>, vector<8x512xf32> -> vector<8x512xf32>
    %c0_172 = arith.constant 0 : index
    %c0_173 = arith.constant 0 : index
    %241 = vector.load %arg13[%c0_172, %c0_173] : memref<1x512xf32, #tpu.memory_space<vmem>>, vector<1x512xf32>
    %242 = vector.broadcast %241 : vector<1x512xf32> to vector<8x512xf32>
    %243 = arith.addf %240, %242 : vector<8x512xf32>
    %244 = vector.extract_strided_slice %243 {offsets = [0, 0], sizes = [8, 128], strides = [1, 1]} : vector<8x512xf32> to vector<8x128xf32>
    %245 = arith.negf %244 : vector<8x128xf32>
    %246 = math.exp %245 : vector<8x128xf32>
    %cst_174 = arith.constant 1.000000e+00 : f32
    %247 = vector.broadcast %cst_174 : f32 to vector<8x128xf32>
    %248 = arith.addf %247, %246 : vector<8x128xf32>
    %249 = arith.divf %247, %248 : vector<8x128xf32>
    %250 = vector.extract_strided_slice %243 {offsets = [0, 128], sizes = [8, 128], strides = [1, 1]} : vector<8x512xf32> to vector<8x128xf32>
    %251 = arith.negf %250 : vector<8x128xf32>
    %252 = math.exp %251 : vector<8x128xf32>
    %cst_175 = arith.constant 1.000000e+00 : f32
    %253 = vector.broadcast %cst_175 : f32 to vector<8x128xf32>
    %254 = arith.addf %253, %252 : vector<8x128xf32>
    %255 = arith.divf %253, %254 : vector<8x128xf32>
    %256 = vector.extract_strided_slice %243 {offsets = [0, 256], sizes = [8, 128], strides = [1, 1]} : vector<8x512xf32> to vector<8x128xf32>
    %257 = math.tanh %256 : vector<8x128xf32>
    %258 = vector.extract_strided_slice %243 {offsets = [0, 384], sizes = [8, 128], strides = [1, 1]} : vector<8x512xf32> to vector<8x128xf32>
    %259 = arith.negf %258 : vector<8x128xf32>
    %260 = math.exp %259 : vector<8x128xf32>
    %cst_176 = arith.constant 1.000000e+00 : f32
    %261 = vector.broadcast %cst_176 : f32 to vector<8x128xf32>
    %262 = arith.addf %261, %260 : vector<8x128xf32>
    %263 = arith.divf %261, %262 : vector<8x128xf32>
    %264 = arith.mulf %255, %206 : vector<8x128xf32>
    %265 = arith.mulf %249, %257 : vector<8x128xf32>
    %266 = arith.addf %264, %265 : vector<8x128xf32>
    %267 = math.tanh %266 : vector<8x128xf32>
    %268 = arith.mulf %263, %267 : vector<8x128xf32>
    %c0_i32_177 = arith.constant 0 : i32
    %269 = arith.addi %9, %c0_i32_177 : i32
    %270 = arith.index_cast %269 : i32 to index
    %271 = memref.load %arg3[%270] : memref<40xi32, #tpu.memory_space<smem>>
    %272 = vector.extract_strided_slice %204 {offsets = [0, 0], sizes = [1, 128], strides = [1, 1]} : vector<8x128xf32> to vector<1x128xf32>
    %273 = arith.index_cast %271 : i32 to index
    %c0_178 = arith.constant 0 : index
    %274 = vector.load %arg14[%273, %c0_178] : memref<24x128xf32, #tpu.memory_space<vmem>>, vector<1x128xf32>
    tpu.vector_store %arg14[%273, %c0_178], %272 {strides = array<i32>} : memref<24x128xf32, #tpu.memory_space<vmem>>, vector<1x128xf32>,
    %275 = vector.extract_strided_slice %237 {offsets = [0, 0], sizes = [1, 128], strides = [1, 1]} : vector<8x128xf32> to vector<1x128xf32>
    %276 = arith.index_cast %271 : i32 to index
    %c0_179 = arith.constant 0 : index
    %277 = vector.load %arg15[%276, %c0_179] : memref<24x128xf32, #tpu.memory_space<vmem>>, vector<1x128xf32>
    tpu.vector_store %arg15[%276, %c0_179], %275 {strides = array<i32>} : memref<24x128xf32, #tpu.memory_space<vmem>>, vector<1x128xf32>,
    %278 = vector.extract_strided_slice %235 {offsets = [0, 0], sizes = [1, 128], strides = [1, 1]} : vector<8x128xf32> to vector<1x128xf32>
    %279 = arith.index_cast %271 : i32 to index
    %c0_180 = arith.constant 0 : index
    %280 = vector.load %arg16[%279, %c0_180] : memref<24x128xf32, #tpu.memory_space<vmem>>, vector<1x128xf32>
    tpu.vector_store %arg16[%279, %c0_180], %278 {strides = array<i32>} : memref<24x128xf32, #tpu.memory_space<vmem>>, vector<1x128xf32>,
    %281 = vector.extract_strided_slice %268 {offsets = [0, 0], sizes = [1, 128], strides = [1, 1]} : vector<8x128xf32> to vector<1x128xf32>
    %282 = arith.index_cast %271 : i32 to index
    %c0_181 = arith.constant 0 : index
    %283 = vector.load %arg17[%282, %c0_181] : memref<24x128xf32, #tpu.memory_space<vmem>>, vector<1x128xf32>
    tpu.vector_store %arg17[%282, %c0_181], %281 {strides = array<i32>} : memref<24x128xf32, #tpu.memory_space<vmem>>, vector<1x128xf32>,
    %284 = vector.extract_strided_slice %266 {offsets = [0, 0], sizes = [1, 128], strides = [1, 1]} : vector<8x128xf32> to vector<1x128xf32>
    %285 = arith.index_cast %271 : i32 to index
    %c0_182 = arith.constant 0 : index
    %286 = vector.load %arg18[%285, %c0_182] : memref<24x128xf32, #tpu.memory_space<vmem>>, vector<1x128xf32>
    tpu.vector_store %arg18[%285, %c0_182], %284 {strides = array<i32>} : memref<24x128xf32, #tpu.memory_space<vmem>>, vector<1x128xf32>,
    %c1_i32_183 = arith.constant 1 : i32
    %287 = arith.addi %9, %c1_i32_183 : i32
    %288 = arith.index_cast %287 : i32 to index
    %289 = memref.load %arg3[%288] : memref<40xi32, #tpu.memory_space<smem>>
    %290 = vector.extract_strided_slice %204 {offsets = [1, 0], sizes = [1, 128], strides = [1, 1]} : vector<8x128xf32> to vector<1x128xf32>
    %291 = arith.index_cast %289 : i32 to index
    %c0_184 = arith.constant 0 : index
    %292 = vector.load %arg14[%291, %c0_184] : memref<24x128xf32, #tpu.memory_space<vmem>>, vector<1x128xf32>
    tpu.vector_store %arg14[%291, %c0_184], %290 {strides = array<i32>} : memref<24x128xf32, #tpu.memory_space<vmem>>, vector<1x128xf32>,
    %293 = vector.extract_strided_slice %237 {offsets = [1, 0], sizes = [1, 128], strides = [1, 1]} : vector<8x128xf32> to vector<1x128xf32>
    %294 = arith.index_cast %289 : i32 to index
    %c0_185 = arith.constant 0 : index
    %295 = vector.load %arg15[%294, %c0_185] : memref<24x128xf32, #tpu.memory_space<vmem>>, vector<1x128xf32>
    tpu.vector_store %arg15[%294, %c0_185], %293 {strides = array<i32>} : memref<24x128xf32, #tpu.memory_space<vmem>>, vector<1x128xf32>,
    %296 = vector.extract_strided_slice %235 {offsets = [1, 0], sizes = [1, 128], strides = [1, 1]} : vector<8x128xf32> to vector<1x128xf32>
    %297 = arith.index_cast %289 : i32 to index
    %c0_186 = arith.constant 0 : index
    %298 = vector.load %arg16[%297, %c0_186] : memref<24x128xf32, #tpu.memory_space<vmem>>, vector<1x128xf32>
    tpu.vector_store %arg16[%297, %c0_186], %296 {strides = array<i32>} : memref<24x128xf32, #tpu.memory_space<vmem>>, vector<1x128xf32>,
    %299 = vector.extract_strided_slice %268 {offsets = [1, 0], sizes = [1, 128], strides = [1, 1]} : vector<8x128xf32> to vector<1x128xf32>
    %300 = arith.index_cast %289 : i32 to index
    %c0_187 = arith.constant 0 : index
    %301 = vector.load %arg17[%300, %c0_187] : memref<24x128xf32, #tpu.memory_space<vmem>>, vector<1x128xf32>
    tpu.vector_store %arg17[%300, %c0_187], %299 {strides = array<i32>} : memref<24x128xf32, #tpu.memory_space<vmem>>, vector<1x128xf32>,
    %302 = vector.extract_strided_slice %266 {offsets = [1, 0], sizes = [1, 128], strides = [1, 1]} : vector<8x128xf32> to vector<1x128xf32>
    %303 = arith.index_cast %289 : i32 to index
    %c0_188 = arith.constant 0 : index
    %304 = vector.load %arg18[%303, %c0_188] : memref<24x128xf32, #tpu.memory_space<vmem>>, vector<1x128xf32>
    tpu.vector_store %arg18[%303, %c0_188], %302 {strides = array<i32>} : memref<24x128xf32, #tpu.memory_space<vmem>>, vector<1x128xf32>,
    %c2_i32_189 = arith.constant 2 : i32
    %305 = arith.addi %9, %c2_i32_189 : i32
    %306 = arith.index_cast %305 : i32 to index
    %307 = memref.load %arg3[%306] : memref<40xi32, #tpu.memory_space<smem>>
    %308 = vector.extract_strided_slice %204 {offsets = [2, 0], sizes = [1, 128], strides = [1, 1]} : vector<8x128xf32> to vector<1x128xf32>
    %309 = arith.index_cast %307 : i32 to index
    %c0_190 = arith.constant 0 : index
    %310 = vector.load %arg14[%309, %c0_190] : memref<24x128xf32, #tpu.memory_space<vmem>>, vector<1x128xf32>
    tpu.vector_store %arg14[%309, %c0_190], %308 {strides = array<i32>} : memref<24x128xf32, #tpu.memory_space<vmem>>, vector<1x128xf32>,
    %311 = vector.extract_strided_slice %237 {offsets = [2, 0], sizes = [1, 128], strides = [1, 1]} : vector<8x128xf32> to vector<1x128xf32>
    %312 = arith.index_cast %307 : i32 to index
    %c0_191 = arith.constant 0 : index
    %313 = vector.load %arg15[%312, %c0_191] : memref<24x128xf32, #tpu.memory_space<vmem>>, vector<1x128xf32>
    tpu.vector_store %arg15[%312, %c0_191], %311 {strides = array<i32>} : memref<24x128xf32, #tpu.memory_space<vmem>>, vector<1x128xf32>,
    %314 = vector.extract_strided_slice %235 {offsets = [2, 0], sizes = [1, 128], strides = [1, 1]} : vector<8x128xf32> to vector<1x128xf32>
    %315 = arith.index_cast %307 : i32 to index
    %c0_192 = arith.constant 0 : index
    %316 = vector.load %arg16[%315, %c0_192] : memref<24x128xf32, #tpu.memory_space<vmem>>, vector<1x128xf32>
    tpu.vector_store %arg16[%315, %c0_192], %314 {strides = array<i32>} : memref<24x128xf32, #tpu.memory_space<vmem>>, vector<1x128xf32>,
    %317 = vector.extract_strided_slice %268 {offsets = [2, 0], sizes = [1, 128], strides = [1, 1]} : vector<8x128xf32> to vector<1x128xf32>
    %318 = arith.index_cast %307 : i32 to index
    %c0_193 = arith.constant 0 : index
    %319 = vector.load %arg17[%318, %c0_193] : memref<24x128xf32, #tpu.memory_space<vmem>>, vector<1x128xf32>
    tpu.vector_store %arg17[%318, %c0_193], %317 {strides = array<i32>} : memref<24x128xf32, #tpu.memory_space<vmem>>, vector<1x128xf32>,
    %320 = vector.extract_strided_slice %266 {offsets = [2, 0], sizes = [1, 128], strides = [1, 1]} : vector<8x128xf32> to vector<1x128xf32>
    %321 = arith.index_cast %307 : i32 to index
    %c0_194 = arith.constant 0 : index
    %322 = vector.load %arg18[%321, %c0_194] : memref<24x128xf32, #tpu.memory_space<vmem>>, vector<1x128xf32>
    tpu.vector_store %arg18[%321, %c0_194], %320 {strides = array<i32>} : memref<24x128xf32, #tpu.memory_space<vmem>>, vector<1x128xf32>,
    %c3_i32_195 = arith.constant 3 : i32
    %323 = arith.addi %9, %c3_i32_195 : i32
    %324 = arith.index_cast %323 : i32 to index
    %325 = memref.load %arg3[%324] : memref<40xi32, #tpu.memory_space<smem>>
    %326 = vector.extract_strided_slice %204 {offsets = [3, 0], sizes = [1, 128], strides = [1, 1]} : vector<8x128xf32> to vector<1x128xf32>
    %327 = arith.index_cast %325 : i32 to index
    %c0_196 = arith.constant 0 : index
    %328 = vector.load %arg14[%327, %c0_196] : memref<24x128xf32, #tpu.memory_space<vmem>>, vector<1x128xf32>
    tpu.vector_store %arg14[%327, %c0_196], %326 {strides = array<i32>} : memref<24x128xf32, #tpu.memory_space<vmem>>, vector<1x128xf32>,
    %329 = vector.extract_strided_slice %237 {offsets = [3, 0], sizes = [1, 128], strides = [1, 1]} : vector<8x128xf32> to vector<1x128xf32>
    %330 = arith.index_cast %325 : i32 to index
    %c0_197 = arith.constant 0 : index
    %331 = vector.load %arg15[%330, %c0_197] : memref<24x128xf32, #tpu.memory_space<vmem>>, vector<1x128xf32>
    tpu.vector_store %arg15[%330, %c0_197], %329 {strides = array<i32>} : memref<24x128xf32, #tpu.memory_space<vmem>>, vector<1x128xf32>,
    %332 = vector.extract_strided_slice %235 {offsets = [3, 0], sizes = [1, 128], strides = [1, 1]} : vector<8x128xf32> to vector<1x128xf32>
    %333 = arith.index_cast %325 : i32 to index
    %c0_198 = arith.constant 0 : index
    %334 = vector.load %arg16[%333, %c0_198] : memref<24x128xf32, #tpu.memory_space<vmem>>, vector<1x128xf32>
    tpu.vector_store %arg16[%333, %c0_198], %332 {strides = array<i32>} : memref<24x128xf32, #tpu.memory_space<vmem>>, vector<1x128xf32>,
    %335 = vector.extract_strided_slice %268 {offsets = [3, 0], sizes = [1, 128], strides = [1, 1]} : vector<8x128xf32> to vector<1x128xf32>
    %336 = arith.index_cast %325 : i32 to index
    %c0_199 = arith.constant 0 : index
    %337 = vector.load %arg17[%336, %c0_199] : memref<24x128xf32, #tpu.memory_space<vmem>>, vector<1x128xf32>
    tpu.vector_store %arg17[%336, %c0_199], %335 {strides = array<i32>} : memref<24x128xf32, #tpu.memory_space<vmem>>, vector<1x128xf32>,
    %338 = vector.extract_strided_slice %266 {offsets = [3, 0], sizes = [1, 128], strides = [1, 1]} : vector<8x128xf32> to vector<1x128xf32>
    %339 = arith.index_cast %325 : i32 to index
    %c0_200 = arith.constant 0 : index
    %340 = vector.load %arg18[%339, %c0_200] : memref<24x128xf32, #tpu.memory_space<vmem>>, vector<1x128xf32>
    tpu.vector_store %arg18[%339, %c0_200], %338 {strides = array<i32>} : memref<24x128xf32, #tpu.memory_space<vmem>>, vector<1x128xf32>,
    %c4_i32_201 = arith.constant 4 : i32
    %341 = arith.addi %9, %c4_i32_201 : i32
    %342 = arith.index_cast %341 : i32 to index
    %343 = memref.load %arg3[%342] : memref<40xi32, #tpu.memory_space<smem>>
    %344 = vector.extract_strided_slice %204 {offsets = [4, 0], sizes = [1, 128], strides = [1, 1]} : vector<8x128xf32> to vector<1x128xf32>
    %345 = arith.index_cast %343 : i32 to index
    %c0_202 = arith.constant 0 : index
    %346 = vector.load %arg14[%345, %c0_202] : memref<24x128xf32, #tpu.memory_space<vmem>>, vector<1x128xf32>
    tpu.vector_store %arg14[%345, %c0_202], %344 {strides = array<i32>} : memref<24x128xf32, #tpu.memory_space<vmem>>, vector<1x128xf32>,
    %347 = vector.extract_strided_slice %237 {offsets = [4, 0], sizes = [1, 128], strides = [1, 1]} : vector<8x128xf32> to vector<1x128xf32>
    %348 = arith.index_cast %343 : i32 to index
    %c0_203 = arith.constant 0 : index
    %349 = vector.load %arg15[%348, %c0_203] : memref<24x128xf32, #tpu.memory_space<vmem>>, vector<1x128xf32>
    tpu.vector_store %arg15[%348, %c0_203], %347 {strides = array<i32>} : memref<24x128xf32, #tpu.memory_space<vmem>>, vector<1x128xf32>,
    %350 = vector.extract_strided_slice %235 {offsets = [4, 0], sizes = [1, 128], strides = [1, 1]} : vector<8x128xf32> to vector<1x128xf32>
    %351 = arith.index_cast %343 : i32 to index
    %c0_204 = arith.constant 0 : index
    %352 = vector.load %arg16[%351, %c0_204] : memref<24x128xf32, #tpu.memory_space<vmem>>, vector<1x128xf32>
    tpu.vector_store %arg16[%351, %c0_204], %350 {strides = array<i32>} : memref<24x128xf32, #tpu.memory_space<vmem>>, vector<1x128xf32>,
    %353 = vector.extract_strided_slice %268 {offsets = [4, 0], sizes = [1, 128], strides = [1, 1]} : vector<8x128xf32> to vector<1x128xf32>
    %354 = arith.index_cast %343 : i32 to index
    %c0_205 = arith.constant 0 : index
    %355 = vector.load %arg17[%354, %c0_205] : memref<24x128xf32, #tpu.memory_space<vmem>>, vector<1x128xf32>
    tpu.vector_store %arg17[%354, %c0_205], %353 {strides = array<i32>} : memref<24x128xf32, #tpu.memory_space<vmem>>, vector<1x128xf32>,
    %356 = vector.extract_strided_slice %266 {offsets = [4, 0], sizes = [1, 128], strides = [1, 1]} : vector<8x128xf32> to vector<1x128xf32>
    %357 = arith.index_cast %343 : i32 to index
    %c0_206 = arith.constant 0 : index
    %358 = vector.load %arg18[%357, %c0_206] : memref<24x128xf32, #tpu.memory_space<vmem>>, vector<1x128xf32>
    tpu.vector_store %arg18[%357, %c0_206], %356 {strides = array<i32>} : memref<24x128xf32, #tpu.memory_space<vmem>>, vector<1x128xf32>,
    %c5_i32_207 = arith.constant 5 : i32
    %359 = arith.addi %9, %c5_i32_207 : i32
    %360 = arith.index_cast %359 : i32 to index
    %361 = memref.load %arg3[%360] : memref<40xi32, #tpu.memory_space<smem>>
    %362 = vector.extract_strided_slice %204 {offsets = [5, 0], sizes = [1, 128], strides = [1, 1]} : vector<8x128xf32> to vector<1x128xf32>
    %363 = arith.index_cast %361 : i32 to index
    %c0_208 = arith.constant 0 : index
    %364 = vector.load %arg14[%363, %c0_208] : memref<24x128xf32, #tpu.memory_space<vmem>>, vector<1x128xf32>
    tpu.vector_store %arg14[%363, %c0_208], %362 {strides = array<i32>} : memref<24x128xf32, #tpu.memory_space<vmem>>, vector<1x128xf32>,
    %365 = vector.extract_strided_slice %237 {offsets = [5, 0], sizes = [1, 128], strides = [1, 1]} : vector<8x128xf32> to vector<1x128xf32>
    %366 = arith.index_cast %361 : i32 to index
    %c0_209 = arith.constant 0 : index
    %367 = vector.load %arg15[%366, %c0_209] : memref<24x128xf32, #tpu.memory_space<vmem>>, vector<1x128xf32>
    tpu.vector_store %arg15[%366, %c0_209], %365 {strides = array<i32>} : memref<24x128xf32, #tpu.memory_space<vmem>>, vector<1x128xf32>,
    %368 = vector.extract_strided_slice %235 {offsets = [5, 0], sizes = [1, 128], strides = [1, 1]} : vector<8x128xf32> to vector<1x128xf32>
    %369 = arith.index_cast %361 : i32 to index
    %c0_210 = arith.constant 0 : index
    %370 = vector.load %arg16[%369, %c0_210] : memref<24x128xf32, #tpu.memory_space<vmem>>, vector<1x128xf32>
    tpu.vector_store %arg16[%369, %c0_210], %368 {strides = array<i32>} : memref<24x128xf32, #tpu.memory_space<vmem>>, vector<1x128xf32>,
    %371 = vector.extract_strided_slice %268 {offsets = [5, 0], sizes = [1, 128], strides = [1, 1]} : vector<8x128xf32> to vector<1x128xf32>
    %372 = arith.index_cast %361 : i32 to index
    %c0_211 = arith.constant 0 : index
    %373 = vector.load %arg17[%372, %c0_211] : memref<24x128xf32, #tpu.memory_space<vmem>>, vector<1x128xf32>
    tpu.vector_store %arg17[%372, %c0_211], %371 {strides = array<i32>} : memref<24x128xf32, #tpu.memory_space<vmem>>, vector<1x128xf32>,
    %374 = vector.extract_strided_slice %266 {offsets = [5, 0], sizes = [1, 128], strides = [1, 1]} : vector<8x128xf32> to vector<1x128xf32>
    %375 = arith.index_cast %361 : i32 to index
    %c0_212 = arith.constant 0 : index
    %376 = vector.load %arg18[%375, %c0_212] : memref<24x128xf32, #tpu.memory_space<vmem>>, vector<1x128xf32>
    tpu.vector_store %arg18[%375, %c0_212], %374 {strides = array<i32>} : memref<24x128xf32, #tpu.memory_space<vmem>>, vector<1x128xf32>,
    %c6_i32_213 = arith.constant 6 : i32
    %377 = arith.addi %9, %c6_i32_213 : i32
    %378 = arith.index_cast %377 : i32 to index
    %379 = memref.load %arg3[%378] : memref<40xi32, #tpu.memory_space<smem>>
    %380 = vector.extract_strided_slice %204 {offsets = [6, 0], sizes = [1, 128], strides = [1, 1]} : vector<8x128xf32> to vector<1x128xf32>
    %381 = arith.index_cast %379 : i32 to index
    %c0_214 = arith.constant 0 : index
    %382 = vector.load %arg14[%381, %c0_214] : memref<24x128xf32, #tpu.memory_space<vmem>>, vector<1x128xf32>
    tpu.vector_store %arg14[%381, %c0_214], %380 {strides = array<i32>} : memref<24x128xf32, #tpu.memory_space<vmem>>, vector<1x128xf32>,
    %383 = vector.extract_strided_slice %237 {offsets = [6, 0], sizes = [1, 128], strides = [1, 1]} : vector<8x128xf32> to vector<1x128xf32>
    %384 = arith.index_cast %379 : i32 to index
    %c0_215 = arith.constant 0 : index
    %385 = vector.load %arg15[%384, %c0_215] : memref<24x128xf32, #tpu.memory_space<vmem>>, vector<1x128xf32>
    tpu.vector_store %arg15[%384, %c0_215], %383 {strides = array<i32>} : memref<24x128xf32, #tpu.memory_space<vmem>>, vector<1x128xf32>,
    %386 = vector.extract_strided_slice %235 {offsets = [6, 0], sizes = [1, 128], strides = [1, 1]} : vector<8x128xf32> to vector<1x128xf32>
    %387 = arith.index_cast %379 : i32 to index
    %c0_216 = arith.constant 0 : index
    %388 = vector.load %arg16[%387, %c0_216] : memref<24x128xf32, #tpu.memory_space<vmem>>, vector<1x128xf32>
    tpu.vector_store %arg16[%387, %c0_216], %386 {strides = array<i32>} : memref<24x128xf32, #tpu.memory_space<vmem>>, vector<1x128xf32>,
    %389 = vector.extract_strided_slice %268 {offsets = [6, 0], sizes = [1, 128], strides = [1, 1]} : vector<8x128xf32> to vector<1x128xf32>
    %390 = arith.index_cast %379 : i32 to index
    %c0_217 = arith.constant 0 : index
    %391 = vector.load %arg17[%390, %c0_217] : memref<24x128xf32, #tpu.memory_space<vmem>>, vector<1x128xf32>
    tpu.vector_store %arg17[%390, %c0_217], %389 {strides = array<i32>} : memref<24x128xf32, #tpu.memory_space<vmem>>, vector<1x128xf32>,
    %392 = vector.extract_strided_slice %266 {offsets = [6, 0], sizes = [1, 128], strides = [1, 1]} : vector<8x128xf32> to vector<1x128xf32>
    %393 = arith.index_cast %379 : i32 to index
    %c0_218 = arith.constant 0 : index
    %394 = vector.load %arg18[%393, %c0_218] : memref<24x128xf32, #tpu.memory_space<vmem>>, vector<1x128xf32>
    tpu.vector_store %arg18[%393, %c0_218], %392 {strides = array<i32>} : memref<24x128xf32, #tpu.memory_space<vmem>>, vector<1x128xf32>,
    %c7_i32_219 = arith.constant 7 : i32
    %395 = arith.addi %9, %c7_i32_219 : i32
    %396 = arith.index_cast %395 : i32 to index
    %397 = memref.load %arg3[%396] : memref<40xi32, #tpu.memory_space<smem>>
    %398 = vector.extract_strided_slice %204 {offsets = [7, 0], sizes = [1, 128], strides = [1, 1]} : vector<8x128xf32> to vector<1x128xf32>
    %399 = arith.index_cast %397 : i32 to index
    %c0_220 = arith.constant 0 : index
    %400 = vector.load %arg14[%399, %c0_220] : memref<24x128xf32, #tpu.memory_space<vmem>>, vector<1x128xf32>
    tpu.vector_store %arg14[%399, %c0_220], %398 {strides = array<i32>} : memref<24x128xf32, #tpu.memory_space<vmem>>, vector<1x128xf32>,
    %401 = vector.extract_strided_slice %237 {offsets = [7, 0], sizes = [1, 128], strides = [1, 1]} : vector<8x128xf32> to vector<1x128xf32>
    %402 = arith.index_cast %397 : i32 to index
    %c0_221 = arith.constant 0 : index
    %403 = vector.load %arg15[%402, %c0_221] : memref<24x128xf32, #tpu.memory_space<vmem>>, vector<1x128xf32>
    tpu.vector_store %arg15[%402, %c0_221], %401 {strides = array<i32>} : memref<24x128xf32, #tpu.memory_space<vmem>>, vector<1x128xf32>,
    %404 = vector.extract_strided_slice %235 {offsets = [7, 0], sizes = [1, 128], strides = [1, 1]} : vector<8x128xf32> to vector<1x128xf32>
    %405 = arith.index_cast %397 : i32 to index
    %c0_222 = arith.constant 0 : index
    %406 = vector.load %arg16[%405, %c0_222] : memref<24x128xf32, #tpu.memory_space<vmem>>, vector<1x128xf32>
    tpu.vector_store %arg16[%405, %c0_222], %404 {strides = array<i32>} : memref<24x128xf32, #tpu.memory_space<vmem>>, vector<1x128xf32>,
    %407 = vector.extract_strided_slice %268 {offsets = [7, 0], sizes = [1, 128], strides = [1, 1]} : vector<8x128xf32> to vector<1x128xf32>
    %408 = arith.index_cast %397 : i32 to index
    %c0_223 = arith.constant 0 : index
    %409 = vector.load %arg17[%408, %c0_223] : memref<24x128xf32, #tpu.memory_space<vmem>>, vector<1x128xf32>
    tpu.vector_store %arg17[%408, %c0_223], %407 {strides = array<i32>} : memref<24x128xf32, #tpu.memory_space<vmem>>, vector<1x128xf32>,
    %410 = vector.extract_strided_slice %266 {offsets = [7, 0], sizes = [1, 128], strides = [1, 1]} : vector<8x128xf32> to vector<1x128xf32>
    %411 = arith.index_cast %397 : i32 to index
    %c0_224 = arith.constant 0 : index
    %412 = vector.load %arg18[%411, %c0_224] : memref<24x128xf32, #tpu.memory_space<vmem>>, vector<1x128xf32>
    tpu.vector_store %arg18[%411, %c0_224], %410 {strides = array<i32>} : memref<24x128xf32, #tpu.memory_space<vmem>>, vector<1x128xf32>,
    return
  }
  func.func @transform_0(%arg0: i32, %arg1: memref<40xi32, #tpu.memory_space<smem>>, %arg2: memref<40xi32, #tpu.memory_space<smem>>, %arg3: memref<40xi32, #tpu.memory_space<smem>>) -> (i32, i32) {
    %c0_i32 = arith.constant 0 : i32
    %c0_i32_0 = arith.constant 0 : i32
    %c0_i32_1 = arith.constant 0 : i32
    return %c0_i32, %c0_i32_0 : i32, i32
  }
  func.func @transform_1(%arg0: i32, %arg1: memref<40xi32, #tpu.memory_space<smem>>, %arg2: memref<40xi32, #tpu.memory_space<smem>>, %arg3: memref<40xi32, #tpu.memory_space<smem>>) -> (i32, i32, i32) {
    %c0_i32 = arith.constant 0 : i32
    %c0_i32_0 = arith.constant 0 : i32
    %c0_i32_1 = arith.constant 0 : i32
    return %arg0, %c0_i32, %c0_i32_0 : i32, i32, i32
  }
  func.func @transform_2(%arg0: i32, %arg1: memref<40xi32, #tpu.memory_space<smem>>, %arg2: memref<40xi32, #tpu.memory_space<smem>>, %arg3: memref<40xi32, #tpu.memory_space<smem>>) -> (i32, i32, i32) {
    %c0_i32 = arith.constant 0 : i32
    %c0_i32_0 = arith.constant 0 : i32
    %c0_i32_1 = arith.constant 0 : i32
    return %arg0, %c0_i32, %c0_i32_0 : i32, i32, i32
  }
  func.func @transform_3(%arg0: i32, %arg1: memref<40xi32, #tpu.memory_space<smem>>, %arg2: memref<40xi32, #tpu.memory_space<smem>>, %arg3: memref<40xi32, #tpu.memory_space<smem>>) -> (i32, i32) {
    %c0_i32 = arith.constant 0 : i32
    %c0_i32_0 = arith.constant 0 : i32
    %c0_i32_1 = arith.constant 0 : i32
    return %c0_i32, %c0_i32_0 : i32, i32
  }
  func.func @transform_4(%arg0: i32, %arg1: memref<40xi32, #tpu.memory_space<smem>>, %arg2: memref<40xi32, #tpu.memory_space<smem>>, %arg3: memref<40xi32, #tpu.memory_space<smem>>) -> (i32, i32) {
    %c0_i32 = arith.constant 0 : i32
    %c0_i32_0 = arith.constant 0 : i32
    %c0_i32_1 = arith.constant 0 : i32
    return %c0_i32, %c0_i32_0 : i32, i32
  }
  func.func @transform_5(%arg0: i32, %arg1: memref<40xi32, #tpu.memory_space<smem>>, %arg2: memref<40xi32, #tpu.memory_space<smem>>, %arg3: memref<40xi32, #tpu.memory_space<smem>>) -> (i32, i32) {
    %c0_i32 = arith.constant 0 : i32
    %c0_i32_0 = arith.constant 0 : i32
    %c0_i32_1 = arith.constant 0 : i32
    return %c0_i32, %c0_i32_0 : i32, i32
  }
  func.func @transform_6(%arg0: i32, %arg1: memref<40xi32, #tpu.memory_space<smem>>, %arg2: memref<40xi32, #tpu.memory_space<smem>>, %arg3: memref<40xi32, #tpu.memory_space<smem>>) -> (i32, i32) {
    %c0_i32 = arith.constant 0 : i32
    %c0_i32_0 = arith.constant 0 : i32
    %c0_i32_1 = arith.constant 0 : i32
    return %c0_i32, %c0_i32_0 : i32, i32
  }
  func.func @transform_7(%arg0: i32, %arg1: memref<40xi32, #tpu.memory_space<smem>>, %arg2: memref<40xi32, #tpu.memory_space<smem>>, %arg3: memref<40xi32, #tpu.memory_space<smem>>) -> (i32, i32) {
    %c0_i32 = arith.constant 0 : i32
    %c0_i32_0 = arith.constant 0 : i32
    %c0_i32_1 = arith.constant 0 : i32
    return %c0_i32, %c0_i32_0 : i32, i32
  }
  func.func @transform_8(%arg0: i32, %arg1: memref<40xi32, #tpu.memory_space<smem>>, %arg2: memref<40xi32, #tpu.memory_space<smem>>, %arg3: memref<40xi32, #tpu.memory_space<smem>>) -> (i32, i32) {
    %c0_i32 = arith.constant 0 : i32
    %c0_i32_0 = arith.constant 0 : i32
    %c0_i32_1 = arith.constant 0 : i32
    return %c0_i32, %c0_i32_0 : i32, i32
  }
  func.func @transform_9(%arg0: i32, %arg1: memref<40xi32, #tpu.memory_space<smem>>, %arg2: memref<40xi32, #tpu.memory_space<smem>>, %arg3: memref<40xi32, #tpu.memory_space<smem>>) -> (i32, i32) {
    %c0_i32 = arith.constant 0 : i32
    %c0_i32_0 = arith.constant 0 : i32
    %c0_i32_1 = arith.constant 0 : i32
    return %c0_i32, %c0_i32_0 : i32, i32
  }
  func.func @transform_10(%arg0: i32, %arg1: memref<40xi32, #tpu.memory_space<smem>>, %arg2: memref<40xi32, #tpu.memory_space<smem>>, %arg3: memref<40xi32, #tpu.memory_space<smem>>) -> (i32, i32) {
    %c0_i32 = arith.constant 0 : i32
    %c0_i32_0 = arith.constant 0 : i32
    %c0_i32_1 = arith.constant 0 : i32
    return %c0_i32, %c0_i32_0 : i32, i32
  }
}

</mosaic_0001>

<bundles_post_ra>
// kernel: tpu_custom_call.1
= control target key start
LH: loop header
LB: loop body
LE: loop exit
PB: predicated region body
PF: predicated region fallthrough
CT: control target
= control target key end

     0   :  { %s2993_s0 = inlined_call_operand.vmem [shape: s32[40], index: 0, kind: input, shape index: {}]   ;;  %s2994_s3 = inlined_call_operand.vmem [shape: f32[8,128], index: 3, kind: input, shape index: {}]   ;;  %s2995_s4 = inlined_call_operand.vmem [shape: f32[5,8,128], index: 4, kind: input, shape index: {}]   ;;  %s2996_s5 = inlined_call_operand.vmem [shape: f32[5,8,1], index: 5, kind: input, shape index: {}]   ;;  %s2997_s6 = inlined_call_operand.hbm [shape: f32[256,128], index: 6, kind: input, shape index: {}]   ;;  %s2998_s7 = inlined_call_operand.hbm [shape: f32[128,128], index: 7, kind: input, shape index: {}]   ;;  %s2999_s8 = inlined_call_operand.vmem [shape: f32[1,128], index: 8, kind: input, shape index: {}]   ;;  %s3000_s9 = inlined_call_operand.hbm [shape: f32[256,512], index: 9, kind: input, shape index: {}]   ;;  %s3001_s10 = inlined_call_operand.vmem [shape: f32[1,512], index: 10, kind: input, shape index: {}]   ;;  %s3002_s11 = inlined_call_operand.hbm [shape: f32[256,512], index: 11, kind: input, shape index: {}]   ;;  %s3003_s12 = inlined_call_operand.vmem [shape: f32[1,512], index: 12, kind: input, shape index: {}]   ;;  %s3004_s13 = inlined_call_operand.hbm [shape: f32[24,128], index: 13, kind: output, shape index: {}]   ;;  %s3005_s1 = inlined_call_operand.vmem [shape: s32[40], index: 1, kind: input, shape index: {}]   ;;  %s3006_s2 = inlined_call_operand.hbm [shape: s32[40], index: 2, kind: input, shape index: {}]  }
   0x1   :  { %3015 = sst [smem:[#allocation32_spill]] %s2994_s3  ;;  %s18_s27 = sshll.u32 %s2993_s0, 4  ;;  %s19_s27 = int_to_ptr.vmem [resolvable:$true] %s18_s27 }
   0x2   :  { %3016 = sst [smem:[#allocation33_spill]] %s2995_s4  ;;  %s22_s30 = sshll.u32 %s3005_s1, 4  ;;  %s23_s30 = int_to_ptr.vmem [resolvable:$true] %s22_s30 }
   0x3   :  { %3017 = sst [smem:[#allocation34_spill]] %s2996_s5  ;;  %s2260_s14 = scalar_lea.vmem %s19_s27, 16 }
   0x4   :  { %3018 = sst [smem:[#allocation35_spill]] %s2997_s6  ;;  %p2261_p0 = scmp.ne.s32.totalorder %s19_s27, %s2260_s14 }
   0x5   :  { %3019 = sst [smem:[#allocation36_spill]] %s2998_s7  ;;  %p2265_p1 = scmp.lt.s32.totalorder %s19_s27, %s19_s27 }
   0x6   :  { %3020 = sst [smem:[#allocation37_spill]] %s3000_s9  ;;  %p2266_p2 = scmp.lt.s32.totalorder %s2260_s14, %s2260_s14 }
   0x7   :  { %3021 = sst [smem:[#allocation38_spill]] %s3002_s11 }
   0x8   :  { %3022 = sst [smem:[#allocation39_spill]] %s3003_s12  ;;  %p2267_p3 = por %p2266_p2, %p2265_p1 }
   0x9   :  { %3023 = sst [smem:[#allocation40_spill]] %s3004_s13 }
   0xa   :  { %p2268_p4 = pnand %p2267_p3, %p2261_p0 }
   0xc   :  { %2271 = shalt.err (!%p2268_p4)  }
   0xd   :  { %s2458_s15 = smov [#allocation11]   ;;  %s2272_s16 = scalar_lea.vmem %s23_s30, 16 }
   0xe   :  { %21 = dma.vmem_to_smem %s19_s27, 16, %s2458_s15, [#allocation10] }
   0xf   :  { %p2273_p5 = scmp.ne.s32.totalorder %s23_s30, %s2272_s16  ;;  %p2277_p6 = scmp.lt.s32.totalorder %s23_s30, %s23_s30 }
  0x10   :  { %p2278_p7 = scmp.lt.s32.totalorder %s2272_s16, %s2272_s16 }
  0x12   :  { %p2279_p8 = por %p2278_p7, %p2277_p6 }
  0x14   :  { %p2280_p9 = pnand %p2279_p8, %p2273_p5 }
  0x16   :  { %2283 = shalt.err (!%p2280_p9)  }
  0x17   :  { %s2459_s0 = smov [#allocation12]   ;;  %s2284_s18 = scalar_lea.hbm %s3006_s2, 16 }
  0x18   :  { %25 = dma.vmem_to_smem %s23_s30, 16, %s2459_s0, [#allocation10] }
  0x19   :  { %p2285_p10 = scmp.ne.s32.totalorder %s3006_s2, %s2284_s18  ;;  %p2288_p11 = scmp.lt.u32.totalorder %s2284_s18, %s3006_s2 }
  0x1b   :  { %p2290_p12 = pnand %p2288_p11, %p2285_p10 }
  0x1d   :  { %2293 = shalt.err (!%p2290_p12)  }
  0x1e   :  { %s2460_s23 = smov [#allocation13]  }
  0x1f   :  { %27 = dma.hbm_to_smem %s3006_s2, 16, %s2460_s23, [#allocation10] }
  0x20   :  { %2436 = dma.done.wait [#allocation10], 48 }
  0x21   :  { %2437 = vsyncadd [#allocation10], 4294967248 }
  0x22   :  { %29 = sfence }
  0x23   :  { %30 = vsyncpa [#allocation15], 0 }
  0x24   :  { %31 = vsyncpa [#allocation18], 0 }
  0x25   :  { %32 = vsyncpa [#allocation21], 0 }
  0x26   :  { %33 = vsyncpa [#allocation16], 0  ;;  %s2565_s26 = smov 0  }
  0x27 LB: > { %3024 = sst [smem:[#allocation28_spill]] %s2456_s26  ;;  %s2571_s27 = sadd.s32 4294967295, %s2456_s26   ;;  %s2456_s26 = sphi %s2565_s26, %s39_s26  }
  0x28   : > { %3025 = sst [smem:[#allocation29_spill]] %s2571_s27  ;;  %p1721_p13 = scmp.ge.s32.totalorder %s2456_s26, 1 }
  0x29   : > { %p285_p0 = scmp.lt.s32.totalorder %s2456_s26, 6  ;;  %p3007_p2 = scmp.eq.s32.totalorder %s2571_s27, 0 }
  0x2a   : > { %s2461_s28 = smov [#allocation17]   ;;  %s2462_s30 = smov [#allocation14]  }
  0x2b   : > { %p2577_p3 = pnand %p1721_p13, %p285_p0  ;;  %s313_s29 = sshll.u32 %s2461_s28, 4  ;;  %s2581_s29 = int_to_ptr.vmem [resolvable:$true] %s313_s29 }
  0x2c   : > { %s300_s14 = sshll.u32 %s2462_s30, 4  ;;  %s2463_s16 = smov [#allocation19]   ;;  %s2585_s14 = int_to_ptr.vmem [resolvable:$true] %s300_s14 }
  0x2d   : > { %s3026_s2 = scalar_select %p2577_p3, 1, 0 }
  0x2e   : > { %p2167_p4 = pneg %p2577_p3  ;;  %s329_s0 = sshll.u32 %s2463_s16, 4  ;;  %s2593_s0 = int_to_ptr.vmem [resolvable:$true] %s329_s0 }
  0x2f   : > { %s3028_s7 = sld [smem:[#allocation36_spill]] }
  0x30   : > { %p2589_p5 = pnand %p3007_p2, %p2167_p4 }
  0x32   : > { %p2603_p7 = pneg %p2589_p5 }
  0x35   : > { %s2294_s18 = scalar_lea.hbm %s3028_s7, 2048 }
  0x36   : > { %p2295_p6 = scmp.ne.s32.totalorder %s3028_s7, %s2294_s18  ;;  %p2301_p10 = scmp.lt.u32.totalorder %s2294_s18, %s3028_s7 }
  0x38   : > { %p2297_p8 = pnand %p2603_p7, %p2295_p6 }
  0x3a   : > { %p2298_p9 = pneg %p2297_p8 }
  0x3c   : > { %p2303_p11 = pnand %p2301_p10, %p2298_p9 }
  0x3e   : > { %2306 = shalt.err (!%p2303_p11)
}
  0x3f   : > { %s2307_s24 = scalar_lea.vmem %s2581_s29, 2048  ;;  %p2315_p4 = scmp.lt.s32.totalorder %s2581_s29, %s2581_s29 }
  0x40   : > { %p2308_p12 = scmp.ne.s32.totalorder %s2581_s29, %s2307_s24  ;;  %p2316_p1 = scmp.lt.s32.totalorder %s2307_s24, %s2307_s24 }
  0x42   : > { %p2310_p13 = pnand %p2308_p12, %p2603_p7  ;;  %p2317_p6 = por %p2316_p1, %p2315_p4 }
  0x44   : > { %p2311_p0 = pneg %p2310_p13 }
  0x46   : > { %p2318_p8 = pnand %p2317_p6, %p2311_p0 }
  0x48   : > { %2321 = shalt.err (!%p2318_p8)
}
  0x49   : > { %s2464_s25 = smov 128   ;;  %s2465_s28 = smov 8  }
  0x4a   : > { %2173 = dma.hbm_to_vmem [thread:$0]  (!%p2589_p5), %s3028_s7, 2048, %s2581_s29, [#allocation18], %s2464_s25, %s2464_s25, %s2465_s28  }
  0x4b   : > { %s3030_s6 = sld [smem:[#allocation35_spill]] }
  0x51   : > { %s2322_s18 = scalar_lea.hbm %s3030_s6, 4096 }
  0x52   : > { %p2323_p1 = scmp.ne.s32.totalorder %s3030_s6, %s2322_s18  ;;  %p2329_p11 = scmp.lt.u32.totalorder %s2322_s18, %s3030_s6 }
  0x54   : > { %p2325_p9 = pnand %p2323_p1, %p2603_p7 }
  0x56   : > { %p2326_p10 = pneg %p2325_p9 }
  0x58   : > { %p2331_p12 = pnand %p2329_p11, %p2326_p10 }
  0x5a   : > { %2334 = shalt.err (!%p2331_p12)
}
  0x5b   : > { %s2335_s29 = scalar_lea.vmem %s2585_s14, 4096  ;;  %p2343_p6 = scmp.lt.s32.totalorder %s2585_s14, %s2585_s14 }
  0x5c   : > { %p2336_p13 = scmp.ne.s32.totalorder %s2585_s14, %s2335_s29  ;;  %p2344_p8 = scmp.lt.s32.totalorder %s2335_s29, %s2335_s29 }
  0x5e   : > { %p2338_p0 = pnand %p2336_p13, %p2603_p7  ;;  %p2345_p1 = por %p2344_p8, %p2343_p6 }
  0x60   : > { %p2339_p4 = pneg %p2338_p0 }
  0x62   : > { %p2346_p9 = pnand %p2345_p1, %p2339_p4 }
  0x64   : > { %2349 = shalt.err (!%p2346_p9)
}
  0x65   : > { %2170 = dma.hbm_to_vmem [thread:$0]  (!%p2589_p5), %s3030_s6, 4096, %s2585_s14, [#allocation15], %s2464_s25, %s2464_s25, %s2465_s28  }
  0x66   : > { %s3031_s9 = sld [smem:[#allocation37_spill]] }
  0x6c   : > { %s2350_s17 = scalar_lea.hbm %s3031_s9, 16384 }
  0x6d   : > { %p2351_p10 = scmp.ne.s32.totalorder %s3031_s9, %s2350_s17  ;;  %p2357_p13 = scmp.lt.u32.totalorder %s2350_s17, %s3031_s9 }
  0x6f   : > { %p2353_p11 = pnand %p2351_p10, %p2603_p7 }
  0x71   : > { %p2354_p12 = pneg %p2353_p11 }
  0x73   : > { %p2359_p0 = pnand %p2357_p13, %p2354_p12 }
  0x75   : > { %2362 = shalt.err (!%p2359_p0)
}
  0x76   : > { %s2363_s14 = scalar_lea.vmem %s2593_s0, 16384  ;;  %p2371_p1 = scmp.lt.s32.totalorder %s2593_s0, %s2593_s0 }
  0x77   : > { %p2364_p4 = scmp.ne.s32.totalorder %s2593_s0, %s2363_s14  ;;  %p2372_p9 = scmp.lt.s32.totalorder %s2363_s14, %s2363_s14 }
  0x79   : > { %p2366_p6 = pnand %p2364_p4, %p2603_p7  ;;  %p2373_p10 = por %p2372_p9, %p2371_p1 }
  0x7b   : > { %p2367_p8 = pneg %p2366_p6 }
  0x7d   : > { %p2374_p11 = pnand %p2373_p10, %p2367_p8 }
  0x7f   : > { %2377 = shalt.err (!%p2374_p11)
}
  0x80   : > { %s2466_s25 = smov 512   ;;  %s2467_s28 = smov 32  }
  0x81   : > { %2176 = dma.hbm_to_vmem [thread:$0]  (!%p2589_p5), %s3031_s9, 16384, %s2593_s0, [#allocation18], %s2466_s25, %s2466_s25, %s2467_s28  }
  0x82   : > { %s2468_s24 = smov [#allocation20]   ;;  %s3032_s11 = sld [smem:[#allocation38_spill]] }
  0x83   : > { %s345_s30 = sshll.u32 %s2468_s24, 4  ;;  %s346_s30 = int_to_ptr.vmem [resolvable:$true] %s345_s30 }
  0x88   : > { %s2378_s17 = scalar_lea.hbm %s3032_s11, 16384 }
  0x89   : > { %p2379_p12 = scmp.ne.s32.totalorder %s3032_s11, %s2378_s17  ;;  %p2385_p4 = scmp.lt.u32.totalorder %s2378_s17, %s3032_s11 }
  0x8b   : > { %p2381_p13 = pnand %p2379_p12, %p2603_p7 }
  0x8d   : > { %p2382_p0 = pneg %p2381_p13 }
  0x8f   : > { %p2387_p6 = pnand %p2385_p4, %p2382_p0 }
  0x91   : > { %2390 = shalt.err (!%p2387_p6)
}
  0x92   : > { %s2391_s0 = scalar_lea.vmem %s346_s30, 16384  ;;  %p2399_p10 = scmp.lt.s32.totalorder %s346_s30, %s346_s30 }
  0x93   : > { %p2392_p8 = scmp.ne.s32.totalorder %s346_s30, %s2391_s0  ;;  %p2400_p11 = scmp.lt.s32.totalorder %s2391_s0, %s2391_s0 }
  0x95   : > { %p2394_p1 = pnand %p2392_p8, %p2603_p7  ;;  %p2401_p2 = por %p2400_p11, %p2399_p10 }
  0x97   : > { %p2395_p9 = pneg %p2394_p1 }
  0x99   : > { %p2402_p3 = pnand %p2401_p2, %p2395_p9 }
  0x9b   : > { %2405 = shalt.err (!%p2402_p3)
}
  0x9c   : > { %2179 = dma.hbm_to_vmem [thread:$0]  (!%p2589_p5), %s3032_s11, 16384, %s346_s30, [#allocation21], %s2466_s25, %s2466_s25, %s2467_s28  }
  0x9d   : > { %p3033_p12 = scmp.ne.s32.totalorder %s3026_s2, 0 }
  0x9f   : > { %378 = sbr.rel (%p3033_p12) target bundleno = 1019 (0x3fb), region = 60 }
  0xa6   : > { %p3034_p13 = scmp.eq.s32.totalorder %s2571_s27, 0 }
  0xa8   : > { %2439 = dma.done.wait (%p3034_p13), [#allocation15], 4096   ;;  %p3035_p7 = pmov %p3034_p13 }
  0xaa   : > { %2441 = vsyncadd (%p3035_p7), [#allocation15], 4294963200  ;;  %p3036_p0 = pmov %p3035_p7 }
  0xac   : > { %2443 = dma.done.wait (%p3036_p0), [#allocation18], 18432   ;;  %p3037_p2 = pmov %p3036_p0 }
  0xad   : > { %p3038_p3 = pmov %p3036_p0 }
  0xae   : > { %2445 = vsyncadd (%p3037_p2), [#allocation18], 4294948864 }
  0xaf   : > { %2447 = dma.done.wait (%p3038_p3), [#allocation21], 16384   ;;  %p3039_p5 = pmov %p3036_p0 }
  0xb0   : > { %p426_p4 = scmp.lt.s32.totalorder %s2571_s27, 4  ;;  %s3040_s4 = sld [smem:[#allocation33_spill]] }
  0xb1   : > { %2449 = vsyncadd (%p3039_p5), [#allocation21], 4294950912  ;;  %s3041_s5 = sld [smem:[#allocation34_spill]]  ;;  %p3042_p6 = scmp.ne.s32.totalorder %s2571_s27, 0 }
  0xb2   : > { %s427_s2 = scalar_select %p426_p4, %s2571_s27, 4 }
  0xb3   : > { %437 = sbr.rel (%p3042_p6) target bundleno = 188 (0xbc), region = 80  ;;  %s3043_s3 = sld [smem:[#allocation32_spill]] (!%p3042_p6)  ;;  %v2469_v1 = vmov (!%p3042_p6), 0.0  }
  0xb4   : > { %s1732_s15 = sshll.u32 %s427_s2, 3  ;;  %438 = vst [vmem:[#allocation2] sm:$0xff] (!%p3042_p6), %v2469_v1  ;;  %440 = vst [vmem:[#allocation2 + $0x10] sm:$0xff] (!%p3042_p6), %v2469_v1 }
  0xb5   : > { %441 = vst [vmem:[#allocation3] sm:$0xff] (!%p3042_p6), %v2469_v1  ;;  %442 = vst [vmem:[#allocation3 + $0x8] sm:$0xff] (!%p3042_p6), %v2469_v1 }
  0xb6   : > { %s2707_s28 = scalar_lea.vmem %s3040_s4, %s1732_s15  ;;  %443 = vst [vmem:[#allocation3 + $0x10] sm:$0xff] (!%p3042_p6), %v2469_v1  ;;  %444 = vst [vmem:[#allocation4] sm:$0xff] (!%p3042_p6), %v2469_v1 }
  0xb7   : > { %s2712_s30 = scalar_lea.vmem %s3041_s5, %s1732_s15  ;;  %445 = vst [vmem:[#allocation4 + $0x8] sm:$0xff] (!%p3042_p6), %v2469_v1  ;;  %446 = vst [vmem:[#allocation4 + $0x10] sm:$0xff] (!%p3042_p6), %v2469_v1 }
  0xb8   : > { %447 = vst [vmem:[#allocation5] sm:$0xff] (!%p3042_p6), %v2469_v1  ;;  %448 = vst [vmem:[#allocation5 + $0x8] sm:$0xff] (!%p3042_p6), %v2469_v1 }
  0xb9   : > { %v453_v0 = vld [vmem:[%s3043_s3] sm:$0xff] (!%p3042_p6)  ;;  %449 = vst [vmem:[#allocation5 + $0x10] sm:$0xff] (!%p3042_p6), %v2469_v1  ;;  %450 = vst [vmem:[#allocation22] sm:$0xff] (!%p3042_p6), %v2469_v1 }
  0xba   : > { %451 = vst [vmem:[#allocation22 + $0x8] sm:$0xff] %v2469_v1  ;;  %452 = vst [vmem:[#allocation22 + $0x10] sm:$0xff] %v2469_v1 }
  0xbb   : > { %454 = vst [vmem:[#allocation2 + $0x8] sm:$0xff] %v453_v0 }
  0xbc PF: > { %v613_v2 = vld [vmem:[#allocation14 + $0x80] sm:$0xff]  ;;  %v614_v3 = vld [vmem:[#allocation14 + $0x88] sm:$0xff]  ;;  %s2720_s17 = sshll.u32 %s2571_s27, 3  ;;  %v615_v7 = vld [vmem:[#allocation14 + $0x90] sm:$0xff]  ;;  %v2470_v9 = vmov 0.0|0.0   ;;  %vm2471_vm0 = vmmov 0  }
  0xbd   : > { %v597_v4 = vld [vmem:[#allocation14] sm:$0xff]  ;;  %v1835_v5 = vpack.c.bf16 %v614_v3, %v613_v2  ;;  %v598_v6 = vld [vmem:[#allocation14 + $0x8] sm:$0xff]  ;;  %v616_v8 = vld [vmem:[#allocation14 + $0x98] sm:$0xff]  ;;  %s2723_s18 = sld [smem:[#allocation12 + %s2720_s17]]  ;;  %s2726_s19 = sadd.s32 1, %s2720_s17  ;;  %1867 = vmatprep.subr.bf16.mxu1 %v2470_v9 }
  0xbe   : > { %v1837_v10 = vpack.c.bf16 %v598_v6, %v597_v4  ;;  %v1839_v11 = vpack.c.bf16 %v616_v8, %v615_v7  ;;  %v599_v12 = vld [vmem:[#allocation14 + $0x10] sm:$0xff]  ;;  %v600_v13 = vld [vmem:[#allocation14 + $0x18] sm:$0xff]  ;;  %v617_v14 = vld [vmem:[#allocation14 + $0xa0] sm:$0xff]  ;;  %s2730_s20 = sld [smem:[#allocation12 + %s2726_s19]]  ;;  %s2733_s22 = sadd.s32 2, %s2720_s17 }
  0xbf   : > { %1836 = vmatprep.subr.bf16.mxu0 %v1835_v5  ;;  %v618_v15 = vld [vmem:[#allocation14 + $0xa8] sm:$0xff]  ;;  %s2736_s0 = sld [smem:[#allocation12 + %s2733_s22]]  ;;  %s2739_s14 = sadd.s32 3, %s2720_s17  ;;  %v1841_v16 = vpack.c.bf16 %v600_v13, %v599_v12  ;;  %v601_v18 = vld [vmem:[#allocation14 + $0x20] sm:$0xff]  ;;  %v619_v20 = vld [vmem:[#allocation14 + $0xb0] sm:$0xff] }
  0xc0   : > { %1838 = vmatpush3.bf16.msra.mxu0 %v1837_v10  ;;  %s2742_s23 = sld [smem:[#allocation12 + %s2739_s14]]  ;;  %s2745_s2 = sadd.s32 4, %s2720_s17  ;;  %v1843_v17 = vpack.c.bf16 %v618_v15, %v617_v14  ;;  %v602_v19 = vld [vmem:[#allocation14 + $0x28] sm:$0xff]  ;;  %v620_v21 = vld [vmem:[#allocation14 + $0xb8] sm:$0xff]  ;;  %v603_v24 = vld [vmem:[#allocation14 + $0x30] sm:$0xff] }
  0xc1   : > { %3044 = sst [smem:[#allocation30_spill]] %s2745_s2  ;;  %1840 = vmatprep.subr.bf16.mxu0 %v1839_v11  ;;  %s2751_s21 = sadd.s32 5, %s2720_s17  ;;  %v1845_v22 = vpack.c.bf16 %v602_v19, %v601_v18  ;;  %v1847_v23 = vpack.c.bf16 %v620_v21, %v619_v20  ;;  %v604_v25 = vld [vmem:[#allocation14 + $0x38] sm:$0xff]  ;;  %v621_v26 = vld [vmem:[#allocation14 + $0xc0] sm:$0xff]  ;;  %v622_v27 = vld [vmem:[#allocation14 + $0xc8] sm:$0xff] }
  0xc2   : > { %s2748_s15 = sld [smem:[#allocation12 + %s2745_s2]]  ;;  %s2758_s24 = sadd.s32 6, %s2720_s17  ;;  %v605_v29 = vld [vmem:[#allocation14 + $0x40] sm:$0xff]  ;;  %v1849_v33 = vpack.c.bf16 %v604_v25, %v603_v24  ;;  %v701_v35 = vld [vmem:[#allocation17 + $0x8] sm:$0xff]  ;;  %v702_v36 = vld [vmem:[#allocation17 + $0x10] sm:$0xff]  ;;  %v1851_v37 = vpack.c.bf16 %v622_v27, %v621_v26 }
  0xc3   : > { %3045 = sst [smem:[#allocation31_spill]] %s2751_s21  ;;  %s464_s29 = scalar_lea.vmem [#allocation4], %s2723_s18  ;;  %v700_v34 = vld [vmem:[#allocation17] sm:$0xff]  ;;  %v606_v38 = vld [vmem:[#allocation14 + $0x48] sm:$0xff]  ;;  %v703_v41 = vld [vmem:[#allocation17 + $0x18] sm:$0xff] }
  0xc4   : > { %s2754_s25 = sld [smem:[#allocation12 + %s2751_s21]]  ;;  %1842 = vmatpush3.bf16.msra.mxu0 %v1841_v16  ;;  %v465_v28 = vld [vmem:[%s464_s29] sm:$0x1]  ;;  %s481_s16 = scalar_lea.vmem [#allocation4], %s2730_s20  ;;  %v1868_v40 = vpack.c.bf16 %v701_v35, %v700_v34  ;;  %v623_v42 = vld [vmem:[#allocation14 + $0xd0] sm:$0xff]  ;;  %v624_v43 = vld [vmem:[#allocation14 + $0xd8] sm:$0xff]  ;;  %v1871_v45 = vpack.c.bf16 %v703_v41, %v702_v36  ;;  %v1853_v46 = vpack.c.bf16 %v606_v38, %v605_v29 }
  0xc5   : > { %1844 = vmatprep.subr.bf16.mxu0 %v1843_v17  ;;  %467 = vst [vmem:[#allocation6 + $0x8] sm:$0x1] %v465_v28  ;;  %v482_v30 = vld [vmem:[%s481_s16] sm:$0x1]  ;;  %s498_s1 = scalar_lea.vmem [#allocation4], %s2736_s0  ;;  %s2766_s16 = sld [smem:[#allocation12 + %s2758_s24]]  ;;  %v1855_v49 = vpack.c.bf16 %v624_v43, %v623_v42 }
  0xc6   : > { %v499_v31 = vld [vmem:[%s498_s1] sm:$0x1]  ;;  %s515_s3 = scalar_lea.vmem [#allocation4], %s2742_s23  ;;  %469 = vst [vmem:[#allocation8 + $0x8] sm:$0x1] %v465_v28  ;;  %s2769_s1 = sadd.s32 7, %s2720_s17  ;;  %1869 = vmatpush3.bf16.msra.mxu1 %v1868_v40 }
  0xc7   : > { %v516_v32 = vld [vmem:[%s515_s3] sm:$0x1]  ;;  %484 = vst [vmem:[#allocation6 + $0x9] sm:$0x1] %v482_v30  ;;  %501 = vst [vmem:[#allocation6 + $0xa] sm:$0x1] %v499_v31  ;;  %1870 = vmatprep.subr.bf16.mxu1 %v2470_v9 }
  0xc8   : > { %1846 = vmatpush3.bf16.msra.mxu0 %v1845_v22  ;;  %518 = vst [vmem:[#allocation6 + $0xb] sm:$0x1] %v516_v32  ;;  %486 = vst [vmem:[#allocation8 + $0x9] sm:$0x1] %v482_v30  ;;  %s532_s3 = scalar_lea.vmem [#allocation4], %s2748_s15  ;;  %s2772_s4 = sld [smem:[#allocation12 + %s2769_s1]] }
  0xc9   : > { %503 = vst [vmem:[#allocation8 + $0xa] sm:$0x1] %v499_v31  ;;  %520 = vst [vmem:[#allocation8 + $0xb] sm:$0x1] %v516_v32  ;;  %1848 = vmatprep.subr.bf16.mxu0 %v1847_v23  ;;  %v533_v39 = vld [vmem:[%s532_s3] sm:$0x1] }
  0xca   : > { %535 = vst [vmem:[#allocation6 + $0xc] sm:$0x1] %v533_v39  ;;  %s549_s29 = scalar_lea.vmem [#allocation4], %s2754_s25  ;;  %537 = vst [vmem:[#allocation8 + $0xc] sm:$0x1] %v533_v39  ;;  %v704_v47 = vld [vmem:[#allocation17 + $0x20] sm:$0xff]  ;;  %1872 = vmatpush3.bf16.msra.mxu1 %v1871_v45 }
  0xcb   : > { %v550_v44 = vld [vmem:[%s549_s29] sm:$0x1]  ;;  %v705_v48 = vld [vmem:[#allocation17 + $0x28] sm:$0xff]  ;;  %v607_v50 = vld [vmem:[#allocation14 + $0x50] sm:$0xff]  ;;  %1873 = vmatprep.subr.bf16.mxu1 %v2470_v9  ;;  %s566_s3 = scalar_lea.vmem [#allocation4], %s2766_s16  ;;  %s2783_s5 = sld [smem:[#allocation11 + %s2726_s19]] }
  0xcc   : > { %552 = vst [vmem:[#allocation6 + $0xd] sm:$0x1] %v550_v44  ;;  %554 = vst [vmem:[#allocation8 + $0xd] sm:$0x1] %v550_v44  ;;  %1850 = vmatpush3.bf16.msra.mxu0 %v1849_v33  ;;  %v608_v51 = vld [vmem:[#allocation14 + $0x58] sm:$0xff]  ;;  %v625_v52 = vld [vmem:[#allocation14 + $0xe0] sm:$0xff]  ;;  %v1874_v54 = vpack.c.bf16 %v705_v48, %v704_v47 }
  0xcd   : > { %1852 = vmatprep.subr.bf16.mxu0 %v1851_v37  ;;  %v626_v53 = vld [vmem:[#allocation14 + $0xe8] sm:$0xff]  ;;  %v1857_v55 = vpack.c.bf16 %v608_v51, %v607_v50  ;;  %v706_v56 = vld [vmem:[#allocation17 + $0x30] sm:$0xff]  ;;  %v707_v57 = vld [vmem:[#allocation17 + $0x38] sm:$0xff]  ;;  %s2792_s9 = sld [smem:[#allocation11 + %s2739_s14]]  ;;  %v2472_v29 = vmov 0.0   ;;  %v2473_v34 = vmov 0  }
  0xce   : > { %v1859_v58 = vpack.c.bf16 %v626_v53, %v625_v52  ;;  %v609_v59 = vld [vmem:[#allocation14 + $0x60] sm:$0xff]  ;;  %v610_v60 = vld [vmem:[#allocation14 + $0x68] sm:$0xff]  ;;  %v627_v62 = vld [vmem:[#allocation14 + $0xf0] sm:$0xff]  ;;  %s583_s29 = scalar_lea.vmem [#allocation4], %s2772_s4  ;;  %1875 = vmatpush3.bf16.msra.mxu1 %v1874_v54  ;;  %v1877_v1 = vpack.c.bf16 %v707_v57, %v706_v56  ;;  %s2796_s26 = sld [smem:[#allocation11 + %s2745_s2]]  ;;  %1832 = vmatprep.mubr.msk.f32.mxu1 %vm2471_vm0, %v2472_v29 }
  0xcf   : > { %v567_v61 = vld [vmem:[%s566_s3] sm:$0x1]  ;;  %v628_v63 = vld [vmem:[#allocation14 + $0xf8] sm:$0xff]  ;;  %v1861_v2 = vpack.c.bf16 %v610_v60, %v609_v59  ;;  %1876 = vmatprep.subr.bf16.mxu1 %v2470_v9  ;;  %v611_v4 = vld [vmem:[#allocation14 + $0x70] sm:$0xff]  ;;  %s2780_s3 = sld [smem:[#allocation11 + %s2720_s17]]  ;;  %2217 = vset.pattern.permute.xlu0 %v2473_v34 }
  0xd0   : > { %1854 = vmatpush3.bf16.msra.mxu0 %v1853_v46  ;;  %569 = vst [vmem:[#allocation6 + $0xe] sm:$0x1] %v567_v61  ;;  %v584_v0 = vld [vmem:[%s583_s29] sm:$0x1]  ;;  %571 = vst [vmem:[#allocation8 + $0xe] sm:$0x1] %v567_v61  ;;  %v1863_v3 = vpack.c.bf16 %v628_v63, %v627_v62 }
  0xd1   : > { %1856 = vmatprep.subr.bf16.mxu0 %v1855_v49  ;;  %586 = vst [vmem:[#allocation6 + $0xf] sm:$0x1] %v584_v0  ;;  %588 = vst [vmem:[#allocation8 + $0xf] sm:$0x1] %v584_v0  ;;  %v612_v5 = vld [vmem:[#allocation14 + $0x78] sm:$0xff]  ;;  %s2786_s29 = sld [smem:[#allocation11 + %s2733_s22]] }
  0xd2   : > { %1878 = vmatpush3.bf16.msra.mxu1 %v1877_v1  ;;  %v1865_v6 = vpack.c.bf16 %v612_v5, %v611_v4  ;;  %s479_s7 = scalar_lea.vmem [#allocation2], %s2783_s5  ;;  %s2799_s13 = sld [smem:[#allocation11 + %s2751_s21]]  ;;  %v708_v18 = vld [vmem:[#allocation17 + $0x40] sm:$0xff]  ;;  %v709_v19 = vld [vmem:[#allocation17 + $0x48] sm:$0xff]  ;;  %v710_v21 = vld [vmem:[#allocation17 + $0x50] sm:$0xff] }
  0xd3   : > { %1879 = vmatprep.subr.bf16.mxu1 %v2470_v9  ;;  %v480_v10 = vld [vmem:[%s479_s7] sm:$0x1]  ;;  %s2802_s27 = sld [smem:[#allocation11 + %s2758_s24]]  ;;  %s513_s7 = scalar_lea.vmem [#allocation2], %s2792_s9  ;;  %v1880_v20 = vpack.c.bf16 %v709_v19, %v708_v18  ;;  %v711_v22 = vld [vmem:[#allocation17 + $0x58] sm:$0xff]  ;;  %v713_v25 = vld [vmem:[#allocation17 + $0x68] sm:$0xff] }
  0xd4   : > { %1858 = vmatpush3.bf16.msra.mxu0 %v1857_v55  ;;  %483 = vst [vmem:[#allocation6 + $0x1] sm:$0x1] %v480_v10  ;;  %485 = vst [vmem:[#allocation7 + $0x9] sm:$0x1] %v480_v10  ;;  %v514_v12 = vld [vmem:[%s513_s7] sm:$0x1]  ;;  %v1883_v23 = vpack.c.bf16 %v711_v22, %v710_v21 }
  0xd5   : > { %1860 = vmatprep.subr.bf16.mxu0 %v1859_v58  ;;  %s462_s6 = scalar_lea.vmem [#allocation2], %s2780_s3  ;;  %517 = vst [vmem:[#allocation6 + $0x3] sm:$0x1] %v514_v12  ;;  %519 = vst [vmem:[#allocation7 + $0xb] sm:$0x1] %v514_v12  ;;  %v712_v24 = vld [vmem:[#allocation17 + $0x60] sm:$0xff] }
  0xd6   : > { %v463_v8 = vld [vmem:[%s462_s6] sm:$0x1]  ;;  %s2805_s6 = sld [smem:[#allocation11 + %s2769_s1]]  ;;  %1881 = vmatpush3.bf16.msra.mxu1 %v1880_v20  ;;  %v1886_v26 = vpack.c.bf16 %v713_v25, %v712_v24  ;;  %v714_v27 = vld [vmem:[#allocation17 + $0x70] sm:$0xff]  ;;  %v715_v28 = vld [vmem:[#allocation17 + $0x78] sm:$0xff]  ;;  %s487_s7 = scalar_lea.vmem [#allocation3], %s2783_s5 }
  0xd7   : > { %466 = vst [vmem:[#allocation6] sm:$0x1] %v463_v8  ;;  %s496_s11 = scalar_lea.vmem [#allocation2], %s2786_s29  ;;  %468 = vst [vmem:[#allocation7 + $0x8] sm:$0x1] %v463_v8  ;;  %1882 = vmatprep.subr.bf16.mxu1 %v2470_v9  ;;  %v1889_v30 = vpack.c.bf16 %v715_v28, %v714_v27  ;;  %v456_v31 = vld [vmem:[%s2712_s30] sm:$0xff] }
  0xd8   : > { %1862 = vmatpush3.bf16.msra.mxu0 %v1861_v2  ;;  %v596_v7 = vld [vmem:[#allocation6 + $0x8] sm:$0xff]  ;;  %v497_v11 = vld [vmem:[%s496_s11] sm:$0x1]  ;;  %s530_s11 = scalar_lea.vmem [#allocation2], %s2796_s26  ;;  %s547_s12 = scalar_lea.vmem [#allocation2], %s2799_s13  ;;  %797 = vperm.xlu0 %2217, %v456_v31   ;;  %v828_v49 = vld [vmem:[#allocation19 + $0x18] sm:$0xff] }
  0xd9   : > { %1864 = vmatprep.subr.bf16.mxu0 %v1863_v3  ;;  %693 = vmatprep.mubr.f32.mxu0 %v596_v7  ;;  %500 = vst [vmem:[#allocation6 + $0x2] sm:$0x1] %v497_v11  ;;  %502 = vst [vmem:[#allocation7 + $0xa] sm:$0x1] %v497_v11  ;;  %v531_v13 = vld [vmem:[%s530_s11] sm:$0x1] }
  0xda   : > { %v548_v14 = vld [vmem:[%s547_s12] sm:$0x1]  ;;  %534 = vst [vmem:[#allocation6 + $0x4] sm:$0x1] %v531_v13  ;;  %s564_s21 = scalar_lea.vmem [#allocation2], %s2802_s27  ;;  %1884 = vmatpush3.bf16.msra.mxu1 %v1883_v23  ;;  %v826_v32 = vld [vmem:[#allocation19 + $0x8] sm:$0xff] }
  0xdb   : > { %551 = vst [vmem:[#allocation6 + $0x5] sm:$0x1] %v548_v14  ;;  %v565_v15 = vld [vmem:[%s564_s21] sm:$0x1]  ;;  %536 = vst [vmem:[#allocation7 + $0xc] sm:$0x1] %v531_v13  ;;  %1885 = vmatprep.subr.bf16.mxu1 %v2470_v9 }
  0xdc   : > { %1866 = vmatpush3.bf16.msra.mxu0 %v1865_v6  ;;  %s581_s2 = scalar_lea.vmem [#allocation2], %s2805_s6  ;;  %553 = vst [vmem:[#allocation7 + $0xd] sm:$0x1] %v548_v14  ;;  %568 = vst [vmem:[#allocation6 + $0x6] sm:$0x1] %v565_v15  ;;  %v830_v33 = vld [vmem:[#allocation19 + $0x28] sm:$0xff] }
  0xdd   : > { %v582_v16 = vld [vmem:[%s581_s2] sm:$0x1]  ;;  %570 = vst [vmem:[#allocation7 + $0xe] sm:$0x1] %v565_v15  ;;  %v1891_v35 = vpack.c.bf16 %v830_v33, %v826_v32  ;;  %v834_v38 = vld [vmem:[#allocation19 + $0x48] sm:$0xff]  ;;  %v832_v52 = vld [vmem:[#allocation19 + $0x38] sm:$0xff] }
  0xde   : > { %585 = vst [vmem:[#allocation6 + $0x7] sm:$0x1] %v582_v16  ;;  %587 = vst [vmem:[#allocation7 + $0xf] sm:$0x1] %v582_v16  ;;  %1887 = vmatpush3.bf16.msra.mxu1 %v1886_v26  ;;  %v825_v36 = vld [vmem:[#allocation19] sm:$0xff]  ;;  %v838_v40 = vld [vmem:[#allocation19 + $0x68] sm:$0xff]  ;;  %v1955_v53 = vpack.c.bf16 %v832_v52, %v828_v49 }
  0xdf   : > { %1888 = vmatprep.subr.bf16.mxu1 %v2470_v9  ;;  %v829_v37 = vld [vmem:[#allocation19 + $0x20] sm:$0xff]  ;;  %1892 = vmatprep.subr.bf16.mxu0 %v1891_v35  ;;  %v1895_v43 = vpack.c.bf16 %v838_v40, %v834_v38  ;;  %v842_v44 = vld [vmem:[#allocation19 + $0x88] sm:$0xff]  ;;  %s470_s21 = scalar_lea.vmem [#allocation3], %s2780_s3  ;;  %s504_s11 = scalar_lea.vmem [#allocation3], %s2786_s29 }
  0xe0   : > { %v1893_v39 = vpack.c.bf16 %v829_v37, %v825_v36  ;;  %v833_v41 = vld [vmem:[#allocation19 + $0x40] sm:$0xff]  ;;  %v846_v45 = vld [vmem:[#allocation19 + $0xa8] sm:$0xff]  ;;  %s521_s12 = scalar_lea.vmem [#allocation3], %s2792_s9  ;;  %s555_s3 = scalar_lea.vmem [#allocation3], %s2799_s13 }
  0xe1   : > { %v837_v42 = vld [vmem:[#allocation19 + $0x60] sm:$0xff]  ;;  %v1899_v46 = vpack.c.bf16 %v846_v45, %v842_v44  ;;  %v850_v50 = vld [vmem:[#allocation19 + $0xc8] sm:$0xff]  ;;  %s572_s5 = scalar_lea.vmem [#allocation3], %s2802_s27  ;;  %s589_s30 = scalar_lea.vmem [#allocation3], %s2805_s6 }
  0xe2   : > { %1890 = vmatpush3.bf16.msra.mxu1 %v1889_v30  ;;  %v1897_v9 = vpack.c.bf16 %v837_v42, %v833_v41  ;;  %v841_v47 = vld [vmem:[#allocation19 + $0x80] sm:$0xff]  ;;  %v854_v51 = vld [vmem:[#allocation19 + $0xe8] sm:$0xff]  ;;  %s473_s9 = scalar_lea.vmem [#allocation5], %s2723_s18  ;;  %s490_s13 = scalar_lea.vmem [#allocation5], %s2730_s20 }
  0xe3   : > { %v845_v48 = vld [vmem:[#allocation19 + $0xa0] sm:$0xff]  ;;  %v1903_v55 = vpack.c.bf16 %v854_v51, %v850_v50  ;;  %1956 = vmatprep.subr.bf16.mxu1 %v1955_v53  ;;  %v858_v58 = vld [vmem:[#allocation19 + $0x108] sm:$0xff]  ;;  %s524_s27 = scalar_lea.vmem [#allocation5], %s2742_s23  ;;  %s541_s29 = scalar_lea.vmem [#allocation5], %s2748_s15 }
  0xe4   : > { %v1901_v54 = vpack.c.bf16 %v845_v48, %v841_v47  ;;  %v849_v56 = vld [vmem:[#allocation19 + $0xc0] sm:$0xff]  ;;  %v862_v59 = vld [vmem:[#allocation19 + $0x128] sm:$0xff]  ;;  %s558_s6 = scalar_lea.vmem [#allocation5], %s2754_s25  ;;  %s575_s18 = scalar_lea.vmem [#allocation5], %s2766_s16 }
  0xe5   : > { %v595_v17 = vld [vmem:[#allocation6] sm:$0xff]  ;;  %v1907_v61 = vpack.c.bf16 %v862_v59, %v858_v58  ;;  %v866_v0 = vld [vmem:[#allocation19 + $0x148] sm:$0xff]  ;;  %v2816_v50 = vld [vmem:[#allocation7 + $0x8] sm:$0xff]  ;;  %s592_s20 = scalar_lea.vmem [#allocation5], %s2772_s4  ;;  %s3046_s4 = sld [smem:[#allocation30_spill]] }
  0xe6   : > { %694 = vmatmul.mubr.f32.vlgmr.msra.gmra.mrb[0].mxu0 %v595_v17  ;;  %v853_v57 = vld [vmem:[#allocation19 + $0xe0] sm:$0xff]  ;;  %v870_v1 = vld [vmem:[#allocation19 + $0x168] sm:$0xff]  ;;  %s2884_s23 = sld [smem:[#allocation13 + %s2720_s17]] }
  0xe7   : > { %1894 = vmatpush1.bf16.msra.mxu0 %v1893_v39  ;;  %v1905_v60 = vpack.c.bf16 %v853_v57, %v849_v56  ;;  %v857_v62 = vld [vmem:[#allocation19 + $0x100] sm:$0xff]  ;;  %v1911_v3 = vpack.c.bf16 %v870_v1, %v866_v0  ;;  %v874_v6 = vld [vmem:[#allocation19 + $0x188] sm:$0xff]  ;;  %1039 = vmatprep.mubr.f32.mxu0 %v2816_v50  ;;  %s2887_s15 = sld [smem:[#allocation13 + %s2726_s19]] }
  0xe8   : > { %1896 = vmatprep.subr.bf16.mxu0 %v1895_v43  ;;  %v861_v63 = vld [vmem:[#allocation19 + $0x120] sm:$0xff]  ;;  %v878_v7 = vld [vmem:[#allocation19 + $0x1a8] sm:$0xff]  ;;  %s2890_s25 = sld [smem:[#allocation13 + %s2733_s22]] }
  0xe9   : > { %v1909_v2 = vpack.c.bf16 %v861_v63, %v857_v62  ;;  %v865_v4 = vld [vmem:[#allocation19 + $0x140] sm:$0xff]  ;;  %v1915_v10 = vpack.c.bf16 %v878_v7, %v874_v6  ;;  %v882_v13 = vld [vmem:[#allocation19 + $0x1c8] sm:$0xff]  ;;  %s2893_s16 = sld [smem:[#allocation13 + %s2739_s14]] }
  0xea   : > { %v869_v5 = vld [vmem:[#allocation19 + $0x160] sm:$0xff]  ;;  %v886_v14 = vld [vmem:[#allocation19 + $0x1e8] sm:$0xff]  ;;  %s2902_s17 = sld [smem:[#allocation13 + %s2758_s24]] }
  0xeb   : > { %1898 = vmatpush1.bf16.msra.mxu0 %v1897_v9  ;;  %v1913_v8 = vpack.c.bf16 %v869_v5, %v865_v4  ;;  %v873_v11 = vld [vmem:[#allocation19 + $0x180] sm:$0xff]  ;;  %v1919_v16 = vpack.c.bf16 %v886_v14, %v882_v13  ;;  %v890_v19 = vld [vmem:[#allocation19 + $0x208] sm:$0xff]  ;;  %s2896_s2 = sld [smem:[#allocation13 + %s3046_s4]] }
  0xec   : > { %1900 = vmatprep.subr.bf16.mxu0 %v1899_v46  ;;  %v877_v12 = vld [vmem:[#allocation19 + $0x1a0] sm:$0xff]  ;;  %v894_v20 = vld [vmem:[#allocation19 + $0x228] sm:$0xff]  ;;  %s2905_s19 = sld [smem:[#allocation13 + %s2769_s1]]  ;;  %s1464_s22 = scalar_lea.vmem [#allocation3], %s2884_s23 }
  0xed   : > { %v1917_v15 = vpack.c.bf16 %v877_v12, %v873_v11  ;;  %v881_v17 = vld [vmem:[#allocation19 + $0x1c0] sm:$0xff]  ;;  %v1923_v22 = vpack.c.bf16 %v894_v20, %v890_v19  ;;  %v898_v25 = vld [vmem:[#allocation19 + $0x248] sm:$0xff]  ;;  %s1475_s14 = scalar_lea.vmem [#allocation3], %s2887_s15  ;;  %s1468_s4 = scalar_lea.vmem [#allocation5], %s2884_s23 }
  0xee   : > { %v885_v18 = vld [vmem:[#allocation19 + $0x1e0] sm:$0xff]  ;;  %v902_v26 = vld [vmem:[#allocation19 + $0x268] sm:$0xff] }
  0xef   : > { %1902 = vmatpush1.bf16.msra.mxu0 %v1901_v54  ;;  %v1921_v21 = vpack.c.bf16 %v885_v18, %v881_v17  ;;  %v889_v23 = vld [vmem:[#allocation19 + $0x200] sm:$0xff]  ;;  %v1927_v28 = vpack.c.bf16 %v902_v26, %v898_v25  ;;  %v906_v31 = vld [vmem:[#allocation19 + $0x288] sm:$0xff]  ;;  %s1497_s24 = scalar_lea.vmem [#allocation3], %s2893_s16 }
  0xf0   : > { %1904 = vmatprep.subr.bf16.mxu0 %v1903_v55  ;;  %v893_v24 = vld [vmem:[#allocation19 + $0x220] sm:$0xff]  ;;  %v910_v32 = vld [vmem:[#allocation19 + $0x2a8] sm:$0xff] }
  0xf1   : > { %v1925_v27 = vpack.c.bf16 %v893_v24, %v889_v23  ;;  %v897_v29 = vld [vmem:[#allocation19 + $0x240] sm:$0xff]  ;;  %v1931_v34 = vpack.c.bf16 %v910_v32, %v906_v31  ;;  %v914_v37 = vld [vmem:[#allocation19 + $0x2c8] sm:$0xff]  ;;  %v836_v23 = vld [vmem:[#allocation19 + $0x58] sm:$0xff]  ;;  %s1508_s1 = scalar_lea.vmem [#allocation3], %s2896_s2 }
  0xf2   : > { %v901_v30 = vld [vmem:[#allocation19 + $0x260] sm:$0xff]  ;;  %v918_v38 = vld [vmem:[#allocation19 + $0x2e8] sm:$0xff]  ;;  %v840_v24 = vld [vmem:[#allocation19 + $0x78] sm:$0xff] }
  0xf3   : > { %1906 = vmatpush1.bf16.msra.mxu0 %v1905_v60  ;;  %v1929_v33 = vpack.c.bf16 %v901_v30, %v897_v29  ;;  %v905_v35 = vld [vmem:[#allocation19 + $0x280] sm:$0xff]  ;;  %v1935_v40 = vpack.c.bf16 %v918_v38, %v914_v37  ;;  %v922_v43 = vld [vmem:[#allocation19 + $0x308] sm:$0xff]  ;;  %v1959_v26 = vpack.c.bf16 %v840_v24, %v836_v23  ;;  %v844_v30 = vld [vmem:[#allocation19 + $0x98] sm:$0xff] }
  0xf4   : > { %1908 = vmatprep.subr.bf16.mxu0 %v1907_v61  ;;  %v909_v36 = vld [vmem:[#allocation19 + $0x2a0] sm:$0xff]  ;;  %v926_v44 = vld [vmem:[#allocation19 + $0x328] sm:$0xff]  ;;  %v848_v31 = vld [vmem:[#allocation19 + $0xb8] sm:$0xff] }
  0xf5   : > { %v1933_v39 = vpack.c.bf16 %v909_v36, %v905_v35  ;;  %v913_v41 = vld [vmem:[#allocation19 + $0x2c0] sm:$0xff]  ;;  %v1939_v9 = vpack.c.bf16 %v926_v44, %v922_v43  ;;  %v930_v48 = vld [vmem:[#allocation19 + $0x348] sm:$0xff]  ;;  %v847_v35 = vld [vmem:[#allocation19 + $0xb0] sm:$0xff] }
  0xf6   : > { %v917_v42 = vld [vmem:[#allocation19 + $0x2e0] sm:$0xff]  ;;  %v934_v49 = vld [vmem:[#allocation19 + $0x368] sm:$0xff]  ;;  %v852_v36 = vld [vmem:[#allocation19 + $0xd8] sm:$0xff] }
  0xf7   : > { %1910 = vmatpush1.bf16.msra.mxu0 %v1909_v2  ;;  %v1937_v45 = vpack.c.bf16 %v917_v42, %v913_v41  ;;  %v921_v46 = vld [vmem:[#allocation19 + $0x300] sm:$0xff]  ;;  %v1943_v52 = vpack.c.bf16 %v934_v49, %v930_v48  ;;  %v938_v56 = vld [vmem:[#allocation19 + $0x388] sm:$0xff]  ;;  %v856_v37 = vld [vmem:[#allocation19 + $0xf8] sm:$0xff] }
  0xf8   : > { %1912 = vmatprep.subr.bf16.mxu0 %v1911_v3  ;;  %v925_v47 = vld [vmem:[#allocation19 + $0x320] sm:$0xff]  ;;  %v942_v57 = vld [vmem:[#allocation19 + $0x3a8] sm:$0xff]  ;;  %v855_v41 = vld [vmem:[#allocation19 + $0xf0] sm:$0xff] }
  0xf9   : > { %v1941_v51 = vpack.c.bf16 %v925_v47, %v921_v46  ;;  %v929_v53 = vld [vmem:[#allocation19 + $0x340] sm:$0xff]  ;;  %v1947_v59 = vpack.c.bf16 %v942_v57, %v938_v56  ;;  %v946_v62 = vld [vmem:[#allocation19 + $0x3c8] sm:$0xff]  ;;  %v860_v42 = vld [vmem:[#allocation19 + $0x118] sm:$0xff] }
  0xfa   : > { %v933_v54 = vld [vmem:[#allocation19 + $0x360] sm:$0xff]  ;;  %v950_v63 = vld [vmem:[#allocation19 + $0x3e8] sm:$0xff]  ;;  %v864_v43 = vld [vmem:[#allocation19 + $0x138] sm:$0xff] }
  0xfb   : > { %1914 = vmatpush1.bf16.msra.mxu0 %v1913_v8  ;;  %v2820_v55 = vld [vmem:[%s2707_s28] sm:$0xff]  ;;  %v1945_v58 = vpack.c.bf16 %v933_v54, %v929_v53  ;;  %v1951_v1 = vpack.c.bf16 %v950_v63, %v946_v62  ;;  %v1144_v4 = vld [vmem:[#allocation20 + $0x8] sm:$0xff]  ;;  %v863_v46 = vld [vmem:[#allocation19 + $0x130] sm:$0xff]  ;;  %s538_s28 = scalar_lea.vmem [#allocation3], %s2796_s26  ;;  %s507_s26 = scalar_lea.vmem [#allocation5], %s2736_s0 }
  0xfc   : > { %1916 = vmatprep.subr.bf16.mxu0 %v1915_v10  ;;  %v937_v60 = vld [vmem:[#allocation19 + $0x380] sm:$0xff]  ;;  %v1148_v5 = vld [vmem:[#allocation20 + $0x28] sm:$0xff]  ;;  %v868_v47 = vld [vmem:[#allocation19 + $0x158] sm:$0xff]  ;;  %s3047_s0 = sld [smem:[#allocation31_spill]] }
  0xfd   : > { %v941_v61 = vld [vmem:[#allocation19 + $0x3a0] sm:$0xff]  ;;  %v2019_v7 = vpack.c.bf16 %v1148_v5, %v1144_v4  ;;  %v1152_v11 = vld [vmem:[#allocation20 + $0x48] sm:$0xff]  ;;  %v872_v48 = vld [vmem:[#allocation19 + $0x178] sm:$0xff] }
  0xfe   : > { %v1949_v0 = vpack.c.bf16 %v941_v61, %v937_v60  ;;  %v945_v2 = vld [vmem:[#allocation19 + $0x3c0] sm:$0xff]  ;;  %v1156_v12 = vld [vmem:[#allocation20 + $0x68] sm:$0xff]  ;;  %v876_v53 = vld [vmem:[#allocation19 + $0x198] sm:$0xff] }
  0xff   : > { %1918 = vmatpush1.bf16.msra.mxu0 %v1917_v15  ;;  %v949_v3 = vld [vmem:[#allocation19 + $0x3e0] sm:$0xff]  ;;  %v2023_v14 = vpack.c.bf16 %v1156_v12, %v1152_v11  ;;  %v880_v54 = vld [vmem:[#allocation19 + $0x1b8] sm:$0xff] }
 0x100   : > { %1920 = vmatprep.subr.bf16.mxu0 %v1919_v16  ;;  %v1953_v6 = vpack.c.bf16 %v949_v3, %v945_v2  ;;  %v1143_v8 = vld [vmem:[#allocation20] sm:$0xff]  ;;  %v1979_v57 = vpack.c.bf16 %v880_v54, %v876_v53  ;;  %v884_v60 = vld [vmem:[#allocation19 + $0x1d8] sm:$0xff]  ;;  %v947_v54 = vld [vmem:[#allocation19 + $0x3d0] sm:$0xff] }
 0x101   : > { %v1147_v10 = vld [vmem:[#allocation20 + $0x20] sm:$0xff]  ;;  %v888_v61 = vld [vmem:[#allocation19 + $0x1f8] sm:$0xff] }
 0x102   : > { %v2021_v13 = vpack.c.bf16 %v1147_v10, %v1143_v8  ;;  %v1151_v15 = vld [vmem:[#allocation20 + $0x40] sm:$0xff]  ;;  %v1983_v63 = vpack.c.bf16 %v888_v61, %v884_v60  ;;  %v892_v2 = vld [vmem:[#allocation19 + $0x218] sm:$0xff] }
 0x103   : > { %1922 = vmatpush1.bf16.msra.mxu0 %v1921_v21  ;;  %v1155_v16 = vld [vmem:[#allocation20 + $0x60] sm:$0xff]  ;;  %v827_v21 = vld [vmem:[#allocation19 + $0x10] sm:$0xff]  ;;  %v896_v3 = vld [vmem:[#allocation19 + $0x238] sm:$0xff] }
 0x104   : > { %1924 = vmatprep.subr.bf16.mxu0 %v1923_v22  ;;  %v2025_v17 = vpack.c.bf16 %v1155_v16, %v1151_v15  ;;  %v831_v22 = vld [vmem:[#allocation19 + $0x30] sm:$0xff]  ;;  %v1987_v5 = vpack.c.bf16 %v896_v3, %v892_v2  ;;  %v900_v8 = vld [vmem:[#allocation19 + $0x258] sm:$0xff]  ;;  %v1167_v60 = vld [vmem:[#allocation20 + $0xc0] sm:$0xff] }
 0x105   : > { %v1957_v25 = vpack.c.bf16 %v831_v22, %v827_v21  ;;  %v904_v10 = vld [vmem:[#allocation19 + $0x278] sm:$0xff]  ;;  %v1171_v61 = vld [vmem:[#allocation20 + $0xe0] sm:$0xff]  ;;  %v1176_v3 = vld [vmem:[#allocation20 + $0x108] sm:$0xff] }
 0x106   : > { %v1991_v12 = vpack.c.bf16 %v904_v10, %v900_v8  ;;  %v908_v15 = vld [vmem:[#allocation19 + $0x298] sm:$0xff]  ;;  %v1175_v8 = vld [vmem:[#allocation20 + $0x100] sm:$0xff] }
 0x107   : > { %1926 = vmatpush1.bf16.msra.mxu0 %v1925_v27  ;;  %v835_v27 = vld [vmem:[#allocation19 + $0x50] sm:$0xff]  ;;  %v912_v16 = vld [vmem:[#allocation19 + $0x2b8] sm:$0xff]  ;;  %v1179_v10 = vld [vmem:[#allocation20 + $0x120] sm:$0xff] }
 0x108   : > { %1928 = vmatprep.subr.bf16.mxu0 %v1927_v28  ;;  %v839_v28 = vld [vmem:[#allocation19 + $0x70] sm:$0xff]  ;;  %v916_v21 = vld [vmem:[#allocation19 + $0x2d8] sm:$0xff] }
 0x109   : > { %v1961_v32 = vpack.c.bf16 %v839_v28, %v835_v27  ;;  %v920_v22 = vld [vmem:[#allocation19 + $0x2f8] sm:$0xff] }
 0x10a   : > { %v1999_v24 = vpack.c.bf16 %v920_v22, %v916_v21  ;;  %v924_v27 = vld [vmem:[#allocation19 + $0x318] sm:$0xff]  ;;  %v1183_v21 = vld [vmem:[#allocation20 + $0x140] sm:$0xff] }
 0x10b   : > { %1930 = vmatpush1.bf16.msra.mxu0 %v1929_v33  ;;  %v1963_v33 = vpack.c.bf16 %v848_v31, %v844_v30  ;;  %v928_v28 = vld [vmem:[#allocation19 + $0x338] sm:$0xff]  ;;  %v923_v31 = vld [vmem:[#allocation19 + $0x310] sm:$0xff]  ;;  %v1187_v22 = vld [vmem:[#allocation20 + $0x160] sm:$0xff] }
 0x10c   : > { %1932 = vmatprep.subr.bf16.mxu0 %v1931_v34  ;;  %v843_v34 = vld [vmem:[#allocation19 + $0x90] sm:$0xff]  ;;  %v2003_v30 = vpack.c.bf16 %v928_v28, %v924_v27  ;;  %v1192_v28 = vld [vmem:[#allocation20 + $0x188] sm:$0xff] }
 0x10d   : > { %v1965_v38 = vpack.c.bf16 %v847_v35, %v843_v34  ;;  %v936_v34 = vld [vmem:[#allocation19 + $0x378] sm:$0xff] }
 0x10f   : > { %1934 = vmatpush1.bf16.msra.mxu0 %v1933_v39  ;;  %v1967_v39 = vpack.c.bf16 %v856_v37, %v852_v36  ;;  %v931_v37 = vld [vmem:[#allocation19 + $0x350] sm:$0xff] }
 0x110   : > { %1936 = vmatprep.subr.bf16.mxu0 %v1935_v40  ;;  %v851_v40 = vld [vmem:[#allocation19 + $0xd0] sm:$0xff] }
 0x111   : > { %v1969_v44 = vpack.c.bf16 %v855_v41, %v851_v40  ;;  %v940_v40 = vld [vmem:[#allocation19 + $0x398] sm:$0xff] }
 0x112   : > { %v944_v41 = vld [vmem:[#allocation19 + $0x3b8] sm:$0xff] }
 0x113   : > { %1938 = vmatpush1.bf16.msra.mxu0 %v1937_v45  ;;  %v1971_v45 = vpack.c.bf16 %v864_v43, %v860_v42  ;;  %v2011_v42 = vpack.c.bf16 %v944_v41, %v940_v40  ;;  %v939_v43 = vld [vmem:[#allocation19 + $0x390] sm:$0xff]  ;;  %v1204_v41 = vld [vmem:[#allocation20 + $0x1e8] sm:$0xff] }
 0x114   : > { %1940 = vmatprep.subr.bf16.mxu0 %v1939_v9  ;;  %v859_v9 = vld [vmem:[#allocation19 + $0x110] sm:$0xff] }
 0x115   : > { %v1973_v49 = vpack.c.bf16 %v863_v46, %v859_v9  ;;  %v1164_v46 = vld [vmem:[#allocation20 + $0xa8] sm:$0xff] }
 0x117   : > { %1942 = vmatpush1.bf16.msra.mxu0 %v1941_v51  ;;  %v867_v51 = vld [vmem:[#allocation19 + $0x150] sm:$0xff] }
 0x118   : > { %1944 = vmatprep.subr.bf16.mxu0 %v1943_v52  ;;  %v871_v52 = vld [vmem:[#allocation19 + $0x170] sm:$0xff] }
 0x119   : > { %v1977_v56 = vpack.c.bf16 %v871_v52, %v867_v51  ;;  %v948_v51 = vld [vmem:[#allocation19 + $0x3d8] sm:$0xff] }
 0x11a   : > { %v952_v52 = vld [vmem:[#allocation19 + $0x3f8] sm:$0xff] }
 0x11b   : > { %1946 = vmatpush1.bf16.msra.mxu0 %v1945_v58  ;;  %v875_v58 = vld [vmem:[#allocation19 + $0x190] sm:$0xff]  ;;  %v2015_v53 = vpack.c.bf16 %v952_v52, %v948_v51  ;;  %v1212_v51 = vld [vmem:[#allocation20 + $0x228] sm:$0xff] }
 0x11c   : > { %1948 = vmatprep.subr.bf16.mxu0 %v1947_v59  ;;  %v879_v59 = vld [vmem:[#allocation19 + $0x1b0] sm:$0xff] }
 0x11d   : > { %v1981_v62 = vpack.c.bf16 %v879_v59, %v875_v58  ;;  %v1172_v59 = vld [vmem:[#allocation20 + $0xe8] sm:$0xff] }
 0x11f   : > { %1950 = vmatpush1.bf16.msra.mxu0 %v1949_v0  ;;  %v883_v0 = vld [vmem:[#allocation19 + $0x1d0] sm:$0xff] }
 0x120   : > { %1952 = vmatprep.subr.bf16.mxu0 %v1951_v1  ;;  %v887_v1 = vld [vmem:[#allocation19 + $0x1f0] sm:$0xff] }
 0x121   : > { %v1985_v4 = vpack.c.bf16 %v887_v1, %v883_v0  ;;  %v1146_v0 = vld [vmem:[#allocation20 + $0x18] sm:$0xff] }
 0x122   : > { %v1150_v1 = vld [vmem:[#allocation20 + $0x38] sm:$0xff] }
 0x123   : > { %1954 = vmatpush1.bf16.msra.mxu0 %v1953_v6  ;;  %v891_v6 = vld [vmem:[#allocation19 + $0x210] sm:$0xff]  ;;  %v2083_v2 = vpack.c.bf16 %v1150_v1, %v1146_v0  ;;  %v1216_v0 = vld [vmem:[#allocation20 + $0x248] sm:$0xff] }
 0x124   : > { %2020 = vmatprep.subr.bf16.mxu0 %v2019_v7  ;;  %v895_v7 = vld [vmem:[#allocation19 + $0x230] sm:$0xff]  ;;  %v1220_v1 = vld [vmem:[#allocation20 + $0x268] sm:$0xff] }
 0x125   : > { %v1989_v11 = vpack.c.bf16 %v895_v7, %v891_v6  ;;  %v1149_v7 = vld [vmem:[#allocation20 + $0x30] sm:$0xff] }
 0x126   : > { %1040 = vmatmul.mubr.f32.vlgmr.msra.gmra.mrb[2].mxu0 %v2820_v55 }
 0x127   : > { %2022 = vmatpush1.bf16.msra.mxu0 %v2021_v13  ;;  %v899_v13 = vld [vmem:[#allocation19 + $0x250] sm:$0xff] }
 0x128   : > { %2024 = vmatprep.subr.bf16.mxu0 %v2023_v14  ;;  %v903_v14 = vld [vmem:[#allocation19 + $0x270] sm:$0xff] }
 0x12b   : > { %2026 = vmatpush1.bf16.msra.mxu0 %v2025_v17  ;;  %v1993_v17 = vpack.c.bf16 %v903_v14, %v899_v13  ;;  %v1154_v13 = vld [vmem:[#allocation20 + $0x58] sm:$0xff] }
 0x12c   : > { %v1158_v14 = vld [vmem:[#allocation20 + $0x78] sm:$0xff] }
 0x1b9   : > { %v1780_v18 = vpop.f32.mrb[0].mxu0 }
 0x1ba   : > { %v1781_v19 = vpop.f32.mrb[1].mxu0 }
 0x1bb   : > { %v1782_v20 = vadd.f32 %v1781_v19, %v1780_v18  ;;  %v1995_v18 = vpack.c.bf16 %v912_v16, %v908_v15  ;;  %v907_v19 = vld [vmem:[#allocation19 + $0x290] sm:$0xff]  ;;  %v2087_v15 = vpack.c.bf16 %v1158_v14, %v1154_v13  ;;  %v1184_v16 = vld [vmem:[#allocation20 + $0x148] sm:$0xff] }
 0x1bd   : > { %2218 = vtanh.f32 %v1782_v20  ;;  %v911_v20 = vld [vmem:[#allocation19 + $0x2b0] sm:$0xff] }
 0x1be   : > { %v1997_v23 = vpack.c.bf16 %v911_v20, %v907_v19  ;;  %v1157_v20 = vld [vmem:[#allocation20 + $0x70] sm:$0xff] }
 0x1c7   : > { %v2219_v29 = vpop.eup %2218 }
 0x1c8   : > { %1833 = vmatmul.mubr.f32.vlgmr.msra.gmra.mrb[0].mxu1 %v2219_v29 }
 0x1c9   : > { %1958 = vmatpush1.bf16.msra.mxu1 %v1957_v25  ;;  %1110 = vmatprep.mubr.f32.mxu1 %v2816_v50  ;;  %v1975_v50 = vpack.c.bf16 %v872_v48, %v868_v47  ;;  %v915_v25 = vld [vmem:[#allocation19 + $0x2d0] sm:$0xff]  ;;  %v1159_v47 = vld [vmem:[#allocation20 + $0x80] sm:$0xff] }
 0x1ca   : > { %1960 = vmatprep.subr.bf16.mxu1 %v1959_v26  ;;  %v919_v26 = vld [vmem:[#allocation19 + $0x2f0] sm:$0xff]  ;;  %v1163_v48 = vld [vmem:[#allocation20 + $0xa0] sm:$0xff] }
 0x1cb   : > { %v2001_v29 = vpack.c.bf16 %v919_v26, %v915_v25  ;;  %v1162_v25 = vld [vmem:[#allocation20 + $0x98] sm:$0xff] }
 0x1cc   : > { %v1166_v26 = vld [vmem:[#allocation20 + $0xb8] sm:$0xff] }
 0x1cd   : > { %1962 = vmatpush1.bf16.msra.mxu1 %v1961_v32  ;;  %v927_v32 = vld [vmem:[#allocation19 + $0x330] sm:$0xff]  ;;  %v2091_v27 = vpack.c.bf16 %v1166_v26, %v1162_v25 }
 0x1ce   : > { %1964 = vmatprep.subr.bf16.mxu1 %v1963_v33  ;;  %v932_v33 = vld [vmem:[#allocation19 + $0x358] sm:$0xff]  ;;  %v2005_v35 = vpack.c.bf16 %v927_v32, %v923_v31  ;;  %v1165_v32 = vld [vmem:[#allocation20 + $0xb0] sm:$0xff] }
 0x1cf   : > { %v2007_v36 = vpack.c.bf16 %v936_v34, %v932_v33  ;;  %v1191_v33 = vld [vmem:[#allocation20 + $0x180] sm:$0xff] }
 0x1d0   : > { %v1195_v34 = vld [vmem:[#allocation20 + $0x1a0] sm:$0xff] }
 0x1d1   : > { %1966 = vmatpush1.bf16.msra.mxu1 %v1965_v38  ;;  %v935_v38 = vld [vmem:[#allocation19 + $0x370] sm:$0xff] }
 0x1d2   : > { %1968 = vmatprep.subr.bf16.mxu1 %v1967_v39  ;;  %v2009_v39 = vpack.c.bf16 %v935_v38, %v931_v37  ;;  %v1170_v37 = vld [vmem:[#allocation20 + $0xd8] sm:$0xff] }
 0x1d3   : > { %v1174_v38 = vld [vmem:[#allocation20 + $0xf8] sm:$0xff] }
 0x1d4   : > { %v2095_v40 = vpack.c.bf16 %v1174_v38, %v1170_v37 }
 0x1d5   : > { %1970 = vmatpush1.bf16.msra.mxu1 %v1969_v44  ;;  %v943_v44 = vld [vmem:[#allocation19 + $0x3b0] sm:$0xff] }
 0x1d6   : > { %1972 = vmatprep.subr.bf16.mxu1 %v1971_v45  ;;  %v1160_v45 = vld [vmem:[#allocation20 + $0x88] sm:$0xff]  ;;  %v2013_v9 = vpack.c.bf16 %v943_v44, %v939_v43  ;;  %v1173_v43 = vld [vmem:[#allocation20 + $0xf0] sm:$0xff] }
 0x1d9   : > { %1974 = vmatpush1.bf16.msra.mxu1 %v1973_v49  ;;  %v2027_v49 = vpack.c.bf16 %v1164_v46, %v1160_v45  ;;  %v1203_v46 = vld [vmem:[#allocation20 + $0x1e0] sm:$0xff] }
 0x1da   : > { %1976 = vmatprep.subr.bf16.mxu1 %v1975_v50  ;;  %v2029_v50 = vpack.c.bf16 %v1163_v48, %v1159_v47  ;;  %v1178_v47 = vld [vmem:[#allocation20 + $0x118] sm:$0xff] }
 0x1db   : > { %2028 = vmatprep.subr.bf16.mxu0 %v2027_v49  ;;  %v1182_v49 = vld [vmem:[#allocation20 + $0x138] sm:$0xff] }
 0x1dc   : > { %2030 = vmatpush1.bf16.msra.mxu0 %v2029_v50  ;;  %v1208_v50 = vld [vmem:[#allocation20 + $0x208] sm:$0xff]  ;;  %v2099_v52 = vpack.c.bf16 %v1182_v49, %v1178_v47 }
 0x1dd   : > { %1978 = vmatpush1.bf16.msra.mxu1 %v1977_v56  ;;  %v951_v56 = vld [vmem:[#allocation19 + $0x3f0] sm:$0xff] }
 0x1de   : > { %1980 = vmatprep.subr.bf16.mxu1 %v1979_v57  ;;  %v1168_v57 = vld [vmem:[#allocation20 + $0xc8] sm:$0xff]  ;;  %v2017_v58 = vpack.c.bf16 %v951_v56, %v947_v54  ;;  %v1177_v54 = vld [vmem:[#allocation20 + $0x110] sm:$0xff] }
 0x1df   : > { %v1181_v56 = vld [vmem:[#allocation20 + $0x130] sm:$0xff] }
 0x1e1   : > { %1982 = vmatpush1.bf16.msra.mxu1 %v1981_v62  ;;  %v2031_v62 = vpack.c.bf16 %v1172_v59, %v1168_v57  ;;  %v1207_v57 = vld [vmem:[#allocation20 + $0x200] sm:$0xff] }
 0x1e2   : > { %1984 = vmatprep.subr.bf16.mxu1 %v1983_v63  ;;  %v2033_v63 = vpack.c.bf16 %v1171_v61, %v1167_v60  ;;  %v1211_v59 = vld [vmem:[#allocation20 + $0x220] sm:$0xff]  ;;  %v1186_v60 = vld [vmem:[#allocation20 + $0x158] sm:$0xff] }
 0x1e3   : > { %2032 = vmatprep.subr.bf16.mxu0 %v2031_v62  ;;  %v1190_v61 = vld [vmem:[#allocation20 + $0x178] sm:$0xff]  ;;  %v2053_v62 = vpack.c.bf16 %v1211_v59, %v1207_v57  ;;  %v1260_v59 = vld [vmem:[#allocation20 + $0x3a8] sm:$0xff] }
 0x1e4   : > { %2034 = vmatpush1.bf16.msra.mxu0 %v2033_v63  ;;  %v2103_v63 = vpack.c.bf16 %v1190_v61, %v1186_v60  ;;  %v1230_v57 = vld [vmem:[#allocation20 + $0x2b8] sm:$0xff]  ;;  %v1142_v60 = vld [vmem:[#allocation8 + $0x8] sm:$0xff] }
 0x1e5   : > { %1986 = vmatpush1.bf16.msra.mxu1 %v1985_v4  ;;  %v1180_v4 = vld [vmem:[#allocation20 + $0x128] sm:$0xff]  ;;  %1357 = vmatprep.mubr.f32.mxu0 %v1142_v60 }
 0x1e6   : > { %1988 = vmatprep.subr.bf16.mxu1 %v1987_v5  ;;  %v1145_v5 = vld [vmem:[#allocation20 + $0x10] sm:$0xff]  ;;  %v2035_v6 = vpack.c.bf16 %v1180_v4, %v1176_v3  ;;  %v2055_v3 = vpack.c.bf16 %v1220_v1, %v1216_v0 }
 0x1e7   : > { %v1189_v4 = vld [vmem:[#allocation20 + $0x170] sm:$0xff] }
 0x1e8   : > { %2036 = vmatprep.subr.bf16.mxu0 %v2035_v6  ;;  %v1219_v6 = vld [vmem:[#allocation20 + $0x260] sm:$0xff]  ;;  %v1225_v0 = vld [vmem:[#allocation20 + $0x290] sm:$0xff] }
 0x1e9   : > { %1990 = vmatpush1.bf16.msra.mxu1 %v1989_v11  ;;  %v2085_v11 = vpack.c.bf16 %v1149_v7, %v1145_v5  ;;  %v1215_v5 = vld [vmem:[#allocation20 + $0x240] sm:$0xff]  ;;  %v1194_v7 = vld [vmem:[#allocation20 + $0x198] sm:$0xff]  ;;  %v1229_v1 = vld [vmem:[#allocation20 + $0x2b0] sm:$0xff] }
 0x1ea   : > { %1992 = vmatprep.subr.bf16.mxu1 %v1991_v12  ;;  %v2037_v12 = vpack.c.bf16 %v1179_v10, %v1175_v8  ;;  %v1198_v8 = vld [vmem:[#allocation20 + $0x1b8] sm:$0xff]  ;;  %v1224_v10 = vld [vmem:[#allocation20 + $0x288] sm:$0xff]  ;;  %v2057_v13 = vpack.c.bf16 %v1219_v6, %v1215_v5 }
 0x1eb   : > { %v2107_v14 = vpack.c.bf16 %v1198_v8, %v1194_v7  ;;  %v1234_v5 = vld [vmem:[#allocation20 + $0x2d8] sm:$0xff]  ;;  %v1264_v7 = vld [vmem:[#allocation20 + $0x3c8] sm:$0xff] }
 0x1ec   : > { %2038 = vmatpush1.bf16.msra.mxu0 %v2037_v12  ;;  %v1228_v12 = vld [vmem:[#allocation20 + $0x2a8] sm:$0xff]  ;;  %v1238_v6 = vld [vmem:[#allocation20 + $0x2f8] sm:$0xff] }
 0x1ed   : > { %1994 = vmatpush1.bf16.msra.mxu1 %v1993_v17  ;;  %v1188_v17 = vld [vmem:[#allocation20 + $0x168] sm:$0xff] }
 0x1ee   : > { %1996 = vmatprep.subr.bf16.mxu1 %v1995_v18  ;;  %v1153_v18 = vld [vmem:[#allocation20 + $0x50] sm:$0xff]  ;;  %v2039_v19 = vpack.c.bf16 %v1188_v17, %v1184_v16  ;;  %v1223_v17 = vld [vmem:[#allocation20 + $0x280] sm:$0xff]  ;;  %v1268_v8 = vld [vmem:[#allocation20 + $0x3e8] sm:$0xff] }
 0x1ef   : > { %v1197_v16 = vld [vmem:[#allocation20 + $0x1b0] sm:$0xff] }
 0x1f0   : > { %2040 = vmatprep.subr.bf16.mxu0 %v2039_v19  ;;  %v1227_v19 = vld [vmem:[#allocation20 + $0x2a0] sm:$0xff] }
 0x1f1   : > { %1998 = vmatpush1.bf16.msra.mxu1 %v1997_v23  ;;  %v2089_v23 = vpack.c.bf16 %v1157_v20, %v1153_v18  ;;  %v2059_v18 = vpack.c.bf16 %v1228_v12, %v1224_v10  ;;  %v1202_v20 = vld [vmem:[#allocation20 + $0x1d8] sm:$0xff]  ;;  %v2061_v25 = vpack.c.bf16 %v1227_v19, %v1223_v17  ;;  %v2125_v10 = vpack.c.bf16 %v1229_v1, %v1225_v0  ;;  %v1267_v17 = vld [vmem:[#allocation20 + $0x3e0] sm:$0xff] }
 0x1f2   : > { %2000 = vmatprep.subr.bf16.mxu1 %v1999_v24  ;;  %v2041_v24 = vpack.c.bf16 %v1187_v22, %v1183_v21  ;;  %v1206_v21 = vld [vmem:[#allocation20 + $0x1f8] sm:$0xff]  ;;  %v1232_v22 = vld [vmem:[#allocation20 + $0x2c8] sm:$0xff]  ;;  %v2127_v12 = vpack.c.bf16 %v1238_v6, %v1234_v5  ;;  %v573_v0 = vld [vmem:[%s572_s5] sm:$0x1]  ;;  %s1473_s5 = scalar_lea.vmem [#allocation2], %s2887_s15 }
 0x1f3   : > { %v2111_v26 = vpack.c.bf16 %v1206_v21, %v1202_v20  ;;  %v1246_v19 = vld [vmem:[#allocation20 + $0x338] sm:$0xff]  ;;  %v590_v1 = vld [vmem:[%s589_s30] sm:$0x1]  ;;  %574 = vst [vmem:[#allocation9 + $0x6] sm:$0x1] %v573_v0  ;;  %s1484_s30 = scalar_lea.vmem [#allocation2], %s2890_s25 }
 0x1f4   : > { %2042 = vmatpush1.bf16.msra.mxu0 %v2041_v24  ;;  %591 = vst [vmem:[#allocation9 + $0x7] sm:$0x1] %v590_v1  ;;  %v474_v5 = vld [vmem:[%s473_s9] sm:$0x1]  ;;  %s1495_s9 = scalar_lea.vmem [#allocation2], %s2893_s16 }
 0x1f5   : > { %2002 = vmatpush1.bf16.msra.mxu1 %v2001_v29  ;;  %v1196_v29 = vld [vmem:[#allocation20 + $0x1a8] sm:$0xff]  ;;  %v491_v6 = vld [vmem:[%s490_s13] sm:$0x1]  ;;  %475 = vst [vmem:[#allocation9 + $0x8] sm:$0x1] %v474_v5  ;;  %s1506_s13 = scalar_lea.vmem [#allocation2], %s2896_s2 }
 0x1f6   : > { %2004 = vmatprep.subr.bf16.mxu1 %v2003_v30  ;;  %v1161_v30 = vld [vmem:[#allocation20 + $0x90] sm:$0xff]  ;;  %v2043_v31 = vpack.c.bf16 %v1196_v29, %v1192_v28  ;;  %v1231_v29 = vld [vmem:[#allocation20 + $0x2c0] sm:$0xff]  ;;  %492 = vst [vmem:[#allocation9 + $0x9] sm:$0x1] %v491_v6 }
 0x1f7   : > { %v1205_v28 = vld [vmem:[#allocation20 + $0x1f0] sm:$0xff] }
 0x1f8   : > { %2044 = vmatprep.subr.bf16.mxu0 %v2043_v31  ;;  %v1235_v31 = vld [vmem:[#allocation20 + $0x2e0] sm:$0xff] }
 0x1f9   : > { %2006 = vmatpush1.bf16.msra.mxu1 %v2005_v35  ;;  %v2093_v35 = vpack.c.bf16 %v1165_v32, %v1161_v30  ;;  %v1210_v32 = vld [vmem:[#allocation20 + $0x218] sm:$0xff]  ;;  %v2065_v37 = vpack.c.bf16 %v1235_v31, %v1231_v29  ;;  %v1249_v29 = vld [vmem:[#allocation20 + $0x350] sm:$0xff] }
 0x1fa   : > { %2008 = vmatprep.subr.bf16.mxu1 %v2007_v36  ;;  %v2045_v36 = vpack.c.bf16 %v1195_v34, %v1191_v33  ;;  %v1214_v33 = vld [vmem:[#allocation20 + $0x238] sm:$0xff]  ;;  %v1240_v34 = vld [vmem:[#allocation20 + $0x308] sm:$0xff] }
 0x1fb   : > { %v2115_v38 = vpack.c.bf16 %v1214_v33, %v1210_v32  ;;  %v1258_v31 = vld [vmem:[#allocation20 + $0x398] sm:$0xff] }
 0x1fc   : > { %2046 = vmatpush1.bf16.msra.mxu0 %v2045_v36  ;;  %v1262_v32 = vld [vmem:[#allocation20 + $0x3b8] sm:$0xff] }
 0x1fd   : > { %2010 = vmatpush1.bf16.msra.mxu1 %v2009_v39  ;;  %v1200_v39 = vld [vmem:[#allocation20 + $0x1c8] sm:$0xff] }
 0x1fe   : > { %2012 = vmatprep.subr.bf16.mxu1 %v2011_v42  ;;  %v1169_v42 = vld [vmem:[#allocation20 + $0xd0] sm:$0xff]  ;;  %v2047_v44 = vpack.c.bf16 %v1204_v41, %v1200_v39  ;;  %v1239_v41 = vld [vmem:[#allocation20 + $0x300] sm:$0xff] }
 0x1ff   : > { %v2097_v45 = vpack.c.bf16 %v1173_v43, %v1169_v42  ;;  %v1209_v39 = vld [vmem:[#allocation20 + $0x210] sm:$0xff]  ;;  %v1243_v43 = vld [vmem:[#allocation20 + $0x320] sm:$0xff] }
 0x200   : > { %2048 = vmatprep.subr.bf16.mxu0 %v2047_v44  ;;  %v1218_v44 = vld [vmem:[#allocation20 + $0x258] sm:$0xff] }
 0x201   : > { %2014 = vmatpush1.bf16.msra.mxu1 %v2013_v9  ;;  %v1199_v9 = vld [vmem:[#allocation20 + $0x1c0] sm:$0xff] }
 0x202   : > { %2016 = vmatprep.subr.bf16.mxu1 %v2015_v53  ;;  %v2049_v48 = vpack.c.bf16 %v1203_v46, %v1199_v9  ;;  %v2051_v53 = vpack.c.bf16 %v1212_v51, %v1208_v50  ;;  %v1248_v9 = vld [vmem:[#allocation20 + $0x348] sm:$0xff]  ;;  %v1217_v50 = vld [vmem:[#allocation20 + $0x250] sm:$0xff] }
 0x203   : > { %v1252_v46 = vld [vmem:[#allocation20 + $0x368] sm:$0xff]  ;;  %v1221_v51 = vld [vmem:[#allocation20 + $0x270] sm:$0xff] }
 0x204   : > { %2050 = vmatpush1.bf16.msra.mxu0 %v2049_v48  ;;  %v2069_v48 = vpack.c.bf16 %v1243_v43, %v1239_v41  ;;  %v2121_v61 = vpack.c.bf16 %v1221_v51, %v1217_v50  ;;  %v1265_v41 = vld [vmem:[#allocation20 + $0x3d0] sm:$0xff] }
 0x205   : > { %2018 = vmatpush1.bf16.msra.mxu1 %v2017_v58  ;;  %v2101_v58 = vpack.c.bf16 %v1181_v56, %v1177_v54  ;;  %2052 = vmatprep.subr.bf16.mxu0 %v2051_v53  ;;  %v2071_v53 = vpack.c.bf16 %v1252_v46, %v1248_v9  ;;  %v1251_v54 = vld [vmem:[#allocation20 + $0x360] sm:$0xff]  ;;  %v1226_v56 = vld [vmem:[#allocation20 + $0x298] sm:$0xff] }
 0x206   : > { %2084 = vmatprep.subr.bf16.mxu1 %v2083_v2  ;;  %v1185_v2 = vld [vmem:[#allocation20 + $0x150] sm:$0xff] }
 0x208   : > { %1111 = vmatmul.mubr.f32.vlgmr.msra.gmra.mrb[2].mxu1 %v2820_v55  ;;  %2054 = vmatpush1.bf16.msra.mxu0 %v2053_v62 }
 0x209   : > { %2086 = vmatpush1.bf16.msra.mxu1 %v2085_v11  ;;  %v2105_v11 = vpack.c.bf16 %v1189_v4, %v1185_v2  ;;  %2056 = vmatprep.subr.bf16.mxu0 %v2055_v3  ;;  %v1255_v2 = vld [vmem:[#allocation20 + $0x380] sm:$0xff] }
 0x20a   : > { %2088 = vmatprep.subr.bf16.mxu1 %v2087_v15  ;;  %v1193_v15 = vld [vmem:[#allocation20 + $0x190] sm:$0xff]  ;;  %v1259_v4 = vld [vmem:[#allocation20 + $0x3a0] sm:$0xff]  ;;  %1428 = vmatprep.mubr.f32.mxu1 %v1142_v60 }
 0x20b   : > { %v2109_v24 = vpack.c.bf16 %v1197_v16, %v1193_v15  ;;  %v1263_v15 = vld [vmem:[#allocation20 + $0x3c0] sm:$0xff]  ;;  %v2079_v16 = vpack.c.bf16 %v1268_v8, %v1264_v7 }
 0x20c   : > { %2058 = vmatpush1.bf16.msra.mxu0 %v2057_v13  ;;  %v1233_v13 = vld [vmem:[#allocation20 + $0x2d0] sm:$0xff]  ;;  %v2081_v21 = vpack.c.bf16 %v1267_v17, %v1263_v15  ;;  %v522_v60 = vld [vmem:[%s521_s12] sm:$0x1]  ;;  %s1530_s12 = scalar_lea.vmem [#allocation3], %s2902_s17 }
 0x20d   : > { %2090 = vmatpush1.bf16.msra.mxu1 %v2089_v23  ;;  %v1236_v23 = vld [vmem:[#allocation20 + $0x2e8] sm:$0xff]  ;;  %2060 = vmatprep.subr.bf16.mxu0 %v2059_v18  ;;  %v1242_v18 = vld [vmem:[#allocation20 + $0x318] sm:$0xff]  ;;  %523 = vst [vmem:[#allocation9 + $0x3] sm:$0x1] %v522_v60  ;;  %v508_v7 = vld [vmem:[%s507_s26] sm:$0x1] }
 0x20e   : > { %2092 = vmatprep.subr.bf16.mxu1 %v2091_v27  ;;  %v1201_v27 = vld [vmem:[#allocation20 + $0x1d0] sm:$0xff]  ;;  %v2063_v30 = vpack.c.bf16 %v1236_v23, %v1232_v22  ;;  %v2131_v22 = vpack.c.bf16 %v1246_v19, %v1242_v18  ;;  %v525_v8 = vld [vmem:[%s524_s27] sm:$0x1]  ;;  %509 = vst [vmem:[#allocation9 + $0xa] sm:$0x1] %v508_v7  ;;  %s1528_s27 = scalar_lea.vmem [#allocation2], %s2902_s17 }
 0x20f   : > { %v2113_v36 = vpack.c.bf16 %v1205_v28, %v1201_v27  ;;  %v1241_v23 = vld [vmem:[#allocation20 + $0x310] sm:$0xff]  ;;  %526 = vst [vmem:[#allocation9 + $0xb] sm:$0x1] %v525_v8 }
 0x210   : > { %2062 = vmatpush1.bf16.msra.mxu0 %v2061_v25  ;;  %v1250_v25 = vld [vmem:[#allocation20 + $0x358] sm:$0xff] }
 0x211   : > { %2094 = vmatpush1.bf16.msra.mxu1 %v2093_v35  ;;  %v1244_v35 = vld [vmem:[#allocation20 + $0x328] sm:$0xff]  ;;  %2064 = vmatprep.subr.bf16.mxu0 %v2063_v30  ;;  %v1253_v30 = vld [vmem:[#allocation20 + $0x370] sm:$0xff] }
 0x212   : > { %2096 = vmatprep.subr.bf16.mxu1 %v2095_v40  ;;  %v1213_v40 = vld [vmem:[#allocation20 + $0x230] sm:$0xff]  ;;  %v2067_v42 = vpack.c.bf16 %v1244_v35, %v1240_v34  ;;  %v2137_v33 = vpack.c.bf16 %v1253_v30, %v1249_v29  ;;  %v2139_v34 = vpack.c.bf16 %v1262_v32, %v1258_v31 }
 0x213   : > { %v2117_v47 = vpack.c.bf16 %v1213_v40, %v1209_v39  ;;  %v1257_v35 = vld [vmem:[#allocation20 + $0x390] sm:$0xff] }
 0x214   : > { %2066 = vmatpush1.bf16.msra.mxu0 %v2065_v37  ;;  %v1266_v37 = vld [vmem:[#allocation20 + $0x3d8] sm:$0xff] }
 0x215   : > { %2098 = vmatpush1.bf16.msra.mxu1 %v2097_v45  ;;  %v1222_v45 = vld [vmem:[#allocation20 + $0x278] sm:$0xff]  ;;  %2068 = vmatprep.subr.bf16.mxu0 %v2067_v42  ;;  %v1269_v42 = vld [vmem:[#allocation20 + $0x3f0] sm:$0xff] }
 0x216   : > { %2100 = vmatprep.subr.bf16.mxu1 %v2099_v52  ;;  %v2119_v49 = vpack.c.bf16 %v1222_v45, %v1218_v44  ;;  %v1247_v52 = vld [vmem:[#allocation20 + $0x340] sm:$0xff]  ;;  %v2145_v43 = vpack.c.bf16 %v1269_v42, %v1265_v41  ;;  %v793_v44 = vlaneseq }
 0x217   : > { %v2073_v62 = vpack.c.bf16 %v1251_v54, %v1247_v52  ;;  %v1736_v45 = vld [vmem:[%s2999_s8] ss:$0 sm:$0xff]  ;;  %v1041_v54 = vpop.f32.mrb[2].mxu0 }
 0x218   : > { %2070 = vmatpush1.bf16.msra.mxu0 %v2069_v48  ;;  %v2830_v9 = vand.u32 127, %v793_v44  ;;  %v2844_v51 = vshrl.u32 %v793_v44, 7  ;;  %v2849_v52 = vld [vmem:[%s3001_s10] sm:$0xf] }
 0x219   : > { %2102 = vmatpush1.bf16.msra.mxu1 %v2101_v58  ;;  %v1256_v58 = vld [vmem:[#allocation20 + $0x388] sm:$0xff]  ;;  %2072 = vmatprep.subr.bf16.mxu0 %v2071_v53 }
 0x21a   : > { %2104 = vmatprep.subr.bf16.mxu1 %v2103_v63  ;;  %v2123_v63 = vpack.c.bf16 %v1230_v57, %v1226_v56  ;;  %v2075_v3 = vpack.c.bf16 %v1260_v59, %v1256_v58  ;;  %vm801_vm1 = vcmp.lt.s32.totalorder %v2830_v9, 32  ;;  %v957_v53 = vsub.s32 0, %v2844_v51  ;;  %v471_v56 = vld [vmem:[%s470_s21] sm:$0x1]  ;;  %s2899_s21 = sld [smem:[#allocation13 + %s3047_s0]]  ;;  %s1479_s0 = scalar_lea.vmem [#allocation5], %s2887_s15 }
 0x21b   : > { %v488_v57 = vld [vmem:[%s487_s7] sm:$0x1]  ;;  %472 = vst [vmem:[#allocation9] sm:$0x1] %v471_v56  ;;  %v965_v18 = vsub.s32 2, %v2844_v51  ;;  %s1486_s7 = scalar_lea.vmem [#allocation3], %s2890_s25 }
 0x21c   : > { %2074 = vmatpush1.bf16.msra.mxu0 %v2073_v62  ;;  %v958_v58 = vrot.slane %v2849_v52, %v957_v53  ;;  %489 = vst [vmem:[#allocation9 + $0x1] sm:$0x1] %v488_v57  ;;  %v505_v59 = vld [vmem:[%s504_s11] sm:$0x1] }
 0x21d   : > { %2106 = vmatpush1.bf16.msra.mxu1 %v2105_v11  ;;  %v2077_v11 = vpack.c.bf16 %v1259_v4, %v1255_v2  ;;  %2076 = vmatprep.subr.bf16.mxu0 %v2075_v3  ;;  %506 = vst [vmem:[#allocation9 + $0x2] sm:$0x1] %v505_v59  ;;  %v556_v62 = vld [vmem:[%s555_s3] sm:$0x1]  ;;  %v961_v2 = vsub.s32 1, %v2844_v51  ;;  %v1043_v3 = vpop.f32.mrb[3].mxu0 }
 0x21e   : > { %2108 = vmatprep.subr.bf16.mxu1 %v2107_v14  ;;  %v1237_v14 = vld [vmem:[#allocation20 + $0x2f0] sm:$0xff]  ;;  %557 = vst [vmem:[#allocation9 + $0x5] sm:$0x1] %v556_v62  ;;  %s1462_s3 = scalar_lea.vmem [#allocation2], %s2884_s23 }
 0x21f   : > { %v2129_v20 = vpack.c.bf16 %v1237_v14, %v1233_v13  ;;  %v962_v4 = vrot.slane %v2849_v52, %v961_v2  ;;  %v576_v13 = vld [vmem:[%s575_s18] sm:$0x1]  ;;  %s2474_s18 = smov [#allocation22]  }
 0x220   : > { %2078 = vmatpush1.bf16.msra.mxu0 %v2077_v11  ;;  %v593_v14 = vld [vmem:[%s592_s20] sm:$0x1]  ;;  %577 = vst [vmem:[#allocation9 + $0xe] sm:$0x1] %v576_v13  ;;  %s1519_s11 = scalar_lea.vmem [#allocation3], %s2899_s21  ;;  %s1517_s26 = scalar_lea.vmem [#allocation2], %s2899_s21 }
 0x221   : > { %2110 = vmatpush1.bf16.msra.mxu1 %v2109_v24  ;;  %v1245_v24 = vld [vmem:[#allocation20 + $0x330] sm:$0xff]  ;;  %2080 = vmatprep.subr.bf16.mxu0 %v2079_v16  ;;  %v1044_v11 = vadd.f32 %v1043_v3, %v962_v4  ;;  %594 = vst [vmem:[#allocation9 + $0xf] sm:$0x1] %v593_v14  ;;  %s3048_s20 = sld [smem:[#allocation39_spill]] }
 0x222   : > { %2112 = vmatprep.subr.bf16.mxu1 %v2111_v26  ;;  %v1254_v26 = vld [vmem:[#allocation20 + $0x378] sm:$0xff]  ;;  %v2133_v27 = vpack.c.bf16 %v1245_v24, %v1241_v23  ;;  %v966_v23 = vrot.slane %v2849_v52, %v965_v18 }
 0x223   : > { %v2135_v28 = vpack.c.bf16 %v1254_v26, %v1250_v25  ;;  %v1739_v15 = vmul.f32 -1.442695, %v1044_v11 }
 0x224   : > { %2082 = vmatpush1.bf16.msra.mxu0 %v2081_v21 }
 0x225   : > { %2114 = vmatpush1.bf16.msra.mxu1 %v2113_v36  ;;  %v1261_v36 = vld [vmem:[#allocation20 + $0x3b0] sm:$0xff]  ;;  %2220 = vpow2.f32 %v1739_v15 }
 0x226   : > { %2116 = vmatprep.subr.bf16.mxu1 %v2115_v38  ;;  %v1270_v38 = vld [vmem:[#allocation20 + $0x3f8] sm:$0xff]  ;;  %v2141_v39 = vpack.c.bf16 %v1261_v36, %v1257_v35 }
 0x227   : > { %1358 = vmatmul.mubr.f32.vlgmr.msra.gmra.mrb[4].mxu0 %v2820_v55  ;;  %v2143_v40 = vpack.c.bf16 %v1270_v38, %v1266_v37  ;;  %v1271_v42 = vld [vmem:[%s3048_s20] sm:$0xf]  ;;  %s1553_s20 = sshll.u32 %s2474_s18, 4  ;;  %s1554_s20 = int_to_ptr.vmem [resolvable:$true] %s1553_s20 }
 0x228   : > { %v1280_v44 = vrot.slane %v1271_v42, %v961_v2  ;;  %p2413_p11 = scmp.lt.s32.totalorder %s1554_s20, %s1554_s20 }
 0x229   : > { %2118 = vmatpush1.bf16.msra.mxu1 %v2117_v47  ;;  %v798_v47 = vpop.permute.xlu0 %797 }
 0x22a   : > { %2120 = vmatprep.subr.bf16.mxu1 %v2119_v49 }
 0x22d   : > { %2122 = vmatpush1.bf16.msra.mxu1 %v2121_v61  ;;  %v539_v61 = vld [vmem:[%s538_s28] sm:$0x1]  ;;  %s1541_s28 = scalar_lea.vmem [#allocation3], %s2905_s19 }
 0x22e   : > { %2124 = vmatprep.subr.bf16.mxu1 %v2123_v63  ;;  %v1042_v63 = vadd.f32 %v1041_v54, %v958_v58  ;;  %540 = vst [vmem:[#allocation9 + $0x4] sm:$0x1] %v539_v61 }
 0x22f   : > { %v2221_v17 = vpop.eup %2220 }
 0x230   : > { %v1738_v16 = vmul.f32 -1.442695, %v1042_v63  ;;  %v1126_v21 = vadd.f32 1.0, %v2221_v17 }
 0x231   : > { %2126 = vmatpush1.bf16.msra.mxu1 %v2125_v10  ;;  %v542_v10 = vld [vmem:[%s541_s29] sm:$0x1]  ;;  %s1539_s29 = scalar_lea.vmem [#allocation2], %s2905_s19 }
 0x232   : > { %2128 = vmatprep.subr.bf16.mxu1 %v2127_v12  ;;  %543 = vst [vmem:[#allocation9 + $0xc] sm:$0x1] %v542_v10  ;;  %v559_v12 = vld [vmem:[%s558_s6] sm:$0x1]  ;;  %2222 = vpow2.f32 %v1738_v16  ;;  %s1471_s6 = scalar_lea.vmem [#allocation22], %s2887_s15 }
 0x233   : > { %560 = vst [vmem:[#allocation9 + $0xd] sm:$0x1] %v559_v12  ;;  %2224 = vrcp.f32 %v1126_v21 }
 0x235   : > { %2130 = vmatpush1.bf16.msra.mxu1 %v2129_v20  ;;  %v969_v20 = vsub.s32 3, %v2844_v51  ;;  %v821_v31 = vld [vmem:[#allocation9] sm:$0xff] }
 0x236   : > { %2132 = vmatprep.subr.bf16.mxu1 %v2131_v22 }
 0x237   : > { %v970_v24 = vrot.slane %v2849_v52, %v969_v20  ;;  %v1288_v59 = vrot.slane %v1271_v42, %v969_v20 }
 0x239   : > { %2134 = vmatpush1.bf16.msra.mxu1 %v2133_v27 }
 0x23a   : > { %2136 = vmatprep.subr.bf16.mxu1 %v2135_v28  ;;  %v822_v51 = vld [vmem:[#allocation9 + $0x8] sm:$0xff] }
 0x23c   : > { %v2223_v19 = vpop.eup %2222 }
 0x23d   : > { %2138 = vmatpush1.bf16.msra.mxu1 %v2137_v33  ;;  %v1120_v22 = vadd.f32 1.0, %v2223_v19  ;;  %v2225_v30 = vpop.eup %2224 }
 0x23e   : > { %2140 = vmatprep.subr.bf16.mxu1 %v2139_v34  ;;  %v1136_v33 = vmul.f32 %v2225_v30, %v821_v31 }
 0x23f   : > { %2226 = vrcp.f32 %v1120_v22 }
 0x241   : > { %2142 = vmatpush1.bf16.msra.mxu1 %v2141_v39 }
 0x242   : > { %2144 = vmatprep.subr.bf16.mxu1 %v2143_v40 }
 0x245   : > { %2146 = vmatpush1.bf16.msra.mxu1 %v2145_v43  ;;  %v1276_v43 = vrot.slane %v1271_v42, %v957_v53  ;;  %v1284_v53 = vrot.slane %v1271_v42, %v965_v18 }
 0x248   : > { %1429 = vmatmul.mubr.f32.vlgmr.msra.gmra.mrb[4].mxu1 %v2820_v55 }
 0x249   : > { %v2227_v32 = vpop.eup %2226 }
 0x29b   : > { %v789_v46 = vpop.f32.mrb[0].mxu1 }
 0x29c   : > { %v2832_v48 = vadd.f32 %v1736_v45, %v789_v46  ;;  %v1834_v49 = vpop.f32.mrb[1].mxu1 }
 0x29e   : > { %v2836_v50 = vadd.f32 %v798_v47, %v2832_v48  ;;  %v1737_v17 = vmul.f32 -1.442695, %v2832_v48 }
 0x2a0   : > { %v2841_v55 = vsel %vm801_vm1, %v2836_v50, -1e+30 }
 0x2a1   : > { %803 = vmax.xlane.f32.xlu0 %v2841_v55 }
 0x2db   : > { %v1112_v25 = vpop.f32.mrb[2].mxu1 }
 0x2dc   : > { %v1113_v26 = vadd.f32 %v1112_v25, %v966_v23  ;;  %v1114_v27 = vpop.f32.mrb[3].mxu1 }
 0x2dd   : > { %v1115_v28 = vadd.f32 %v1114_v27, %v970_v24 }
 0x2de   : > { %2228 = vtanh.f32 %v1113_v26 }
 0x2df   : > { %v1740_v29 = vmul.f32 -1.442695, %v1115_v28 }
 0x2e1   : > { %2230 = vpow2.f32 %v1740_v29 }
 0x2e8   : > { %v2229_v34 = vpop.eup %2228 }
 0x2e9   : > { %v1137_v35 = vmul.f32 %v2229_v34, %v2227_v32 }
 0x2eb   : > { %v2231_v36 = vpop.eup %2230  ;;  %v1138_v37 = vadd.f32 %v1137_v35, %v1136_v33 }
 0x2ec   : > { %v1133_v38 = vadd.f32 1.0, %v2231_v36 }
 0x2ed   : > { %1465 = vst [vmem:[%s1464_s22] sm:$0x1] %v1138_v37  ;;  %2232 = vtanh.f32 %v1138_v37  ;;  %s1490_s22 = scalar_lea.vmem [#allocation5], %s2890_s25 }
 0x2ee   : > { %2234 = vrcp.f32 %v1133_v38  ;;  %1476 = vst [vmem:[%s1475_s14 - $0x1] sm:$0x2] %v1138_v37  ;;  %s1501_s14 = scalar_lea.vmem [#allocation5], %s2893_s16 }
 0x2ef   : > { %1487 = vst [vmem:[%s1486_s7 - $0x2] sm:$0x4] %v1138_v37  ;;  %s1512_s7 = scalar_lea.vmem [#allocation5], %s2896_s2 }
 0x2f0   : > { %1498 = vst [vmem:[%s1497_s24 - $0x3] sm:$0x8] %v1138_v37  ;;  %s1523_s24 = scalar_lea.vmem [#allocation5], %s2899_s21 }
 0x2f1   : > { %1509 = vst [vmem:[%s1508_s1 - $0x4] sm:$0x10] %v1138_v37  ;;  %s1534_s1 = scalar_lea.vmem [#allocation5], %s2902_s17 }
 0x2f2   : > { %1520 = vst [vmem:[%s1519_s11 - $0x5] sm:$0x20] %v1138_v37  ;;  %s1545_s11 = scalar_lea.vmem [#allocation5], %s2905_s19 }
 0x2f3   : > { %1531 = vst [vmem:[%s1530_s12 - $0x6] sm:$0x40] %v1138_v37  ;;  %s1466_s12 = scalar_lea.vmem [#allocation4], %s2884_s23 }
 0x2f4   : > { %1542 = vst [vmem:[%s1541_s28 - $0x7] sm:$0x80] %v1138_v37  ;;  %s1477_s28 = scalar_lea.vmem [#allocation4], %s2887_s15  ;;  %s2406_s15 = scalar_lea.vmem %s1554_s20, 384 }
 0x2f5   : > { %p2407_p1 = scmp.ne.s32.totalorder %s1554_s20, %s2406_s15  ;;  %p2414_p12 = scmp.lt.s32.totalorder %s2406_s15, %s2406_s15 }
 0x2f7   : > { %v2233_v39 = vpop.eup %2232  ;;  %p2415_p13 = por %p2414_p12, %p2413_p11 }
 0x2f8   : > { %v2235_v40 = vpop.eup %2234 }
 0x2f9   : > { %v1140_v41 = vmul.f32 %v2235_v40, %v2233_v39 }
 0x2fa   : > { %v1359_v45 = vpop.f32.mrb[4].mxu0 }
 0x2fb   : > { %1463 = vst [vmem:[%s1462_s3] sm:$0x1] %v1140_v41  ;;  %v1360_v46 = vadd.f32 %v1359_v45, %v1276_v43  ;;  %v1361_v47 = vpop.f32.mrb[5].mxu0  ;;  %s1488_s3 = scalar_lea.vmem [#allocation4], %s2890_s25 }
 0x2fc   : > { %1474 = vst [vmem:[%s1473_s5 - $0x1] sm:$0x2] %v1140_v41  ;;  %v1362_v49 = vadd.f32 %v1361_v47, %v1280_v44  ;;  %s1499_s5 = scalar_lea.vmem [#allocation4], %s2893_s16 }
 0x2fd   : > { %1485 = vst [vmem:[%s1484_s30 - $0x2] sm:$0x4] %v1140_v41  ;;  %v1741_v52 = vmul.f32 -1.442695, %v1360_v46  ;;  %s1510_s30 = scalar_lea.vmem [#allocation4], %s2896_s2 }
 0x2fe   : > { %1496 = vst [vmem:[%s1495_s9 - $0x3] sm:$0x8] %v1140_v41  ;;  %v1742_v54 = vmul.f32 -1.442695, %v1362_v49  ;;  %s1521_s9 = scalar_lea.vmem [#allocation4], %s2899_s21 }
 0x2ff   : > { %1507 = vst [vmem:[%s1506_s13 - $0x4] sm:$0x10] %v1140_v41  ;;  %2236 = vpow2.f32 %v1741_v52  ;;  %s1532_s13 = scalar_lea.vmem [#allocation4], %s2902_s17 }
 0x300   : > { %1518 = vst [vmem:[%s1517_s26 - $0x5] sm:$0x20] %v1140_v41  ;;  %2238 = vpow2.f32 %v1742_v54  ;;  %s1543_s26 = scalar_lea.vmem [#allocation4], %s2905_s19 }
 0x301   : > { %1529 = vst [vmem:[%s1528_s27 - $0x6] sm:$0x40] %v1140_v41  ;;  %s3049_s27 = sld [smem:[#allocation29_spill]] }
 0x302   : > { %1540 = vst [vmem:[%s1539_s29 - $0x7] sm:$0x80] %v1140_v41  ;;  %s1460_s29 = scalar_lea.vmem [#allocation22], %s2884_s23  ;;  %s1537_s23 = scalar_lea.vmem [#allocation22], %s2905_s19 }
 0x307   : > { %p2188_p8 = scmp.eq.s32.totalorder %s3049_s27, 4 }
 0x309   : > { %v2237_v60 = vpop.eup %2236  ;;  %p2408_p9 = pnand %p2407_p1, %p2188_p8 }
 0x30a   : > { %v2239_v62 = vpop.eup %2238  ;;  %v1438_v63 = vadd.f32 1.0, %v2237_v60 }
 0x30b   : > { %v1444_v2 = vadd.f32 1.0, %v2239_v62  ;;  %p2409_p10 = pneg %p2408_p9 }
 0x30d   : > { %p2416_p7 = pnand %p2415_p13, %p2409_p10 }
 0x31b   : > { %v1430_v61 = vpop.f32.mrb[4].mxu1 }
 0x31c   : > { %v1431_v0 = vadd.f32 %v1430_v61, %v1284_v53  ;;  %v1432_v1 = vpop.f32.mrb[5].mxu1 }
 0x31d   : > { %v1433_v3 = vadd.f32 %v1432_v1, %v1288_v59 }
 0x32e   : > { %v2930_v56 = vpop.xlane.xlu0 %803 }
 0x32f   : > { %v805_v57 = vsub.f32 %v2841_v55, %v2930_v56  ;;  %v1743_v55 = vmul.f32 -1.442695, %v1433_v3 }
 0x331   : > { %v806_v58 = vmul.f32 1.442695, %v805_v57 }
 0x333   : > { %2240 = vpow2.f32 %v806_v58 }
 0x334   : > { %2242 = vrcp.f32 %v1438_v63 }
 0x335   : > { %2244 = vrcp.f32 %v1444_v2 }
 0x336   : > { %2246 = vtanh.f32 %v1431_v0 }
 0x337   : > { %2248 = vpow2.f32 %v1743_v55 }
 0x33d   : > { %v2241_v4 = vpop.eup %2240 }
 0x33e   : > { %808 = vadd.xlane.f32.xlu1 %v2241_v4  ;;  %v2243_v5 = vpop.eup %2242 }
 0x33f   : > { %v2245_v6 = vpop.eup %2244 }
 0x340   : > { %v2247_v7 = vpop.eup %2246  ;;  %v1454_v8 = vmul.f32 %v2245_v6, %v822_v51 }
 0x341   : > { %v2249_v10 = vpop.eup %2248  ;;  %v1455_v11 = vmul.f32 %v2247_v7, %v2243_v5 }
 0x342   : > { %v1451_v12 = vadd.f32 1.0, %v2249_v10 }
 0x343   : > { %v1456_v13 = vadd.f32 %v1455_v11, %v1454_v8 }
 0x344   : > { %2250 = vrcp.f32 %v1451_v12 }
 0x345   : > { %1469 = vst [vmem:[%s1468_s4] sm:$0x1] %v1456_v13  ;;  %2252 = vtanh.f32 %v1456_v13  ;;  %s1482_s4 = scalar_lea.vmem [#allocation22], %s2890_s25 }
 0x346   : > { %1480 = vst [vmem:[%s1479_s0 - $0x1] sm:$0x2] %v1456_v13  ;;  %2254 = vpow2.f32 %v1737_v17  ;;  %s1493_s0 = scalar_lea.vmem [#allocation22], %s2893_s16 }
 0x347   : > { %1491 = vst [vmem:[%s1490_s22 - $0x2] sm:$0x4] %v1456_v13  ;;  %s1504_s22 = scalar_lea.vmem [#allocation22], %s2896_s2 }
 0x348   : > { %1502 = vst [vmem:[%s1501_s14 - $0x3] sm:$0x8] %v1456_v13  ;;  %s1515_s14 = scalar_lea.vmem [#allocation22], %s2899_s21 }
 0x349   : > { %1513 = vst [vmem:[%s1512_s7 - $0x4] sm:$0x10] %v1456_v13  ;;  %s1526_s7 = scalar_lea.vmem [#allocation22], %s2902_s17 }
 0x34a   : > { %1524 = vst [vmem:[%s1523_s24 - $0x5] sm:$0x20] %v1456_v13 }
 0x34b   : > { %1535 = vst [vmem:[%s1534_s1 - $0x6] sm:$0x40] %v1456_v13 }
 0x34c   : > { %1546 = vst [vmem:[%s1545_s11 - $0x7] sm:$0x80] %v1456_v13 }
 0x34e   : > { %v2251_v14 = vpop.eup %2250 }
 0x34f   : > { %v2253_v15 = vpop.eup %2252 }
 0x350   : > { %v1458_v16 = vmul.f32 %v2253_v15, %v2251_v14  ;;  %v2255_v18 = vpop.eup %2254 }
 0x351   : > { %v817_v20 = vadd.f32 1.0, %v2255_v18 }
 0x352   : > { %1467 = vst [vmem:[%s1466_s12] sm:$0x1] %v1458_v16 }
 0x353   : > { %1478 = vst [vmem:[%s1477_s28 - $0x1] sm:$0x2] %v1458_v16 }
 0x354   : > { %1489 = vst [vmem:[%s1488_s3 - $0x2] sm:$0x4] %v1458_v16 }
 0x355   : > { %1500 = vst [vmem:[%s1499_s5 - $0x3] sm:$0x8] %v1458_v16 }
 0x356   : > { %1511 = vst [vmem:[%s1510_s30 - $0x4] sm:$0x10] %v1458_v16 }
 0x357   : > { %1522 = vst [vmem:[%s1521_s9 - $0x5] sm:$0x20] %v1458_v16 }
 0x358   : > { %1533 = vst [vmem:[%s1532_s13 - $0x6] sm:$0x40] %v1458_v16 }
 0x359   : > { %1544 = vst [vmem:[%s1543_s26 - $0x7] sm:$0x80] %v1458_v16 }
 0x3cb   : > { %v809_v19 = vpop.xlane.xlu1 %808 }
 0x3cc   : > { %2256 = vlog2.f32 %v809_v19 }
 0x3cd   : > { %2258 = vrcp.f32 %v817_v20 }
 0x3d6   : > { %v2257_v21 = vpop.eup %2256 }
 0x3d7   : > { %v811_v22 = vmul.f32 0.6931472, %v2257_v21  ;;  %v2259_v25 = vpop.eup %2258 }
 0x3d9   : > { %v812_v23 = vadd.f32 %v811_v22, %v2930_v56 }
 0x3db   : > { %v813_v24 = vsub.f32 %v2836_v50, %v812_v23 }
 0x3dd   : > { %v820_v48 = vsel %vm801_vm1, %v813_v24, %v2259_v25 }
 0x3de   : > { %1461 = vst [vmem:[%s1460_s29] sm:$0x1] %v820_v48 }
 0x3df   : > { %1472 = vst [vmem:[%s1471_s6 - $0x1] sm:$0x2] %v820_v48 }
 0x3e0   : > { %1483 = vst [vmem:[%s1482_s4 - $0x2] sm:$0x4] %v820_v48 }
 0x3e1   : > { %1494 = vst [vmem:[%s1493_s0 - $0x3] sm:$0x8] %v820_v48 }
 0x3e2   : > { %1505 = vst [vmem:[%s1504_s22 - $0x4] sm:$0x10] %v820_v48 }
 0x3e3   : > { %1516 = vst [vmem:[%s1515_s14 - $0x5] sm:$0x20] %v820_v48 }
 0x3e4   : > { %1527 = vst [vmem:[%s1526_s7 - $0x6] sm:$0x40] %v820_v48 }
 0x3e5   : > { %1538 = vst [vmem:[%s1537_s23 - $0x7] sm:$0x80] %v820_v48 }
 0x3e6   : > { %2419 = shalt.err (!%p2416_p7)
}
 0x3e7   : > { %s3050_s2 = sld [smem:[#allocation40_spill]] }
 0x3ed   : > { %s2420_s21 = scalar_lea.hbm %s3050_s2, 384 }
 0x3ee   : > { %p2421_p0 = scmp.ne.s32.totalorder %s3050_s2, %s2420_s21  ;;  %p2426_p5 = scmp.lt.u32.totalorder %s2420_s21, %s3050_s2 }
 0x3f0   : > { %p2422_p2 = pnand %p2421_p0, %p2188_p8 }
 0x3f2   : > { %p2423_p3 = pneg %p2422_p2 }
 0x3f4   : > { %p2428_p4 = pnand %p2426_p5, %p2423_p3 }
 0x3f6   : > { %2431 = shalt.err (!%p2428_p4)
}
 0x3f7   : > { %s2475_s11 = smov 128   ;;  %s2476_s12 = smov 8  }
 0x3f8   : > { %2164 = dma.vmem_to_hbm [thread:$0]  (%p2188_p8), %s1554_s20, 384, %s3050_s2, [#allocation16], %s2475_s11, %s2475_s11, %s2476_s12  }
 0x3f9   : > { %2451 = dma.done.wait (%p2188_p8), [#allocation16], 384  }
 0x3fa   : > { %2453 = vsyncadd (%p2188_p8), [#allocation16], 4294966912 }
 0x3fb PF: > { %s3051_s5 = sld [smem:[#allocation28_spill]] }
 0x401   : > { %s39_s26 = sadd.s32 1, %s3051_s5  }
 0x402   : > { %p36_p6 = scmp.ge.s32.totalorder %s39_s26, 7  }
 0x404   :  { %38 = sbr.rel (!%p36_p6) target bundleno = 39 (0x27), region = 183 }
 0x40b   :  { %1569 = vsyncpa [#allocation15], 1 }
 0x40c   :  { %1571 = vsyncpa [#allocation15 + $0x1], 1 }
 0x40d   :  { %1572 = vsyncpa [#allocation18], 1 }
 0x40e   :  { %1573 = vsyncpa [#allocation21], 1 }
 0x40f   :  { %1574 = vsyncpa [#allocation16], 1 }
 0x410   :  { %1576 = vsyncpa [#allocation16 + $0x1], 1 }

</bundles_post_ra>
